<compile_context>
chip_gen: v5e
topology: v5e:2x2
jax: 0.10.0
libtpu: 0.0.40
codegen_flags: <defaults>
</compile_context>

<pallas_src>
import jax
import jax.numpy as jnp
from jax import lax
from jax.experimental import pallas as pl
from jax.experimental.pallas import tpu as pltpu

H, W = 6, 7
HW = H * W           # 42
CIN = 128
CV = 3               # value-head conv channels
CP = 32              # policy-head conv channels
CTOT = CV + CP       # 35 fused conv output channels
FC1 = 32
NPOL = 7
NOUT = FC1 + NPOL    # 39 combined FC outputs (value fc1 | policy logits)
NMERGED = NPOL + 1   # 8 merged output lanes (policy probs | value)
EPS = 1e-5


def output_block_kernel(x_ref, wc_ref, bc_ref, wg_ref, bout_ref, w2_ref, b2_ref,
                        out_ref, y_ref):
    # x_ref:   [HW, TN, CIN]    bf16, channels-last, spatial-major
    # wc_ref:  [CIN, CTOT]      bf16 fused (value|policy) 1x1 conv weight (BN folded)
    # bc_ref:  [1, CTOT]        f32 fused conv bias (BN folded)
    # wg_ref:  [HW, CTOT, NOUT] bf16 combined FC weight (value fc1 | policy fc)
    # bout_ref:[1, NOUT]        f32 combined FC bias
    # w2_ref:  [1, FC1], b2_ref:[1,1]   value-head fc2
    # out_ref: [TN, 8]          lanes 0:7 policy probs, lane 7 value
    # y_ref:   VMEM scratch [HW, TN, CTOT] bf16 (post-conv/BN/ReLU slab)
    tn = x_ref.shape[1]

    # ---------- stage 1: ONE big matmul for both 1x1 convs (+BN) + ReLU ----------
    x2 = x_ref[...].reshape(HW * tn, CIN)                    # free leading-dim merge
    y = jnp.dot(x2, wc_ref[...], preferred_element_type=jnp.float32)
    y = jnp.maximum(y + bc_ref[...], 0.0)                    # [HW*TN, 35] f32
    y_ref[...] = y.astype(jnp.bfloat16).reshape(HW, tn, CTOT)  # free leading split

    # ---------- stage 2: tiny per-position FC contraction, fully unrolled ----------
    # acc initialized directly with the broadcast FC bias (no zeros + later add).
    acc = jnp.broadcast_to(bout_ref[...], (tn, NOUT))        # [TN, 39] f32
    for hw in range(HW):                                     # static -> fully unrolled
        acc = acc + jnp.dot(y_ref[hw], wg_ref[hw],
                            preferred_element_type=jnp.float32)

    # ---------- value head epilogue ----------
    h = jnp.maximum(acc[:, :FC1], 0.0)                       # relu(fc1)
    val = jnp.tanh(jnp.sum(h * w2_ref[...], axis=1, keepdims=True)
                   + b2_ref[...])                            # [TN, 1]

    # ---------- policy head epilogue (logsoftmax().exp() == softmax) ----------
    logits = acc[:, FC1:FC1 + NPOL]                          # [TN, 7]
    m = jnp.max(logits, axis=1, keepdims=True)
    e = jnp.exp(logits - m)
    # exact divide (once-per-step epilogue; keeps tolerance headroom vs approx rcp)
    probs = e / jnp.sum(e, axis=1, keepdims=True)

    out_ref[:, 0:NPOL] = probs
    out_ref[:, NPOL:NMERGED] = val


def _round_up(a, b):
    return ((a + b - 1) // b) * b


def _pick_tile(n, tn_max):
    # Aim for >=2 grid steps (the batch axis is "parallel": v7x has 2 TCs),
    # keep the tile a multiple of 16 (clean bf16 sublane packing).
    half = -(-n // 2)
    return min(tn_max, max(16, _round_up(half, 16)))


def output_block_forward(s, params, *, tn_max=256):
    """s: [N, 128, 6, 7] float32 (NCHW).  Returns (policy [N,7], value [N,1]).

    tn_max=256 keeps the VMEM footprint safe on v7x (64 MiB); v5e/v6e
    (128 MiB VMEM) can pass tn_max=512 for better per-step amortization.
    """
    wc, bc, wg, bout, w2, b2 = params
    N = s.shape[0]

    tn = _pick_tile(N, tn_max)
    n_pad = _round_up(N, tn)

    # Channels-last, spatial-major, bf16: [HW, N, CIN].  The transpose/cast/pad
    # fuse into one copy; allow_input_fusion below lets XLA fold it into the
    # pallas input DMA instead of materializing it.
    x = s.reshape(N, CIN, HW).transpose(2, 0, 1).astype(jnp.bfloat16)
    if n_pad != N:
        x = jnp.pad(x, ((0, 0), (0, n_pad - N), (0, 0)))

    out = pl.pallas_call(
        output_block_kernel,
        out_shape=jax.ShapeDtypeStruct((n_pad, NMERGED), jnp.float32),
        grid=(n_pad // tn,),
        in_specs=[
            pl.BlockSpec((HW, tn, CIN), lambda i: (0, i, 0)),     # x (TN samples)
            pl.BlockSpec((CIN, CTOT), lambda i: (0, 0)),          # fused conv w (bf16)
            pl.BlockSpec((1, CTOT), lambda i: (0, 0)),            # fused conv b
            pl.BlockSpec((HW, CTOT, NOUT), lambda i: (0, 0, 0)),  # combined FC w (bf16)
            pl.BlockSpec((1, NOUT), lambda i: (0, 0)),            # combined FC b
            pl.BlockSpec((1, FC1), lambda i: (0, 0)),             # fc2 weight
            pl.BlockSpec((1, 1), lambda i: (0, 0)),               # fc2 bias
        ],
        out_specs=pl.BlockSpec((tn, NMERGED), lambda i: (i, 0)),
        scratch_shapes=[pltpu.VMEM((HW, tn, CTOT), jnp.bfloat16)],
        compiler_params=pltpu.CompilerParams(
            dimension_semantics=("parallel",),
            vmem_limit_bytes=48 * 1024 * 1024,
            allow_input_fusion=[True, False, False, False, False, False, False]),
    )(x, wc, bc, wg, bout, w2, b2)

    return out[:N, :NPOL], out[:N, NPOL:NMERGED]


# ----------------------------- parameter setup -----------------------------

def init_params(key):
    ks = jax.random.split(key, 18)

    def w(k, shape, s=0.05):
        return (s * jax.random.normal(k, shape)).astype(jnp.float32)

    P = {}
    P['conv_w'] = w(ks[0], (CV, CIN))                 # Conv2d(128,3,1) weight (1x1 squeezed)
    P['conv_b'] = w(ks[1], (CV,))
    P['bn_gamma'] = 1.0 + w(ks[2], (CV,), 0.1)
    P['bn_beta'] = w(ks[3], (CV,), 0.1)
    P['bn_mean'] = w(ks[4], (CV,), 0.1)
    P['bn_var'] = 0.5 + jnp.abs(w(ks[5], (CV,), 0.2))
    P['fc1_w'] = w(ks[6], (FC1, CV * HW))
    P['fc1_b'] = w(ks[7], (FC1,))
    P['fc2_w'] = w(ks[8], (1, FC1))
    P['fc2_b'] = w(ks[9], (1,))
    P['conv1_w'] = w(ks[10], (CP, CIN))               # Conv2d(128,32,1)
    P['conv1_b'] = w(ks[11], (CP,))
    P['bn1_gamma'] = 1.0 + w(ks[12], (CP,), 0.1)
    P['bn1_beta'] = w(ks[13], (CP,), 0.1)
    P['bn1_mean'] = w(ks[14], (CP,), 0.1)
    P['bn1_var'] = 0.5 + jnp.abs(w(ks[15], (CP,), 0.2))
    P['fc_w'] = w(ks[16], (NPOL, CP * HW))
    P['fc_b'] = w(ks[17], (NPOL,))
    return P


def fold_params(P):
    """Fold eval-mode BN into the 1x1 convs, fuse the two convs into one
    [CIN, 35] weight, and reorganize both FC weights into a single block-sparse
    [HW, 35, 39] tensor so the kernel's per-position contraction reproduces the
    PyTorch (C,H,W) flatten order exactly.  Matmul operands are cast to bf16
    (accumulation stays f32 in-kernel); biases stay f32."""
    sv = P['bn_gamma'] / jnp.sqrt(P['bn_var'] + EPS)
    wv = P['conv_w'] * sv[:, None]                                     # [3,128]
    bv = sv * (P['conv_b'] - P['bn_mean']) + P['bn_beta']              # [3]

    sp = P['bn1_gamma'] / jnp.sqrt(P['bn1_var'] + EPS)
    wp = P['conv1_w'] * sp[:, None]                                    # [32,128]
    bp = sp * (P['conv1_b'] - P['bn1_mean']) + P['bn1_beta']           # [32]

    wc = jnp.concatenate([wv, wp], axis=0).T.astype(jnp.bfloat16)      # [128, 35] bf16
    bc = jnp.concatenate([bv, bp])[None, :]                            # [1, 35]  f32

    # fc1_w[o, c*42+hw] -> wg_v[hw, c, o];  fc_w[o, c*42+hw] -> wg_p[hw, c, o]
    wg_v = P['fc1_w'].reshape(FC1, CV, HW).transpose(2, 1, 0)          # [42, 3, 32]
    wg_p = P['fc_w'].reshape(NPOL, CP, HW).transpose(2, 1, 0)          # [42, 32, 7]
    top = jnp.concatenate([wg_v, jnp.zeros((HW, CV, NPOL), jnp.float32)], axis=2)
    bot = jnp.concatenate([jnp.zeros((HW, CP, FC1), jnp.float32), wg_p], axis=2)
    wg = jnp.concatenate([top, bot], axis=1).astype(jnp.bfloat16)      # [42, 35, 39] bf16

    bout = jnp.concatenate([P['fc1_b'], P['fc_b']])[None, :]           # [1, 39] f32
    w2 = P['fc2_w']                                                    # [1, 32] f32
    b2 = P['fc2_b'][None, :]                                           # [1, 1]  f32
    return (wc, bc, wg, bout, w2, b2)


# ----------------------------- pure-JAX reference -----------------------------

def ref_forward(s, P):
    N = s.shape[0]
    hp = jax.lax.Precision.HIGHEST

    def bn(y, g, b, m, v):
        return ((y - m[None, :, None, None])
                / jnp.sqrt(v[None, :, None, None] + EPS)
                * g[None, :, None, None] + b[None, :, None, None])

    v = jnp.einsum('oi,nihw->nohw', P['conv_w'], s, precision=hp) \
        + P['conv_b'][None, :, None, None]
    v = jax.nn.relu(bn(v, P['bn_gamma'], P['bn_beta'], P['bn_mean'], P['bn_var']))
    v = v.reshape(N, CV * HW)
    v = jax.nn.relu(jnp.dot(v, P['fc1_w'].T, precision=hp) + P['fc1_b'])
    val = jnp.tanh(jnp.dot(v, P['fc2_w'].T, precision=hp) + P['fc2_b'])

    p = jnp.einsum('oi,nihw->nohw', P['conv1_w'], s, precision=hp) \
        + P['conv1_b'][None, :, None, None]
    p = jax.nn.relu(bn(p, P['bn1_gamma'], P['bn1_beta'], P['bn1_mean'], P['bn1_var']))
    p = p.reshape(N, CP * HW)
    logits = jnp.dot(p, P['fc_w'].T, precision=hp) + P['fc_b']
    pol = jax.nn.softmax(logits, axis=1)
    return pol, val


if __name__ == "__main__":
    key = jax.random.PRNGKey(0)
    k_in, k_par = jax.random.split(key)

    N = 2
    s = jax.random.normal(k_in, (N, CIN, H, W), jnp.float32)   # NCHW, like PyTorch

    raw = init_params(k_par)
    folded = fold_params(raw)

    p_out, v_out = jax.jit(output_block_forward)(s, folded)
    jax.block_until_ready((p_out, v_out))

    p_ref, v_ref = ref_forward(s, raw)
    assert p_out.shape == (N, NPOL) and v_out.shape == (N, 1)
    assert bool(jnp.allclose(p_out, p_ref, atol=2e-3, rtol=2e-3)), "policy mismatch"
    assert bool(jnp.allclose(v_out, v_ref, atol=2e-3, rtol=2e-3)), "value mismatch"

    print("KERNEL_OK")
</pallas_src>

<mosaic_0001>
module attributes {stable_mosaic.version = 11 : i64} {
  func.func @output_block_kernel(%arg0: i32, %arg1: memref<42x16x128xbf16, #tpu.memory_space<vmem>>, %arg2: memref<128x35xbf16, #tpu.memory_space<vmem>>, %arg3: memref<1x35xf32, #tpu.memory_space<vmem>>, %arg4: memref<42x35x39xbf16, #tpu.memory_space<vmem>>, %arg5: memref<1x39xf32, #tpu.memory_space<vmem>>, %arg6: memref<1x32xf32, #tpu.memory_space<vmem>>, %arg7: memref<1x1xf32, #tpu.memory_space<vmem>>, %arg8: memref<16x8xf32, #tpu.memory_space<vmem>>, %arg9: memref<42x16x35xbf16, #tpu.memory_space<vmem>>) attributes {dimension_semantics = [#tpu.dimension_semantics<parallel>], iteration_bounds = array<i64: 1>, scalar_prefetch = 0 : i64, scratch_operands = 1 : i64, tpu.core_type = #tpu.core_type<tc>, window_params = [{transform_indices = @transform_0, window_bounds = array<i64: 42, 16, 128>}, {pipeline_mode = #tpu.pipeline_mode<synchronous>, transform_indices = @transform_1, window_bounds = array<i64: 128, 35>}, {pipeline_mode = #tpu.pipeline_mode<synchronous>, transform_indices = @transform_2, window_bounds = array<i64: 1, 35>}, {pipeline_mode = #tpu.pipeline_mode<synchronous>, transform_indices = @transform_3, window_bounds = array<i64: 42, 35, 39>}, {pipeline_mode = #tpu.pipeline_mode<synchronous>, transform_indices = @transform_4, window_bounds = array<i64: 1, 39>}, {pipeline_mode = #tpu.pipeline_mode<synchronous>, transform_indices = @transform_5, window_bounds = array<i64: 1, 32>}, {pipeline_mode = #tpu.pipeline_mode<synchronous>, transform_indices = @transform_6, window_bounds = array<i64: 1, 1>}, {transform_indices = @transform_7, window_bounds = array<i64: 16, 8>}]} {
    %c0 = arith.constant 0 : index
    %c0_0 = arith.constant 0 : index
    %c0_1 = arith.constant 0 : index
    %0 = vector.load %arg1[%c0, %c0_0, %c0_1] : memref<42x16x128xbf16, #tpu.memory_space<vmem>>, vector<42x16x128xbf16>
    %1 = vector.shape_cast %0 : vector<42x16x128xbf16> to vector<672x128xbf16>
    %c0_2 = arith.constant 0 : index
    %c0_3 = arith.constant 0 : index
    %2 = vector.load %arg2[%c0_2, %c0_3] : memref<128x35xbf16, #tpu.memory_space<vmem>>, vector<128x35xbf16>
    %cst = arith.constant dense<0.000000e+00> : vector<672x35xf32>
    %3 = tpu.matmul %1, %2, %cst {dimension_numbers = #tpu.dot_dimension_numbers<[1], [0], [0], [1], [0, 0, 1, 1], [], []>} : vector<672x128xbf16>, vector<128x35xbf16>, vector<672x35xf32> -> vector<672x35xf32>
    %c0_4 = arith.constant 0 : index
    %c0_5 = arith.constant 0 : index
    %4 = vector.load %arg3[%c0_4, %c0_5] : memref<1x35xf32, #tpu.memory_space<vmem>>, vector<1x35xf32>
    %5 = vector.broadcast %4 : vector<1x35xf32> to vector<672x35xf32>
    %6 = arith.addf %3, %5 : vector<672x35xf32>
    %cst_6 = arith.constant 0.000000e+00 : f32
    %7 = vector.broadcast %cst_6 : f32 to vector<672x35xf32>
    %8 = arith.maximumf %6, %7 : vector<672x35xf32>
    %9 = arith.truncf %8 : vector<672x35xf32> to vector<672x35xbf16>
    %10 = vector.shape_cast %9 : vector<672x35xbf16> to vector<42x16x35xbf16>
    %c0_7 = arith.constant 0 : index
    %c0_8 = arith.constant 0 : index
    %c0_9 = arith.constant 0 : index
    %11 = vector.load %arg9[%c0_7, %c0_8, %c0_9] : memref<42x16x35xbf16, #tpu.memory_space<vmem>>, vector<42x16x35xbf16>
    tpu.vector_store %arg9[%c0_7, %c0_8, %c0_9], %10 {strides = array<i32>} : memref<42x16x35xbf16, #tpu.memory_space<vmem>>, vector<42x16x35xbf16>,
    %c0_10 = arith.constant 0 : index
    %c0_11 = arith.constant 0 : index
    %12 = vector.load %arg5[%c0_10, %c0_11] : memref<1x39xf32, #tpu.memory_space<vmem>>, vector<1x39xf32>
    %13 = vector.shape_cast %12 : vector<1x39xf32> to vector<1x39xf32>
    %14 = vector.broadcast %13 : vector<1x39xf32> to vector<16x39xf32>
    %c0_12 = arith.constant 0 : index
    %c0_13 = arith.constant 0 : index
    %c0_14 = arith.constant 0 : index
    %15 = vector.load %arg9[%c0_12, %c0_13, %c0_14] : memref<42x16x35xbf16, #tpu.memory_space<vmem>>, vector<1x16x35xbf16>
    %16 = vector.shape_cast %15 : vector<1x16x35xbf16> to vector<16x35xbf16>
    %c0_15 = arith.constant 0 : index
    %c0_16 = arith.constant 0 : index
    %c0_17 = arith.constant 0 : index
    %17 = vector.load %arg4[%c0_15, %c0_16, %c0_17] : memref<42x35x39xbf16, #tpu.memory_space<vmem>>, vector<1x35x39xbf16>
    %18 = vector.shape_cast %17 : vector<1x35x39xbf16> to vector<35x39xbf16>
    %cst_18 = arith.constant dense<0.000000e+00> : vector<16x39xf32>
    %19 = tpu.matmul %16, %18, %cst_18 {dimension_numbers = #tpu.dot_dimension_numbers<[1], [0], [0], [1], [0, 0, 1, 1], [], []>} : vector<16x35xbf16>, vector<35x39xbf16>, vector<16x39xf32> -> vector<16x39xf32>
    %20 = arith.addf %14, %19 : vector<16x39xf32>
    %c1 = arith.constant 1 : index
    %c0_19 = arith.constant 0 : index
    %c0_20 = arith.constant 0 : index
    %21 = vector.load %arg9[%c1, %c0_19, %c0_20] : memref<42x16x35xbf16, #tpu.memory_space<vmem>>, vector<1x16x35xbf16>
    %22 = vector.shape_cast %21 : vector<1x16x35xbf16> to vector<16x35xbf16>
    %c1_21 = arith.constant 1 : index
    %c0_22 = arith.constant 0 : index
    %c0_23 = arith.constant 0 : index
    %23 = vector.load %arg4[%c1_21, %c0_22, %c0_23] : memref<42x35x39xbf16, #tpu.memory_space<vmem>>, vector<1x35x39xbf16>
    %24 = vector.shape_cast %23 : vector<1x35x39xbf16> to vector<35x39xbf16>
    %cst_24 = arith.constant dense<0.000000e+00> : vector<16x39xf32>
    %25 = tpu.matmul %22, %24, %cst_24 {dimension_numbers = #tpu.dot_dimension_numbers<[1], [0], [0], [1], [0, 0, 1, 1], [], []>} : vector<16x35xbf16>, vector<35x39xbf16>, vector<16x39xf32> -> vector<16x39xf32>
    %26 = arith.addf %20, %25 : vector<16x39xf32>
    %c2 = arith.constant 2 : index
    %c0_25 = arith.constant 0 : index
    %c0_26 = arith.constant 0 : index
    %27 = vector.load %arg9[%c2, %c0_25, %c0_26] : memref<42x16x35xbf16, #tpu.memory_space<vmem>>, vector<1x16x35xbf16>
    %28 = vector.shape_cast %27 : vector<1x16x35xbf16> to vector<16x35xbf16>
    %c2_27 = arith.constant 2 : index
    %c0_28 = arith.constant 0 : index
    %c0_29 = arith.constant 0 : index
    %29 = vector.load %arg4[%c2_27, %c0_28, %c0_29] : memref<42x35x39xbf16, #tpu.memory_space<vmem>>, vector<1x35x39xbf16>
    %30 = vector.shape_cast %29 : vector<1x35x39xbf16> to vector<35x39xbf16>
    %cst_30 = arith.constant dense<0.000000e+00> : vector<16x39xf32>
    %31 = tpu.matmul %28, %30, %cst_30 {dimension_numbers = #tpu.dot_dimension_numbers<[1], [0], [0], [1], [0, 0, 1, 1], [], []>} : vector<16x35xbf16>, vector<35x39xbf16>, vector<16x39xf32> -> vector<16x39xf32>
    %32 = arith.addf %26, %31 : vector<16x39xf32>
    %c3 = arith.constant 3 : index
    %c0_31 = arith.constant 0 : index
    %c0_32 = arith.constant 0 : index
    %33 = vector.load %arg9[%c3, %c0_31, %c0_32] : memref<42x16x35xbf16, #tpu.memory_space<vmem>>, vector<1x16x35xbf16>
    %34 = vector.shape_cast %33 : vector<1x16x35xbf16> to vector<16x35xbf16>
    %c3_33 = arith.constant 3 : index
    %c0_34 = arith.constant 0 : index
    %c0_35 = arith.constant 0 : index
    %35 = vector.load %arg4[%c3_33, %c0_34, %c0_35] : memref<42x35x39xbf16, #tpu.memory_space<vmem>>, vector<1x35x39xbf16>
    %36 = vector.shape_cast %35 : vector<1x35x39xbf16> to vector<35x39xbf16>
    %cst_36 = arith.constant dense<0.000000e+00> : vector<16x39xf32>
    %37 = tpu.matmul %34, %36, %cst_36 {dimension_numbers = #tpu.dot_dimension_numbers<[1], [0], [0], [1], [0, 0, 1, 1], [], []>} : vector<16x35xbf16>, vector<35x39xbf16>, vector<16x39xf32> -> vector<16x39xf32>
    %38 = arith.addf %32, %37 : vector<16x39xf32>
    %c4 = arith.constant 4 : index
    %c0_37 = arith.constant 0 : index
    %c0_38 = arith.constant 0 : index
    %39 = vector.load %arg9[%c4, %c0_37, %c0_38] : memref<42x16x35xbf16, #tpu.memory_space<vmem>>, vector<1x16x35xbf16>
    %40 = vector.shape_cast %39 : vector<1x16x35xbf16> to vector<16x35xbf16>
    %c4_39 = arith.constant 4 : index
    %c0_40 = arith.constant 0 : index
    %c0_41 = arith.constant 0 : index
    %41 = vector.load %arg4[%c4_39, %c0_40, %c0_41] : memref<42x35x39xbf16, #tpu.memory_space<vmem>>, vector<1x35x39xbf16>
    %42 = vector.shape_cast %41 : vector<1x35x39xbf16> to vector<35x39xbf16>
    %cst_42 = arith.constant dense<0.000000e+00> : vector<16x39xf32>
    %43 = tpu.matmul %40, %42, %cst_42 {dimension_numbers = #tpu.dot_dimension_numbers<[1], [0], [0], [1], [0, 0, 1, 1], [], []>} : vector<16x35xbf16>, vector<35x39xbf16>, vector<16x39xf32> -> vector<16x39xf32>
    %44 = arith.addf %38, %43 : vector<16x39xf32>
    %c5 = arith.constant 5 : index
    %c0_43 = arith.constant 0 : index
    %c0_44 = arith.constant 0 : index
    %45 = vector.load %arg9[%c5, %c0_43, %c0_44] : memref<42x16x35xbf16, #tpu.memory_space<vmem>>, vector<1x16x35xbf16>
    %46 = vector.shape_cast %45 : vector<1x16x35xbf16> to vector<16x35xbf16>
    %c5_45 = arith.constant 5 : index
    %c0_46 = arith.constant 0 : index
    %c0_47 = arith.constant 0 : index
    %47 = vector.load %arg4[%c5_45, %c0_46, %c0_47] : memref<42x35x39xbf16, #tpu.memory_space<vmem>>, vector<1x35x39xbf16>
    %48 = vector.shape_cast %47 : vector<1x35x39xbf16> to vector<35x39xbf16>
    %cst_48 = arith.constant dense<0.000000e+00> : vector<16x39xf32>
    %49 = tpu.matmul %46, %48, %cst_48 {dimension_numbers = #tpu.dot_dimension_numbers<[1], [0], [0], [1], [0, 0, 1, 1], [], []>} : vector<16x35xbf16>, vector<35x39xbf16>, vector<16x39xf32> -> vector<16x39xf32>
    %50 = arith.addf %44, %49 : vector<16x39xf32>
    %c6 = arith.constant 6 : index
    %c0_49 = arith.constant 0 : index
    %c0_50 = arith.constant 0 : index
    %51 = vector.load %arg9[%c6, %c0_49, %c0_50] : memref<42x16x35xbf16, #tpu.memory_space<vmem>>, vector<1x16x35xbf16>
    %52 = vector.shape_cast %51 : vector<1x16x35xbf16> to vector<16x35xbf16>
    %c6_51 = arith.constant 6 : index
    %c0_52 = arith.constant 0 : index
    %c0_53 = arith.constant 0 : index
    %53 = vector.load %arg4[%c6_51, %c0_52, %c0_53] : memref<42x35x39xbf16, #tpu.memory_space<vmem>>, vector<1x35x39xbf16>
    %54 = vector.shape_cast %53 : vector<1x35x39xbf16> to vector<35x39xbf16>
    %cst_54 = arith.constant dense<0.000000e+00> : vector<16x39xf32>
    %55 = tpu.matmul %52, %54, %cst_54 {dimension_numbers = #tpu.dot_dimension_numbers<[1], [0], [0], [1], [0, 0, 1, 1], [], []>} : vector<16x35xbf16>, vector<35x39xbf16>, vector<16x39xf32> -> vector<16x39xf32>
    %56 = arith.addf %50, %55 : vector<16x39xf32>
    %c7 = arith.constant 7 : index
    %c0_55 = arith.constant 0 : index
    %c0_56 = arith.constant 0 : index
    %57 = vector.load %arg9[%c7, %c0_55, %c0_56] : memref<42x16x35xbf16, #tpu.memory_space<vmem>>, vector<1x16x35xbf16>
    %58 = vector.shape_cast %57 : vector<1x16x35xbf16> to vector<16x35xbf16>
    %c7_57 = arith.constant 7 : index
    %c0_58 = arith.constant 0 : index
    %c0_59 = arith.constant 0 : index
    %59 = vector.load %arg4[%c7_57, %c0_58, %c0_59] : memref<42x35x39xbf16, #tpu.memory_space<vmem>>, vector<1x35x39xbf16>
    %60 = vector.shape_cast %59 : vector<1x35x39xbf16> to vector<35x39xbf16>
    %cst_60 = arith.constant dense<0.000000e+00> : vector<16x39xf32>
    %61 = tpu.matmul %58, %60, %cst_60 {dimension_numbers = #tpu.dot_dimension_numbers<[1], [0], [0], [1], [0, 0, 1, 1], [], []>} : vector<16x35xbf16>, vector<35x39xbf16>, vector<16x39xf32> -> vector<16x39xf32>
    %62 = arith.addf %56, %61 : vector<16x39xf32>
    %c8 = arith.constant 8 : index
    %c0_61 = arith.constant 0 : index
    %c0_62 = arith.constant 0 : index
    %63 = vector.load %arg9[%c8, %c0_61, %c0_62] : memref<42x16x35xbf16, #tpu.memory_space<vmem>>, vector<1x16x35xbf16>
    %64 = vector.shape_cast %63 : vector<1x16x35xbf16> to vector<16x35xbf16>
    %c8_63 = arith.constant 8 : index
    %c0_64 = arith.constant 0 : index
    %c0_65 = arith.constant 0 : index
    %65 = vector.load %arg4[%c8_63, %c0_64, %c0_65] : memref<42x35x39xbf16, #tpu.memory_space<vmem>>, vector<1x35x39xbf16>
    %66 = vector.shape_cast %65 : vector<1x35x39xbf16> to vector<35x39xbf16>
    %cst_66 = arith.constant dense<0.000000e+00> : vector<16x39xf32>
    %67 = tpu.matmul %64, %66, %cst_66 {dimension_numbers = #tpu.dot_dimension_numbers<[1], [0], [0], [1], [0, 0, 1, 1], [], []>} : vector<16x35xbf16>, vector<35x39xbf16>, vector<16x39xf32> -> vector<16x39xf32>
    %68 = arith.addf %62, %67 : vector<16x39xf32>
    %c9 = arith.constant 9 : index
    %c0_67 = arith.constant 0 : index
    %c0_68 = arith.constant 0 : index
    %69 = vector.load %arg9[%c9, %c0_67, %c0_68] : memref<42x16x35xbf16, #tpu.memory_space<vmem>>, vector<1x16x35xbf16>
    %70 = vector.shape_cast %69 : vector<1x16x35xbf16> to vector<16x35xbf16>
    %c9_69 = arith.constant 9 : index
    %c0_70 = arith.constant 0 : index
    %c0_71 = arith.constant 0 : index
    %71 = vector.load %arg4[%c9_69, %c0_70, %c0_71] : memref<42x35x39xbf16, #tpu.memory_space<vmem>>, vector<1x35x39xbf16>
    %72 = vector.shape_cast %71 : vector<1x35x39xbf16> to vector<35x39xbf16>
    %cst_72 = arith.constant dense<0.000000e+00> : vector<16x39xf32>
    %73 = tpu.matmul %70, %72, %cst_72 {dimension_numbers = #tpu.dot_dimension_numbers<[1], [0], [0], [1], [0, 0, 1, 1], [], []>} : vector<16x35xbf16>, vector<35x39xbf16>, vector<16x39xf32> -> vector<16x39xf32>
    %74 = arith.addf %68, %73 : vector<16x39xf32>
    %c10 = arith.constant 10 : index
    %c0_73 = arith.constant 0 : index
    %c0_74 = arith.constant 0 : index
    %75 = vector.load %arg9[%c10, %c0_73, %c0_74] : memref<42x16x35xbf16, #tpu.memory_space<vmem>>, vector<1x16x35xbf16>
    %76 = vector.shape_cast %75 : vector<1x16x35xbf16> to vector<16x35xbf16>
    %c10_75 = arith.constant 10 : index
    %c0_76 = arith.constant 0 : index
    %c0_77 = arith.constant 0 : index
    %77 = vector.load %arg4[%c10_75, %c0_76, %c0_77] : memref<42x35x39xbf16, #tpu.memory_space<vmem>>, vector<1x35x39xbf16>
    %78 = vector.shape_cast %77 : vector<1x35x39xbf16> to vector<35x39xbf16>
    %cst_78 = arith.constant dense<0.000000e+00> : vector<16x39xf32>
    %79 = tpu.matmul %76, %78, %cst_78 {dimension_numbers = #tpu.dot_dimension_numbers<[1], [0], [0], [1], [0, 0, 1, 1], [], []>} : vector<16x35xbf16>, vector<35x39xbf16>, vector<16x39xf32> -> vector<16x39xf32>
    %80 = arith.addf %74, %79 : vector<16x39xf32>
    %c11 = arith.constant 11 : index
    %c0_79 = arith.constant 0 : index
    %c0_80 = arith.constant 0 : index
    %81 = vector.load %arg9[%c11, %c0_79, %c0_80] : memref<42x16x35xbf16, #tpu.memory_space<vmem>>, vector<1x16x35xbf16>
    %82 = vector.shape_cast %81 : vector<1x16x35xbf16> to vector<16x35xbf16>
    %c11_81 = arith.constant 11 : index
    %c0_82 = arith.constant 0 : index
    %c0_83 = arith.constant 0 : index
    %83 = vector.load %arg4[%c11_81, %c0_82, %c0_83] : memref<42x35x39xbf16, #tpu.memory_space<vmem>>, vector<1x35x39xbf16>
    %84 = vector.shape_cast %83 : vector<1x35x39xbf16> to vector<35x39xbf16>
    %cst_84 = arith.constant dense<0.000000e+00> : vector<16x39xf32>
    %85 = tpu.matmul %82, %84, %cst_84 {dimension_numbers = #tpu.dot_dimension_numbers<[1], [0], [0], [1], [0, 0, 1, 1], [], []>} : vector<16x35xbf16>, vector<35x39xbf16>, vector<16x39xf32> -> vector<16x39xf32>
    %86 = arith.addf %80, %85 : vector<16x39xf32>
    %c12 = arith.constant 12 : index
    %c0_85 = arith.constant 0 : index
    %c0_86 = arith.constant 0 : index
    %87 = vector.load %arg9[%c12, %c0_85, %c0_86] : memref<42x16x35xbf16, #tpu.memory_space<vmem>>, vector<1x16x35xbf16>
    %88 = vector.shape_cast %87 : vector<1x16x35xbf16> to vector<16x35xbf16>
    %c12_87 = arith.constant 12 : index
    %c0_88 = arith.constant 0 : index
    %c0_89 = arith.constant 0 : index
    %89 = vector.load %arg4[%c12_87, %c0_88, %c0_89] : memref<42x35x39xbf16, #tpu.memory_space<vmem>>, vector<1x35x39xbf16>
    %90 = vector.shape_cast %89 : vector<1x35x39xbf16> to vector<35x39xbf16>
    %cst_90 = arith.constant dense<0.000000e+00> : vector<16x39xf32>
    %91 = tpu.matmul %88, %90, %cst_90 {dimension_numbers = #tpu.dot_dimension_numbers<[1], [0], [0], [1], [0, 0, 1, 1], [], []>} : vector<16x35xbf16>, vector<35x39xbf16>, vector<16x39xf32> -> vector<16x39xf32>
    %92 = arith.addf %86, %91 : vector<16x39xf32>
    %c13 = arith.constant 13 : index
    %c0_91 = arith.constant 0 : index
    %c0_92 = arith.constant 0 : index
    %93 = vector.load %arg9[%c13, %c0_91, %c0_92] : memref<42x16x35xbf16, #tpu.memory_space<vmem>>, vector<1x16x35xbf16>
    %94 = vector.shape_cast %93 : vector<1x16x35xbf16> to vector<16x35xbf16>
    %c13_93 = arith.constant 13 : index
    %c0_94 = arith.constant 0 : index
    %c0_95 = arith.constant 0 : index
    %95 = vector.load %arg4[%c13_93, %c0_94, %c0_95] : memref<42x35x39xbf16, #tpu.memory_space<vmem>>, vector<1x35x39xbf16>
    %96 = vector.shape_cast %95 : vector<1x35x39xbf16> to vector<35x39xbf16>
    %cst_96 = arith.constant dense<0.000000e+00> : vector<16x39xf32>
    %97 = tpu.matmul %94, %96, %cst_96 {dimension_numbers = #tpu.dot_dimension_numbers<[1], [0], [0], [1], [0, 0, 1, 1], [], []>} : vector<16x35xbf16>, vector<35x39xbf16>, vector<16x39xf32> -> vector<16x39xf32>
    %98 = arith.addf %92, %97 : vector<16x39xf32>
    %c14 = arith.constant 14 : index
    %c0_97 = arith.constant 0 : index
    %c0_98 = arith.constant 0 : index
    %99 = vector.load %arg9[%c14, %c0_97, %c0_98] : memref<42x16x35xbf16, #tpu.memory_space<vmem>>, vector<1x16x35xbf16>
    %100 = vector.shape_cast %99 : vector<1x16x35xbf16> to vector<16x35xbf16>
    %c14_99 = arith.constant 14 : index
    %c0_100 = arith.constant 0 : index
    %c0_101 = arith.constant 0 : index
    %101 = vector.load %arg4[%c14_99, %c0_100, %c0_101] : memref<42x35x39xbf16, #tpu.memory_space<vmem>>, vector<1x35x39xbf16>
    %102 = vector.shape_cast %101 : vector<1x35x39xbf16> to vector<35x39xbf16>
    %cst_102 = arith.constant dense<0.000000e+00> : vector<16x39xf32>
    %103 = tpu.matmul %100, %102, %cst_102 {dimension_numbers = #tpu.dot_dimension_numbers<[1], [0], [0], [1], [0, 0, 1, 1], [], []>} : vector<16x35xbf16>, vector<35x39xbf16>, vector<16x39xf32> -> vector<16x39xf32>
    %104 = arith.addf %98, %103 : vector<16x39xf32>
    %c15 = arith.constant 15 : index
    %c0_103 = arith.constant 0 : index
    %c0_104 = arith.constant 0 : index
    %105 = vector.load %arg9[%c15, %c0_103, %c0_104] : memref<42x16x35xbf16, #tpu.memory_space<vmem>>, vector<1x16x35xbf16>
    %106 = vector.shape_cast %105 : vector<1x16x35xbf16> to vector<16x35xbf16>
    %c15_105 = arith.constant 15 : index
    %c0_106 = arith.constant 0 : index
    %c0_107 = arith.constant 0 : index
    %107 = vector.load %arg4[%c15_105, %c0_106, %c0_107] : memref<42x35x39xbf16, #tpu.memory_space<vmem>>, vector<1x35x39xbf16>
    %108 = vector.shape_cast %107 : vector<1x35x39xbf16> to vector<35x39xbf16>
    %cst_108 = arith.constant dense<0.000000e+00> : vector<16x39xf32>
    %109 = tpu.matmul %106, %108, %cst_108 {dimension_numbers = #tpu.dot_dimension_numbers<[1], [0], [0], [1], [0, 0, 1, 1], [], []>} : vector<16x35xbf16>, vector<35x39xbf16>, vector<16x39xf32> -> vector<16x39xf32>
    %110 = arith.addf %104, %109 : vector<16x39xf32>
    %c16 = arith.constant 16 : index
    %c0_109 = arith.constant 0 : index
    %c0_110 = arith.constant 0 : index
    %111 = vector.load %arg9[%c16, %c0_109, %c0_110] : memref<42x16x35xbf16, #tpu.memory_space<vmem>>, vector<1x16x35xbf16>
    %112 = vector.shape_cast %111 : vector<1x16x35xbf16> to vector<16x35xbf16>
    %c16_111 = arith.constant 16 : index
    %c0_112 = arith.constant 0 : index
    %c0_113 = arith.constant 0 : index
    %113 = vector.load %arg4[%c16_111, %c0_112, %c0_113] : memref<42x35x39xbf16, #tpu.memory_space<vmem>>, vector<1x35x39xbf16>
    %114 = vector.shape_cast %113 : vector<1x35x39xbf16> to vector<35x39xbf16>
    %cst_114 = arith.constant dense<0.000000e+00> : vector<16x39xf32>
    %115 = tpu.matmul %112, %114, %cst_114 {dimension_numbers = #tpu.dot_dimension_numbers<[1], [0], [0], [1], [0, 0, 1, 1], [], []>} : vector<16x35xbf16>, vector<35x39xbf16>, vector<16x39xf32> -> vector<16x39xf32>
    %116 = arith.addf %110, %115 : vector<16x39xf32>
    %c17 = arith.constant 17 : index
    %c0_115 = arith.constant 0 : index
    %c0_116 = arith.constant 0 : index
    %117 = vector.load %arg9[%c17, %c0_115, %c0_116] : memref<42x16x35xbf16, #tpu.memory_space<vmem>>, vector<1x16x35xbf16>
    %118 = vector.shape_cast %117 : vector<1x16x35xbf16> to vector<16x35xbf16>
    %c17_117 = arith.constant 17 : index
    %c0_118 = arith.constant 0 : index
    %c0_119 = arith.constant 0 : index
    %119 = vector.load %arg4[%c17_117, %c0_118, %c0_119] : memref<42x35x39xbf16, #tpu.memory_space<vmem>>, vector<1x35x39xbf16>
    %120 = vector.shape_cast %119 : vector<1x35x39xbf16> to vector<35x39xbf16>
    %cst_120 = arith.constant dense<0.000000e+00> : vector<16x39xf32>
    %121 = tpu.matmul %118, %120, %cst_120 {dimension_numbers = #tpu.dot_dimension_numbers<[1], [0], [0], [1], [0, 0, 1, 1], [], []>} : vector<16x35xbf16>, vector<35x39xbf16>, vector<16x39xf32> -> vector<16x39xf32>
    %122 = arith.addf %116, %121 : vector<16x39xf32>
    %c18 = arith.constant 18 : index
    %c0_121 = arith.constant 0 : index
    %c0_122 = arith.constant 0 : index
    %123 = vector.load %arg9[%c18, %c0_121, %c0_122] : memref<42x16x35xbf16, #tpu.memory_space<vmem>>, vector<1x16x35xbf16>
    %124 = vector.shape_cast %123 : vector<1x16x35xbf16> to vector<16x35xbf16>
    %c18_123 = arith.constant 18 : index
    %c0_124 = arith.constant 0 : index
    %c0_125 = arith.constant 0 : index
    %125 = vector.load %arg4[%c18_123, %c0_124, %c0_125] : memref<42x35x39xbf16, #tpu.memory_space<vmem>>, vector<1x35x39xbf16>
    %126 = vector.shape_cast %125 : vector<1x35x39xbf16> to vector<35x39xbf16>
    %cst_126 = arith.constant dense<0.000000e+00> : vector<16x39xf32>
    %127 = tpu.matmul %124, %126, %cst_126 {dimension_numbers = #tpu.dot_dimension_numbers<[1], [0], [0], [1], [0, 0, 1, 1], [], []>} : vector<16x35xbf16>, vector<35x39xbf16>, vector<16x39xf32> -> vector<16x39xf32>
    %128 = arith.addf %122, %127 : vector<16x39xf32>
    %c19 = arith.constant 19 : index
    %c0_127 = arith.constant 0 : index
    %c0_128 = arith.constant 0 : index
    %129 = vector.load %arg9[%c19, %c0_127, %c0_128] : memref<42x16x35xbf16, #tpu.memory_space<vmem>>, vector<1x16x35xbf16>
    %130 = vector.shape_cast %129 : vector<1x16x35xbf16> to vector<16x35xbf16>
    %c19_129 = arith.constant 19 : index
    %c0_130 = arith.constant 0 : index
    %c0_131 = arith.constant 0 : index
    %131 = vector.load %arg4[%c19_129, %c0_130, %c0_131] : memref<42x35x39xbf16, #tpu.memory_space<vmem>>, vector<1x35x39xbf16>
    %132 = vector.shape_cast %131 : vector<1x35x39xbf16> to vector<35x39xbf16>
    %cst_132 = arith.constant dense<0.000000e+00> : vector<16x39xf32>
    %133 = tpu.matmul %130, %132, %cst_132 {dimension_numbers = #tpu.dot_dimension_numbers<[1], [0], [0], [1], [0, 0, 1, 1], [], []>} : vector<16x35xbf16>, vector<35x39xbf16>, vector<16x39xf32> -> vector<16x39xf32>
    %134 = arith.addf %128, %133 : vector<16x39xf32>
    %c20 = arith.constant 20 : index
    %c0_133 = arith.constant 0 : index
    %c0_134 = arith.constant 0 : index
    %135 = vector.load %arg9[%c20, %c0_133, %c0_134] : memref<42x16x35xbf16, #tpu.memory_space<vmem>>, vector<1x16x35xbf16>
    %136 = vector.shape_cast %135 : vector<1x16x35xbf16> to vector<16x35xbf16>
    %c20_135 = arith.constant 20 : index
    %c0_136 = arith.constant 0 : index
    %c0_137 = arith.constant 0 : index
    %137 = vector.load %arg4[%c20_135, %c0_136, %c0_137] : memref<42x35x39xbf16, #tpu.memory_space<vmem>>, vector<1x35x39xbf16>
    %138 = vector.shape_cast %137 : vector<1x35x39xbf16> to vector<35x39xbf16>
    %cst_138 = arith.constant dense<0.000000e+00> : vector<16x39xf32>
    %139 = tpu.matmul %136, %138, %cst_138 {dimension_numbers = #tpu.dot_dimension_numbers<[1], [0], [0], [1], [0, 0, 1, 1], [], []>} : vector<16x35xbf16>, vector<35x39xbf16>, vector<16x39xf32> -> vector<16x39xf32>
    %140 = arith.addf %134, %139 : vector<16x39xf32>
    %c21 = arith.constant 21 : index
    %c0_139 = arith.constant 0 : index
    %c0_140 = arith.constant 0 : index
    %141 = vector.load %arg9[%c21, %c0_139, %c0_140] : memref<42x16x35xbf16, #tpu.memory_space<vmem>>, vector<1x16x35xbf16>
    %142 = vector.shape_cast %141 : vector<1x16x35xbf16> to vector<16x35xbf16>
    %c21_141 = arith.constant 21 : index
    %c0_142 = arith.constant 0 : index
    %c0_143 = arith.constant 0 : index
    %143 = vector.load %arg4[%c21_141, %c0_142, %c0_143] : memref<42x35x39xbf16, #tpu.memory_space<vmem>>, vector<1x35x39xbf16>
    %144 = vector.shape_cast %143 : vector<1x35x39xbf16> to vector<35x39xbf16>
    %cst_144 = arith.constant dense<0.000000e+00> : vector<16x39xf32>
    %145 = tpu.matmul %142, %144, %cst_144 {dimension_numbers = #tpu.dot_dimension_numbers<[1], [0], [0], [1], [0, 0, 1, 1], [], []>} : vector<16x35xbf16>, vector<35x39xbf16>, vector<16x39xf32> -> vector<16x39xf32>
    %146 = arith.addf %140, %145 : vector<16x39xf32>
    %c22 = arith.constant 22 : index
    %c0_145 = arith.constant 0 : index
    %c0_146 = arith.constant 0 : index
    %147 = vector.load %arg9[%c22, %c0_145, %c0_146] : memref<42x16x35xbf16, #tpu.memory_space<vmem>>, vector<1x16x35xbf16>
    %148 = vector.shape_cast %147 : vector<1x16x35xbf16> to vector<16x35xbf16>
    %c22_147 = arith.constant 22 : index
    %c0_148 = arith.constant 0 : index
    %c0_149 = arith.constant 0 : index
    %149 = vector.load %arg4[%c22_147, %c0_148, %c0_149] : memref<42x35x39xbf16, #tpu.memory_space<vmem>>, vector<1x35x39xbf16>
    %150 = vector.shape_cast %149 : vector<1x35x39xbf16> to vector<35x39xbf16>
    %cst_150 = arith.constant dense<0.000000e+00> : vector<16x39xf32>
    %151 = tpu.matmul %148, %150, %cst_150 {dimension_numbers = #tpu.dot_dimension_numbers<[1], [0], [0], [1], [0, 0, 1, 1], [], []>} : vector<16x35xbf16>, vector<35x39xbf16>, vector<16x39xf32> -> vector<16x39xf32>
    %152 = arith.addf %146, %151 : vector<16x39xf32>
    %c23 = arith.constant 23 : index
    %c0_151 = arith.constant 0 : index
    %c0_152 = arith.constant 0 : index
    %153 = vector.load %arg9[%c23, %c0_151, %c0_152] : memref<42x16x35xbf16, #tpu.memory_space<vmem>>, vector<1x16x35xbf16>
    %154 = vector.shape_cast %153 : vector<1x16x35xbf16> to vector<16x35xbf16>
    %c23_153 = arith.constant 23 : index
    %c0_154 = arith.constant 0 : index
    %c0_155 = arith.constant 0 : index
    %155 = vector.load %arg4[%c23_153, %c0_154, %c0_155] : memref<42x35x39xbf16, #tpu.memory_space<vmem>>, vector<1x35x39xbf16>
    %156 = vector.shape_cast %155 : vector<1x35x39xbf16> to vector<35x39xbf16>
    %cst_156 = arith.constant dense<0.000000e+00> : vector<16x39xf32>
    %157 = tpu.matmul %154, %156, %cst_156 {dimension_numbers = #tpu.dot_dimension_numbers<[1], [0], [0], [1], [0, 0, 1, 1], [], []>} : vector<16x35xbf16>, vector<35x39xbf16>, vector<16x39xf32> -> vector<16x39xf32>
    %158 = arith.addf %152, %157 : vector<16x39xf32>
    %c24 = arith.constant 24 : index
    %c0_157 = arith.constant 0 : index
    %c0_158 = arith.constant 0 : index
    %159 = vector.load %arg9[%c24, %c0_157, %c0_158] : memref<42x16x35xbf16, #tpu.memory_space<vmem>>, vector<1x16x35xbf16>
    %160 = vector.shape_cast %159 : vector<1x16x35xbf16> to vector<16x35xbf16>
    %c24_159 = arith.constant 24 : index
    %c0_160 = arith.constant 0 : index
    %c0_161 = arith.constant 0 : index
    %161 = vector.load %arg4[%c24_159, %c0_160, %c0_161] : memref<42x35x39xbf16, #tpu.memory_space<vmem>>, vector<1x35x39xbf16>
    %162 = vector.shape_cast %161 : vector<1x35x39xbf16> to vector<35x39xbf16>
    %cst_162 = arith.constant dense<0.000000e+00> : vector<16x39xf32>
    %163 = tpu.matmul %160, %162, %cst_162 {dimension_numbers = #tpu.dot_dimension_numbers<[1], [0], [0], [1], [0, 0, 1, 1], [], []>} : vector<16x35xbf16>, vector<35x39xbf16>, vector<16x39xf32> -> vector<16x39xf32>
    %164 = arith.addf %158, %163 : vector<16x39xf32>
    %c25 = arith.constant 25 : index
    %c0_163 = arith.constant 0 : index
    %c0_164 = arith.constant 0 : index
    %165 = vector.load %arg9[%c25, %c0_163, %c0_164] : memref<42x16x35xbf16, #tpu.memory_space<vmem>>, vector<1x16x35xbf16>
    %166 = vector.shape_cast %165 : vector<1x16x35xbf16> to vector<16x35xbf16>
    %c25_165 = arith.constant 25 : index
    %c0_166 = arith.constant 0 : index
    %c0_167 = arith.constant 0 : index
    %167 = vector.load %arg4[%c25_165, %c0_166, %c0_167] : memref<42x35x39xbf16, #tpu.memory_space<vmem>>, vector<1x35x39xbf16>
    %168 = vector.shape_cast %167 : vector<1x35x39xbf16> to vector<35x39xbf16>
    %cst_168 = arith.constant dense<0.000000e+00> : vector<16x39xf32>
    %169 = tpu.matmul %166, %168, %cst_168 {dimension_numbers = #tpu.dot_dimension_numbers<[1], [0], [0], [1], [0, 0, 1, 1], [], []>} : vector<16x35xbf16>, vector<35x39xbf16>, vector<16x39xf32> -> vector<16x39xf32>
    %170 = arith.addf %164, %169 : vector<16x39xf32>
    %c26 = arith.constant 26 : index
    %c0_169 = arith.constant 0 : index
    %c0_170 = arith.constant 0 : index
    %171 = vector.load %arg9[%c26, %c0_169, %c0_170] : memref<42x16x35xbf16, #tpu.memory_space<vmem>>, vector<1x16x35xbf16>
    %172 = vector.shape_cast %171 : vector<1x16x35xbf16> to vector<16x35xbf16>
    %c26_171 = arith.constant 26 : index
    %c0_172 = arith.constant 0 : index
    %c0_173 = arith.constant 0 : index
    %173 = vector.load %arg4[%c26_171, %c0_172, %c0_173] : memref<42x35x39xbf16, #tpu.memory_space<vmem>>, vector<1x35x39xbf16>
    %174 = vector.shape_cast %173 : vector<1x35x39xbf16> to vector<35x39xbf16>
    %cst_174 = arith.constant dense<0.000000e+00> : vector<16x39xf32>
    %175 = tpu.matmul %172, %174, %cst_174 {dimension_numbers = #tpu.dot_dimension_numbers<[1], [0], [0], [1], [0, 0, 1, 1], [], []>} : vector<16x35xbf16>, vector<35x39xbf16>, vector<16x39xf32> -> vector<16x39xf32>
    %176 = arith.addf %170, %175 : vector<16x39xf32>
    %c27 = arith.constant 27 : index
    %c0_175 = arith.constant 0 : index
    %c0_176 = arith.constant 0 : index
    %177 = vector.load %arg9[%c27, %c0_175, %c0_176] : memref<42x16x35xbf16, #tpu.memory_space<vmem>>, vector<1x16x35xbf16>
    %178 = vector.shape_cast %177 : vector<1x16x35xbf16> to vector<16x35xbf16>
    %c27_177 = arith.constant 27 : index
    %c0_178 = arith.constant 0 : index
    %c0_179 = arith.constant 0 : index
    %179 = vector.load %arg4[%c27_177, %c0_178, %c0_179] : memref<42x35x39xbf16, #tpu.memory_space<vmem>>, vector<1x35x39xbf16>
    %180 = vector.shape_cast %179 : vector<1x35x39xbf16> to vector<35x39xbf16>
    %cst_180 = arith.constant dense<0.000000e+00> : vector<16x39xf32>
    %181 = tpu.matmul %178, %180, %cst_180 {dimension_numbers = #tpu.dot_dimension_numbers<[1], [0], [0], [1], [0, 0, 1, 1], [], []>} : vector<16x35xbf16>, vector<35x39xbf16>, vector<16x39xf32> -> vector<16x39xf32>
    %182 = arith.addf %176, %181 : vector<16x39xf32>
    %c28 = arith.constant 28 : index
    %c0_181 = arith.constant 0 : index
    %c0_182 = arith.constant 0 : index
    %183 = vector.load %arg9[%c28, %c0_181, %c0_182] : memref<42x16x35xbf16, #tpu.memory_space<vmem>>, vector<1x16x35xbf16>
    %184 = vector.shape_cast %183 : vector<1x16x35xbf16> to vector<16x35xbf16>
    %c28_183 = arith.constant 28 : index
    %c0_184 = arith.constant 0 : index
    %c0_185 = arith.constant 0 : index
    %185 = vector.load %arg4[%c28_183, %c0_184, %c0_185] : memref<42x35x39xbf16, #tpu.memory_space<vmem>>, vector<1x35x39xbf16>
    %186 = vector.shape_cast %185 : vector<1x35x39xbf16> to vector<35x39xbf16>
    %cst_186 = arith.constant dense<0.000000e+00> : vector<16x39xf32>
    %187 = tpu.matmul %184, %186, %cst_186 {dimension_numbers = #tpu.dot_dimension_numbers<[1], [0], [0], [1], [0, 0, 1, 1], [], []>} : vector<16x35xbf16>, vector<35x39xbf16>, vector<16x39xf32> -> vector<16x39xf32>
    %188 = arith.addf %182, %187 : vector<16x39xf32>
    %c29 = arith.constant 29 : index
    %c0_187 = arith.constant 0 : index
    %c0_188 = arith.constant 0 : index
    %189 = vector.load %arg9[%c29, %c0_187, %c0_188] : memref<42x16x35xbf16, #tpu.memory_space<vmem>>, vector<1x16x35xbf16>
    %190 = vector.shape_cast %189 : vector<1x16x35xbf16> to vector<16x35xbf16>
    %c29_189 = arith.constant 29 : index
    %c0_190 = arith.constant 0 : index
    %c0_191 = arith.constant 0 : index
    %191 = vector.load %arg4[%c29_189, %c0_190, %c0_191] : memref<42x35x39xbf16, #tpu.memory_space<vmem>>, vector<1x35x39xbf16>
    %192 = vector.shape_cast %191 : vector<1x35x39xbf16> to vector<35x39xbf16>
    %cst_192 = arith.constant dense<0.000000e+00> : vector<16x39xf32>
    %193 = tpu.matmul %190, %192, %cst_192 {dimension_numbers = #tpu.dot_dimension_numbers<[1], [0], [0], [1], [0, 0, 1, 1], [], []>} : vector<16x35xbf16>, vector<35x39xbf16>, vector<16x39xf32> -> vector<16x39xf32>
    %194 = arith.addf %188, %193 : vector<16x39xf32>
    %c30 = arith.constant 30 : index
    %c0_193 = arith.constant 0 : index
    %c0_194 = arith.constant 0 : index
    %195 = vector.load %arg9[%c30, %c0_193, %c0_194] : memref<42x16x35xbf16, #tpu.memory_space<vmem>>, vector<1x16x35xbf16>
    %196 = vector.shape_cast %195 : vector<1x16x35xbf16> to vector<16x35xbf16>
    %c30_195 = arith.constant 30 : index
    %c0_196 = arith.constant 0 : index
    %c0_197 = arith.constant 0 : index
    %197 = vector.load %arg4[%c30_195, %c0_196, %c0_197] : memref<42x35x39xbf16, #tpu.memory_space<vmem>>, vector<1x35x39xbf16>
    %198 = vector.shape_cast %197 : vector<1x35x39xbf16> to vector<35x39xbf16>
    %cst_198 = arith.constant dense<0.000000e+00> : vector<16x39xf32>
    %199 = tpu.matmul %196, %198, %cst_198 {dimension_numbers = #tpu.dot_dimension_numbers<[1], [0], [0], [1], [0, 0, 1, 1], [], []>} : vector<16x35xbf16>, vector<35x39xbf16>, vector<16x39xf32> -> vector<16x39xf32>
    %200 = arith.addf %194, %199 : vector<16x39xf32>
    %c31 = arith.constant 31 : index
    %c0_199 = arith.constant 0 : index
    %c0_200 = arith.constant 0 : index
    %201 = vector.load %arg9[%c31, %c0_199, %c0_200] : memref<42x16x35xbf16, #tpu.memory_space<vmem>>, vector<1x16x35xbf16>
    %202 = vector.shape_cast %201 : vector<1x16x35xbf16> to vector<16x35xbf16>
    %c31_201 = arith.constant 31 : index
    %c0_202 = arith.constant 0 : index
    %c0_203 = arith.constant 0 : index
    %203 = vector.load %arg4[%c31_201, %c0_202, %c0_203] : memref<42x35x39xbf16, #tpu.memory_space<vmem>>, vector<1x35x39xbf16>
    %204 = vector.shape_cast %203 : vector<1x35x39xbf16> to vector<35x39xbf16>
    %cst_204 = arith.constant dense<0.000000e+00> : vector<16x39xf32>
    %205 = tpu.matmul %202, %204, %cst_204 {dimension_numbers = #tpu.dot_dimension_numbers<[1], [0], [0], [1], [0, 0, 1, 1], [], []>} : vector<16x35xbf16>, vector<35x39xbf16>, vector<16x39xf32> -> vector<16x39xf32>
    %206 = arith.addf %200, %205 : vector<16x39xf32>
    %c32 = arith.constant 32 : index
    %c0_205 = arith.constant 0 : index
    %c0_206 = arith.constant 0 : index
    %207 = vector.load %arg9[%c32, %c0_205, %c0_206] : memref<42x16x35xbf16, #tpu.memory_space<vmem>>, vector<1x16x35xbf16>
    %208 = vector.shape_cast %207 : vector<1x16x35xbf16> to vector<16x35xbf16>
    %c32_207 = arith.constant 32 : index
    %c0_208 = arith.constant 0 : index
    %c0_209 = arith.constant 0 : index
    %209 = vector.load %arg4[%c32_207, %c0_208, %c0_209] : memref<42x35x39xbf16, #tpu.memory_space<vmem>>, vector<1x35x39xbf16>
    %210 = vector.shape_cast %209 : vector<1x35x39xbf16> to vector<35x39xbf16>
    %cst_210 = arith.constant dense<0.000000e+00> : vector<16x39xf32>
    %211 = tpu.matmul %208, %210, %cst_210 {dimension_numbers = #tpu.dot_dimension_numbers<[1], [0], [0], [1], [0, 0, 1, 1], [], []>} : vector<16x35xbf16>, vector<35x39xbf16>, vector<16x39xf32> -> vector<16x39xf32>
    %212 = arith.addf %206, %211 : vector<16x39xf32>
    %c33 = arith.constant 33 : index
    %c0_211 = arith.constant 0 : index
    %c0_212 = arith.constant 0 : index
    %213 = vector.load %arg9[%c33, %c0_211, %c0_212] : memref<42x16x35xbf16, #tpu.memory_space<vmem>>, vector<1x16x35xbf16>
    %214 = vector.shape_cast %213 : vector<1x16x35xbf16> to vector<16x35xbf16>
    %c33_213 = arith.constant 33 : index
    %c0_214 = arith.constant 0 : index
    %c0_215 = arith.constant 0 : index
    %215 = vector.load %arg4[%c33_213, %c0_214, %c0_215] : memref<42x35x39xbf16, #tpu.memory_space<vmem>>, vector<1x35x39xbf16>
    %216 = vector.shape_cast %215 : vector<1x35x39xbf16> to vector<35x39xbf16>
    %cst_216 = arith.constant dense<0.000000e+00> : vector<16x39xf32>
    %217 = tpu.matmul %214, %216, %cst_216 {dimension_numbers = #tpu.dot_dimension_numbers<[1], [0], [0], [1], [0, 0, 1, 1], [], []>} : vector<16x35xbf16>, vector<35x39xbf16>, vector<16x39xf32> -> vector<16x39xf32>
    %218 = arith.addf %212, %217 : vector<16x39xf32>
    %c34 = arith.constant 34 : index
    %c0_217 = arith.constant 0 : index
    %c0_218 = arith.constant 0 : index
    %219 = vector.load %arg9[%c34, %c0_217, %c0_218] : memref<42x16x35xbf16, #tpu.memory_space<vmem>>, vector<1x16x35xbf16>
    %220 = vector.shape_cast %219 : vector<1x16x35xbf16> to vector<16x35xbf16>
    %c34_219 = arith.constant 34 : index
    %c0_220 = arith.constant 0 : index
    %c0_221 = arith.constant 0 : index
    %221 = vector.load %arg4[%c34_219, %c0_220, %c0_221] : memref<42x35x39xbf16, #tpu.memory_space<vmem>>, vector<1x35x39xbf16>
    %222 = vector.shape_cast %221 : vector<1x35x39xbf16> to vector<35x39xbf16>
    %cst_222 = arith.constant dense<0.000000e+00> : vector<16x39xf32>
    %223 = tpu.matmul %220, %222, %cst_222 {dimension_numbers = #tpu.dot_dimension_numbers<[1], [0], [0], [1], [0, 0, 1, 1], [], []>} : vector<16x35xbf16>, vector<35x39xbf16>, vector<16x39xf32> -> vector<16x39xf32>
    %224 = arith.addf %218, %223 : vector<16x39xf32>
    %c35 = arith.constant 35 : index
    %c0_223 = arith.constant 0 : index
    %c0_224 = arith.constant 0 : index
    %225 = vector.load %arg9[%c35, %c0_223, %c0_224] : memref<42x16x35xbf16, #tpu.memory_space<vmem>>, vector<1x16x35xbf16>
    %226 = vector.shape_cast %225 : vector<1x16x35xbf16> to vector<16x35xbf16>
    %c35_225 = arith.constant 35 : index
    %c0_226 = arith.constant 0 : index
    %c0_227 = arith.constant 0 : index
    %227 = vector.load %arg4[%c35_225, %c0_226, %c0_227] : memref<42x35x39xbf16, #tpu.memory_space<vmem>>, vector<1x35x39xbf16>
    %228 = vector.shape_cast %227 : vector<1x35x39xbf16> to vector<35x39xbf16>
    %cst_228 = arith.constant dense<0.000000e+00> : vector<16x39xf32>
    %229 = tpu.matmul %226, %228, %cst_228 {dimension_numbers = #tpu.dot_dimension_numbers<[1], [0], [0], [1], [0, 0, 1, 1], [], []>} : vector<16x35xbf16>, vector<35x39xbf16>, vector<16x39xf32> -> vector<16x39xf32>
    %230 = arith.addf %224, %229 : vector<16x39xf32>
    %c36 = arith.constant 36 : index
    %c0_229 = arith.constant 0 : index
    %c0_230 = arith.constant 0 : index
    %231 = vector.load %arg9[%c36, %c0_229, %c0_230] : memref<42x16x35xbf16, #tpu.memory_space<vmem>>, vector<1x16x35xbf16>
    %232 = vector.shape_cast %231 : vector<1x16x35xbf16> to vector<16x35xbf16>
    %c36_231 = arith.constant 36 : index
    %c0_232 = arith.constant 0 : index
    %c0_233 = arith.constant 0 : index
    %233 = vector.load %arg4[%c36_231, %c0_232, %c0_233] : memref<42x35x39xbf16, #tpu.memory_space<vmem>>, vector<1x35x39xbf16>
    %234 = vector.shape_cast %233 : vector<1x35x39xbf16> to vector<35x39xbf16>
    %cst_234 = arith.constant dense<0.000000e+00> : vector<16x39xf32>
    %235 = tpu.matmul %232, %234, %cst_234 {dimension_numbers = #tpu.dot_dimension_numbers<[1], [0], [0], [1], [0, 0, 1, 1], [], []>} : vector<16x35xbf16>, vector<35x39xbf16>, vector<16x39xf32> -> vector<16x39xf32>
    %236 = arith.addf %230, %235 : vector<16x39xf32>
    %c37 = arith.constant 37 : index
    %c0_235 = arith.constant 0 : index
    %c0_236 = arith.constant 0 : index
    %237 = vector.load %arg9[%c37, %c0_235, %c0_236] : memref<42x16x35xbf16, #tpu.memory_space<vmem>>, vector<1x16x35xbf16>
    %238 = vector.shape_cast %237 : vector<1x16x35xbf16> to vector<16x35xbf16>
    %c37_237 = arith.constant 37 : index
    %c0_238 = arith.constant 0 : index
    %c0_239 = arith.constant 0 : index
    %239 = vector.load %arg4[%c37_237, %c0_238, %c0_239] : memref<42x35x39xbf16, #tpu.memory_space<vmem>>, vector<1x35x39xbf16>
    %240 = vector.shape_cast %239 : vector<1x35x39xbf16> to vector<35x39xbf16>
    %cst_240 = arith.constant dense<0.000000e+00> : vector<16x39xf32>
    %241 = tpu.matmul %238, %240, %cst_240 {dimension_numbers = #tpu.dot_dimension_numbers<[1], [0], [0], [1], [0, 0, 1, 1], [], []>} : vector<16x35xbf16>, vector<35x39xbf16>, vector<16x39xf32> -> vector<16x39xf32>
    %242 = arith.addf %236, %241 : vector<16x39xf32>
    %c38 = arith.constant 38 : index
    %c0_241 = arith.constant 0 : index
    %c0_242 = arith.constant 0 : index
    %243 = vector.load %arg9[%c38, %c0_241, %c0_242] : memref<42x16x35xbf16, #tpu.memory_space<vmem>>, vector<1x16x35xbf16>
    %244 = vector.shape_cast %243 : vector<1x16x35xbf16> to vector<16x35xbf16>
    %c38_243 = arith.constant 38 : index
    %c0_244 = arith.constant 0 : index
    %c0_245 = arith.constant 0 : index
    %245 = vector.load %arg4[%c38_243, %c0_244, %c0_245] : memref<42x35x39xbf16, #tpu.memory_space<vmem>>, vector<1x35x39xbf16>
    %246 = vector.shape_cast %245 : vector<1x35x39xbf16> to vector<35x39xbf16>
    %cst_246 = arith.constant dense<0.000000e+00> : vector<16x39xf32>
    %247 = tpu.matmul %244, %246, %cst_246 {dimension_numbers = #tpu.dot_dimension_numbers<[1], [0], [0], [1], [0, 0, 1, 1], [], []>} : vector<16x35xbf16>, vector<35x39xbf16>, vector<16x39xf32> -> vector<16x39xf32>
    %248 = arith.addf %242, %247 : vector<16x39xf32>
    %c39 = arith.constant 39 : index
    %c0_247 = arith.constant 0 : index
    %c0_248 = arith.constant 0 : index
    %249 = vector.load %arg9[%c39, %c0_247, %c0_248] : memref<42x16x35xbf16, #tpu.memory_space<vmem>>, vector<1x16x35xbf16>
    %250 = vector.shape_cast %249 : vector<1x16x35xbf16> to vector<16x35xbf16>
    %c39_249 = arith.constant 39 : index
    %c0_250 = arith.constant 0 : index
    %c0_251 = arith.constant 0 : index
    %251 = vector.load %arg4[%c39_249, %c0_250, %c0_251] : memref<42x35x39xbf16, #tpu.memory_space<vmem>>, vector<1x35x39xbf16>
    %252 = vector.shape_cast %251 : vector<1x35x39xbf16> to vector<35x39xbf16>
    %cst_252 = arith.constant dense<0.000000e+00> : vector<16x39xf32>
    %253 = tpu.matmul %250, %252, %cst_252 {dimension_numbers = #tpu.dot_dimension_numbers<[1], [0], [0], [1], [0, 0, 1, 1], [], []>} : vector<16x35xbf16>, vector<35x39xbf16>, vector<16x39xf32> -> vector<16x39xf32>
    %254 = arith.addf %248, %253 : vector<16x39xf32>
    %c40 = arith.constant 40 : index
    %c0_253 = arith.constant 0 : index
    %c0_254 = arith.constant 0 : index
    %255 = vector.load %arg9[%c40, %c0_253, %c0_254] : memref<42x16x35xbf16, #tpu.memory_space<vmem>>, vector<1x16x35xbf16>
    %256 = vector.shape_cast %255 : vector<1x16x35xbf16> to vector<16x35xbf16>
    %c40_255 = arith.constant 40 : index
    %c0_256 = arith.constant 0 : index
    %c0_257 = arith.constant 0 : index
    %257 = vector.load %arg4[%c40_255, %c0_256, %c0_257] : memref<42x35x39xbf16, #tpu.memory_space<vmem>>, vector<1x35x39xbf16>
    %258 = vector.shape_cast %257 : vector<1x35x39xbf16> to vector<35x39xbf16>
    %cst_258 = arith.constant dense<0.000000e+00> : vector<16x39xf32>
    %259 = tpu.matmul %256, %258, %cst_258 {dimension_numbers = #tpu.dot_dimension_numbers<[1], [0], [0], [1], [0, 0, 1, 1], [], []>} : vector<16x35xbf16>, vector<35x39xbf16>, vector<16x39xf32> -> vector<16x39xf32>
    %260 = arith.addf %254, %259 : vector<16x39xf32>
    %c41 = arith.constant 41 : index
    %c0_259 = arith.constant 0 : index
    %c0_260 = arith.constant 0 : index
    %261 = vector.load %arg9[%c41, %c0_259, %c0_260] : memref<42x16x35xbf16, #tpu.memory_space<vmem>>, vector<1x16x35xbf16>
    %262 = vector.shape_cast %261 : vector<1x16x35xbf16> to vector<16x35xbf16>
    %c41_261 = arith.constant 41 : index
    %c0_262 = arith.constant 0 : index
    %c0_263 = arith.constant 0 : index
    %263 = vector.load %arg4[%c41_261, %c0_262, %c0_263] : memref<42x35x39xbf16, #tpu.memory_space<vmem>>, vector<1x35x39xbf16>
    %264 = vector.shape_cast %263 : vector<1x35x39xbf16> to vector<35x39xbf16>
    %cst_264 = arith.constant dense<0.000000e+00> : vector<16x39xf32>
    %265 = tpu.matmul %262, %264, %cst_264 {dimension_numbers = #tpu.dot_dimension_numbers<[1], [0], [0], [1], [0, 0, 1, 1], [], []>} : vector<16x35xbf16>, vector<35x39xbf16>, vector<16x39xf32> -> vector<16x39xf32>
    %266 = arith.addf %260, %265 : vector<16x39xf32>
    %267 = vector.extract_strided_slice %266 {offsets = [0, 0], sizes = [16, 32], strides = [1, 1]} : vector<16x39xf32> to vector<16x32xf32>
    %cst_265 = arith.constant 0.000000e+00 : f32
    %268 = vector.broadcast %cst_265 : f32 to vector<16x32xf32>
    %269 = arith.maximumf %267, %268 : vector<16x32xf32>
    %c0_266 = arith.constant 0 : index
    %c0_267 = arith.constant 0 : index
    %270 = vector.load %arg6[%c0_266, %c0_267] : memref<1x32xf32, #tpu.memory_space<vmem>>, vector<1x32xf32>
    %271 = vector.broadcast %270 : vector<1x32xf32> to vector<16x32xf32>
    %272 = arith.mulf %269, %271 : vector<16x32xf32>
    %cst_268 = arith.constant dense<0.000000e+00> : vector<16xf32>
    %273 = vector.multi_reduction <add>, %272, %cst_268 [1] : vector<16x32xf32> to vector<16xf32>
    %274 = vector.shape_cast %273 : vector<16xf32> to vector<16x1xf32>
    %c0_269 = arith.constant 0 : index
    %c0_270 = arith.constant 0 : index
    %275 = vector.load %arg7[%c0_269, %c0_270] : memref<1x1xf32, #tpu.memory_space<vmem>>, vector<1x1xf32>
    %276 = vector.broadcast %275 : vector<1x1xf32> to vector<16x1xf32>
    %277 = arith.addf %274, %276 : vector<16x1xf32>
    %278 = math.tanh %277 : vector<16x1xf32>
    %279 = vector.extract_strided_slice %266 {offsets = [0, 32], sizes = [16, 7], strides = [1, 1]} : vector<16x39xf32> to vector<16x7xf32>
    %cst_271 = arith.constant dense<0xFF800000> : vector<16xf32>
    %280 = vector.multi_reduction <maximumf>, %279, %cst_271 [1] : vector<16x7xf32> to vector<16xf32>
    %281 = vector.shape_cast %280 : vector<16xf32> to vector<16x1xf32>
    %282 = vector.broadcast %281 : vector<16x1xf32> to vector<16x7xf32>
    %283 = arith.subf %279, %282 : vector<16x7xf32>
    %284 = math.exp %283 : vector<16x7xf32>
    %cst_272 = arith.constant dense<0.000000e+00> : vector<16xf32>
    %285 = vector.multi_reduction <add>, %284, %cst_272 [1] : vector<16x7xf32> to vector<16xf32>
    %286 = vector.shape_cast %285 : vector<16xf32> to vector<16x1xf32>
    %287 = vector.broadcast %286 : vector<16x1xf32> to vector<16x7xf32>
    %288 = arith.divf %284, %287 : vector<16x7xf32>
    %c0_273 = arith.constant 0 : index
    %c0_274 = arith.constant 0 : index
    %289 = vector.load %arg8[%c0_273, %c0_274] : memref<16x8xf32, #tpu.memory_space<vmem>>, vector<16x7xf32>
    tpu.vector_store %arg8[%c0_273, %c0_274], %288 {strides = array<i32>} : memref<16x8xf32, #tpu.memory_space<vmem>>, vector<16x7xf32>,
    %c0_275 = arith.constant 0 : index
    %c7_276 = arith.constant 7 : index
    %290 = vector.load %arg8[%c0_275, %c7_276] : memref<16x8xf32, #tpu.memory_space<vmem>>, vector<16x1xf32>
    tpu.vector_store %arg8[%c0_275, %c7_276], %278 {strides = array<i32>} : memref<16x8xf32, #tpu.memory_space<vmem>>, vector<16x1xf32>,
    return
  }
  func.func @transform_0(%arg0: i32) -> (i32, i32, i32) {
    %c0_i32 = arith.constant 0 : i32
    %c0_i32_0 = arith.constant 0 : i32
    %c0_i32_1 = arith.constant 0 : i32
    return %c0_i32, %arg0, %c0_i32_0 : i32, i32, i32
  }
  func.func @transform_1(%arg0: i32) -> (i32, i32) {
    %c0_i32 = arith.constant 0 : i32
    %c0_i32_0 = arith.constant 0 : i32
    %c0_i32_1 = arith.constant 0 : i32
    return %c0_i32, %c0_i32_0 : i32, i32
  }
  func.func @transform_2(%arg0: i32) -> (i32, i32) {
    %c0_i32 = arith.constant 0 : i32
    %c0_i32_0 = arith.constant 0 : i32
    %c0_i32_1 = arith.constant 0 : i32
    return %c0_i32, %c0_i32_0 : i32, i32
  }
  func.func @transform_3(%arg0: i32) -> (i32, i32, i32) {
    %c0_i32 = arith.constant 0 : i32
    %c0_i32_0 = arith.constant 0 : i32
    %c0_i32_1 = arith.constant 0 : i32
    %c0_i32_2 = arith.constant 0 : i32
    return %c0_i32, %c0_i32_0, %c0_i32_1 : i32, i32, i32
  }
  func.func @transform_4(%arg0: i32) -> (i32, i32) {
    %c0_i32 = arith.constant 0 : i32
    %c0_i32_0 = arith.constant 0 : i32
    %c0_i32_1 = arith.constant 0 : i32
    return %c0_i32, %c0_i32_0 : i32, i32
  }
  func.func @transform_5(%arg0: i32) -> (i32, i32) {
    %c0_i32 = arith.constant 0 : i32
    %c0_i32_0 = arith.constant 0 : i32
    %c0_i32_1 = arith.constant 0 : i32
    return %c0_i32, %c0_i32_0 : i32, i32
  }
  func.func @transform_6(%arg0: i32) -> (i32, i32) {
    %c0_i32 = arith.constant 0 : i32
    %c0_i32_0 = arith.constant 0 : i32
    %c0_i32_1 = arith.constant 0 : i32
    return %c0_i32, %c0_i32_0 : i32, i32
  }
  func.func @transform_7(%arg0: i32) -> (i32, i32) {
    %c0_i32 = arith.constant 0 : i32
    %c0_i32_0 = arith.constant 0 : i32
    return %arg0, %c0_i32 : i32, i32
  }
}

</mosaic_0001>

<bundles_post_ra>
// kernel: output_block_forward.2
= control target key start
LH: loop header
LB: loop body
LE: loop exit
PB: predicated region body
PF: predicated region fallthrough
CT: control target
= control target key end

     0   :  { %s6568_s0 = inlined_call_operand.vmem [shape: bf16[128,35], index: 0, kind: input, shape index: {}]   ;;  %s6569_s1 = inlined_call_operand.vmem [shape: f32[1,35], index: 1, kind: input, shape index: {}]   ;;  %s6570_s2 = inlined_call_operand.vmem [shape: bf16[42,35,39], index: 2, kind: input, shape index: {}]   ;;  %s6571_s3 = inlined_call_operand.vmem [shape: f32[1,39], index: 3, kind: input, shape index: {}]   ;;  %s6572_s4 = inlined_call_operand.vmem [shape: f32[1,32], index: 4, kind: input, shape index: {}]   ;;  %s6573_s5 = inlined_call_operand.<no memory space> [shape: f32[1,1], index: 5, kind: input, shape index: {}]   ;;  %s6574_s6 = inlined_call_operand.vmem [shape: bf16[42,2,128], index: 6, kind: input, shape index: {}]   ;;  %s6575_s7 = inlined_call_operand.<no memory space> [shape: bf16[], index: 7, kind: input, shape index: {}]   ;;  %s6576_s8 = inlined_call_operand.vmem [shape: f32[16,8], index: 8, kind: output, shape index: {}]  }
   0x1   :  { %v13_v0 = vstv %s6575_s7  ;;  %v18_v1 = vstv %s6573_s5 }
   0x2   :  { %v5564_v2 = vunpack.i.l.bf16 %v13_v0  ;;  %19 = vst [vmem:[#allocation8] sm:$0x1] %v18_v1 }
   0x3   :  { %v5129_v3 = vld [vmem:[%s6568_s0 + $0x38] sm:$0xff]  ;;  %v40_v4 = vlaneseq  ;;  %v5128_v5 = vld [vmem:[%s6568_s0 + $0x30] sm:$0xff]  ;;  %v37_v6 = vld [vmem:[%s6574_s6] sm:$0x1]  ;;  %vm1868_vm1 = vcmask 1040384   ;;  %vm1869_vm2 = vcmask 1041408  }
   0x4   :  { %1361 = vmatpush.bf16.msra.mxu0 %v5129_v3  ;;  %5466 = vmatpush.bf16.msra.mxu1 %v5129_v3  ;;  %v38_v8 = vunpack.c.l.bf16 %v37_v6  ;;  %v4088_v9 = vld [vmem:[%s6574_s6 + $0x1] sm:$0x1]  ;;  %v5127_v12 = vld [vmem:[%s6568_s0 + $0x28] sm:$0xff]  ;;  %v5125_v17 = vld [vmem:[%s6568_s0 + $0x18] sm:$0xff]  ;;  %vm1748_vm3 = vcmask 281600   ;;  %vm1864_vm4 = vcmask 285696  }
   0x5   :  { %v5575_v7 = vshrl.u32 %v40_v4, 7  ;;  %5467 = vmatpush.bf16.msra.mxu2 %v5129_v3  ;;  %5468 = vmatpush.bf16.msra.mxu3 %v5129_v3  ;;  %v59_v10 = vunpack.c.l.bf16 %v4088_v9  ;;  %v5126_v16 = vld [vmem:[%s6568_s0 + $0x20] sm:$0xff]  ;;  %v5124_v19 = vld [vmem:[%s6568_s0 + $0x10] sm:$0xff]  ;;  %v5123_v23 = vld [vmem:[%s6568_s0 + $0x8] sm:$0xff]  ;;  %vm4005_vm5 = vcmask 318720   ;;  %vm3990_vm6 = vcmask 261120  }
   0x6   :  { %v4089_v18 = vld [vmem:[%s6574_s6 + $0x2] sm:$0x1]  ;;  %v4108_v24 = vld [vmem:[%s6574_s6 + $0x15] sm:$0x1]  ;;  %v4090_v30 = vld [vmem:[%s6574_s6 + $0x3] sm:$0x1] }
   0x7   :  { %vm43_vm0 = vcmp.lt.s32.totalorder %v5575_v7, 2  ;;  %v81_v20 = vunpack.c.l.bf16 %v4089_v18  ;;  %v499_v25 = vunpack.c.l.bf16 %v4108_v24  ;;  %v5122_v26 = vld [vmem:[%s6568_s0] sm:$0xff]  ;;  %v103_v31 = vunpack.c.l.bf16 %v4090_v30  ;;  %v4109_v35 = vld [vmem:[%s6574_s6 + $0x16] sm:$0x1]  ;;  %v4115_v36 = vld [vmem:[%s6574_s6 + $0x1c] sm:$0x1] }
   0x8   :  { %v44_v11 = vsel %vm43_vm0, %v38_v8, %v5564_v2  ;;  %1362 = vmatpush.bf16.msra.mxu0 %v5128_v5  ;;  %5469 = vmatpush.bf16.msra.mxu1 %v5128_v5  ;;  %v65_v14 = vsel %vm43_vm0, %v59_v10, %v5564_v2  ;;  %v521_v37 = vunpack.c.l.bf16 %v4109_v35  ;;  %v653_v38 = vunpack.c.l.bf16 %v4115_v36  ;;  %v4091_v44 = vld [vmem:[%s6574_s6 + $0x4] sm:$0x1]  ;;  %v4110_v50 = vld [vmem:[%s6574_s6 + $0x17] sm:$0x1]  ;;  %v4116_v51 = vld [vmem:[%s6574_s6 + $0x1d] sm:$0x1] }
   0x9   :  { %v5259_v13 = vpack.c.bf16 %v5564_v2, %v44_v11  ;;  %v5264_v15 = vpack.c.bf16 %v5564_v2, %v65_v14  ;;  %5470 = vmatpush.bf16.msra.mxu2 %v5128_v5  ;;  %5471 = vmatpush.bf16.msra.mxu3 %v5128_v5  ;;  %v87_v21 = vsel %vm43_vm0, %v81_v20, %v5564_v2  ;;  %v125_v45 = vunpack.c.l.bf16 %v4091_v44  ;;  %v4122_v54 = vld [vmem:[%s6574_s6 + $0x23] sm:$0x1]  ;;  %v4092_v63 = vld [vmem:[%s6574_s6 + $0x5] sm:$0x1]  ;;  %v4111_v8 = vld [vmem:[%s6574_s6 + $0x18] sm:$0x1] }
   0xa   :  { %v5269_v22 = vpack.c.bf16 %v5564_v2, %v87_v21  ;;  %v505_v27 = vsel %vm43_vm0, %v499_v25, %v5564_v2  ;;  %v109_v33 = vsel %vm43_vm0, %v103_v31, %v5564_v2  ;;  %v527_v39 = vsel %vm43_vm0, %v521_v37, %v5564_v2  ;;  %v4117_v9 = vld [vmem:[%s6574_s6 + $0x1e] sm:$0x1]  ;;  %v4093_v21 = vld [vmem:[%s6574_s6 + $0x6] sm:$0x1]  ;;  %s5511_s20 = smov 96  }
   0xb   :  { %5260 = vst [vmem:[#allocation9 + $0xb0] sm:$0xff] %v5259_v13   ;;  %v5364_v28 = vpack.c.bf16 %v5564_v2, %v505_v27  ;;  %v5274_v34 = vpack.c.bf16 %v5564_v2, %v109_v33  ;;  %v659_v40 = vsel %vm43_vm0, %v653_v38, %v5564_v2  ;;  %v5369_v41 = vpack.c.bf16 %v5564_v2, %v527_v39 }
   0xc   :  { %5265 = vst [vmem:[#allocation9 + $0xd0] sm:$0xff] %v5264_v15   ;;  %1363 = vmatpush.bf16.msra.mxu0 %v5127_v12  ;;  %5472 = vmatpush.bf16.msra.mxu1 %v5127_v12  ;;  %v5399_v42 = vpack.c.bf16 %v5564_v2, %v659_v40  ;;  %v131_v47 = vsel %vm43_vm0, %v125_v45, %v5564_v2  ;;  %v543_v52 = vunpack.c.l.bf16 %v4110_v50  ;;  %v675_v53 = vunpack.c.l.bf16 %v4116_v51 }
   0xd   :  { %5473 = vmatpush.bf16.msra.mxu2 %v5127_v12  ;;  %5474 = vmatpush.bf16.msra.mxu3 %v5127_v12  ;;  %5270 = vst [vmem:[#allocation9 + $0x10] sm:$0xff] %v5269_v22   ;;  %v5279_v49 = vpack.c.bf16 %v5564_v2, %v131_v47  ;;  %v807_v55 = vunpack.c.l.bf16 %v4122_v54  ;;  %v147_v0 = vunpack.c.l.bf16 %v4092_v63  ;;  %v565_v10 = vunpack.c.l.bf16 %v4111_v8  ;;  %v4123_v12 = vld [vmem:[%s6574_s6 + $0x24] sm:$0x1]  ;;  %v4126_v8 = vld [vmem:[%s6574_s6 + $0x27] sm:$0x1] }
   0xe   :  { %5365 = vst [vmem:[#allocation9 + $0x90] sm:$0xff] %v5364_v28   ;;  %v549_v56 = vsel %vm43_vm0, %v543_v52, %v5564_v2  ;;  %v681_v57 = vsel %vm43_vm0, %v675_v53, %v5564_v2  ;;  %v697_v11 = vunpack.c.l.bf16 %v4117_v9  ;;  %v829_v13 = vunpack.c.l.bf16 %v4123_v12  ;;  %v4112_v28 = vld [vmem:[%s6574_s6 + $0x19] sm:$0x1]  ;;  %v4125_v52 = vld [vmem:[%s6574_s6 + $0x26] sm:$0x1] }
   0xf   :  { %5275 = vst [vmem:[#allocation9 + $0x48] sm:$0xff] %v5274_v34   ;;  %v5374_v58 = vpack.c.bf16 %v5564_v2, %v549_v56  ;;  %v5404_v59 = vpack.c.bf16 %v5564_v2, %v681_v57  ;;  %v813_v60 = vsel %vm43_vm0, %v807_v55, %v5564_v2  ;;  %v153_v3 = vsel %vm43_vm0, %v147_v0, %v5564_v2 }
  0x10   :  { %1364 = vmatpush.bf16.msra.mxu0 %v5126_v16  ;;  %5475 = vmatpush.bf16.msra.mxu1 %v5126_v16  ;;  %5370 = vst [vmem:[#allocation9 + $0xe0] sm:$0xff] %v5369_v41   ;;  %v5434_v61 = vpack.c.bf16 %v5564_v2, %v813_v60  ;;  %v5284_v5 = vpack.c.bf16 %v5564_v2, %v153_v3  ;;  %v169_v22 = vunpack.c.l.bf16 %v4093_v21  ;;  %v587_v30 = vunpack.c.l.bf16 %v4112_v28  ;;  %v4094_v41 = vld [vmem:[%s6574_s6 + $0x7] sm:$0x1] }
  0x11   :  { %5476 = vmatpush.bf16.msra.mxu2 %v5126_v16  ;;  %5477 = vmatpush.bf16.msra.mxu3 %v5126_v16  ;;  %5400 = vst [vmem:[#allocation9 + $0xd8] sm:$0xff] %v5399_v42   ;;  %v571_v14 = vsel %vm43_vm0, %v565_v10, %v5564_v2  ;;  %v703_v15 = vsel %vm43_vm0, %v697_v11, %v5564_v2  ;;  %v191_v42 = vunpack.c.l.bf16 %v4094_v41  ;;  %v873_v53 = vunpack.c.l.bf16 %v4125_v52 }
  0x12   :  { %v5080_v29 = vld [vmem:[#allocation9 + $0xb0] sm:$0xff]  ;;  %5280 = vst [vmem:[#allocation9 + $0x120] sm:$0xff] %v5279_v49   ;;  %v5379_v16 = vpack.c.bf16 %v5564_v2, %v571_v14  ;;  %v835_v18 = vsel %vm43_vm0, %v829_v13, %v5564_v2  ;;  %v175_v24 = vsel %vm43_vm0, %v169_v22, %v5564_v2  ;;  %v593_v34 = vsel %vm43_vm0, %v587_v30, %v5564_v2  ;;  %v4119_v49 = vld [vmem:[%s6574_s6 + $0x20] sm:$0x1]  ;;  %v1843_v22 = vld [vmem:[%s6570_s2 + $0x10] sm:$0x3] }
  0x13   :  { %v5081_v43 = vld [vmem:[#allocation9 + $0xd0] sm:$0xff]  ;;  %5375 = vst [vmem:[#allocation9 + $0x148] sm:$0xff] %v5374_v58   ;;  %v5384_v36 = vpack.c.bf16 %v5564_v2, %v593_v34  ;;  %v197_v44 = vsel %vm43_vm0, %v191_v42, %v5564_v2  ;;  %v741_v51 = vunpack.c.l.bf16 %v4119_v49  ;;  %v879_v58 = vsel %vm43_vm0, %v873_v53, %v5564_v2  ;;  %v4128_v53 = vld [vmem:[%s6574_s6 + $0x29] sm:$0x1] }
  0x14   :  { %1365 = vmatpush.bf16.msra.mxu0 %v5125_v17  ;;  %5478 = vmatpush.bf16.msra.mxu1 %v5125_v17  ;;  %v5082_v62 = vld [vmem:[#allocation9 + $0x10] sm:$0xff]  ;;  %5405 = vst [vmem:[#allocation9 + $0xa0] sm:$0xff] %v5404_v59   ;;  %v5449_v59 = vpack.c.bf16 %v5564_v2, %v879_v58  ;;  %v895_v11 = vunpack.c.l.bf16 %v4126_v8  ;;  %v4364_v8 = vld [vmem:[%s6570_s2 + $0x38] sm:$0x3]  ;;  %vm4026_vm7 = vcmask 56320  }
  0x15   :  { %5479 = vmatpush.bf16.msra.mxu2 %v5125_v17  ;;  %5480 = vmatpush.bf16.msra.mxu3 %v5125_v17  ;;  %v5101_v32 = vld [vmem:[#allocation9 + $0x90] sm:$0xff]  ;;  %5435 = vst [vmem:[#allocation9 + $0x40] sm:$0xff] %v5434_v61   ;;  %v5409_v17 = vpack.c.bf16 %v5564_v2, %v703_v15  ;;  %v747_v55 = vsel %vm43_vm0, %v741_v51, %v5564_v2 }
  0x16   :  { %5285 = vst [vmem:[#allocation9 + $0x38] sm:$0xff] %v5284_v5   ;;  %v5083_v20 = vld [vmem:[#allocation9 + $0x48] sm:$0xff]  ;;  %v5419_v57 = vpack.c.bf16 %v5564_v2, %v747_v55  ;;  %v4095_v61 = vld [vmem:[%s6574_s6 + $0x8] sm:$0x1]  ;;  %v901_v14 = vsel %vm43_vm0, %v895_v11, %v5564_v2 }
  0x17   :  { %v5102_v46 = vld [vmem:[#allocation9 + $0xe0] sm:$0xff]  ;;  %5380 = vst [vmem:[#allocation9 + $0x118] sm:$0xff] %v5379_v16   ;;  %v4114_v5 = vld [vmem:[%s6574_s6 + $0x1b] sm:$0x1]  ;;  %v5132_v42 = vld [vmem:[%s6570_s2 + $0x8] sm:$0xff] }
  0x18   :  { %1366 = vmatpush.bf16.msra.mxu0 %v5124_v19  ;;  %5481 = vmatpush.bf16.msra.mxu1 %v5124_v19  ;;  %v5108_v48 = vld [vmem:[#allocation9 + $0xd8] sm:$0xff]  ;;  %5410 = vst [vmem:[#allocation9 + $0x50] sm:$0xff] %v5409_v17   ;;  %v631_v9 = vunpack.c.l.bf16 %v4114_v5  ;;  %v5454_v17 = vpack.c.bf16 %v5564_v2, %v901_v14 }
  0x19   :  { %5482 = vmatpush.bf16.msra.mxu2 %v5124_v19  ;;  %5483 = vmatpush.bf16.msra.mxu3 %v5124_v19  ;;  %v5439_v19 = vpack.c.bf16 %v5564_v2, %v835_v18  ;;  %v5084_v40 = vld [vmem:[#allocation9 + $0x120] sm:$0xff]  ;;  %5385 = vst [vmem:[#allocation9 + $0x68] sm:$0xff] %v5384_v36  }
  0x1a   :  { %v5103_v1 = vld [vmem:[#allocation9 + $0x148] sm:$0xff]  ;;  %5420 = vst [vmem:[#allocation9 + $0x58] sm:$0xff] %v5419_v57   ;;  %v637_v12 = vsel %vm43_vm0, %v631_v9, %v5564_v2 }
  0x1b   :  { %v5109_v4 = vld [vmem:[#allocation9 + $0xa0] sm:$0xff]  ;;  %5440 = vst [vmem:[#allocation9 + $0x28] sm:$0xff] %v5439_v19   ;;  %v5394_v15 = vpack.c.bf16 %v5564_v2, %v637_v12  ;;  %v4096_v19 = vld [vmem:[%s6574_s6 + $0x9] sm:$0x1]  ;;  %v5835_v57 = vld [vmem:[%s6569_s1] ss:$0 sm:$0xff] }
  0x1c   :  { %1367 = vmatpush.bf16.msra.mxu0 %v5123_v23  ;;  %5484 = vmatpush.bf16.msra.mxu1 %v5123_v23  ;;  %v5115_v6 = vld [vmem:[#allocation9 + $0x40] sm:$0xff]  ;;  %5450 = vst [vmem:[#allocation9 + $0x88] sm:$0xff] %v5449_v59  }
  0x1d   :  { %5485 = vmatpush.bf16.msra.mxu2 %v5123_v23  ;;  %5486 = vmatpush.bf16.msra.mxu3 %v5123_v23  ;;  %v5085_v60 = vld [vmem:[#allocation9 + $0x38] sm:$0xff]  ;;  %5395 = vst [vmem:[#allocation9] sm:$0xff] %v5394_v15  }
  0x1e   :  { %v5104_v23 = vld [vmem:[#allocation9 + $0x118] sm:$0xff]  ;;  %5455 = vst [vmem:[#allocation9 + $0x60] sm:$0xff] %v5454_v17  }
  0x1f   :  { %v5110_v25 = vld [vmem:[#allocation9 + $0x50] sm:$0xff] }
  0x20   :  { %1368 = vmatpush.bf16.msra.mxu0 %v5122_v26  ;;  %5487 = vmatpush.bf16.msra.mxu1 %v5122_v26 }
  0x21   :  { %5488 = vmatpush.bf16.msra.mxu2 %v5122_v26  ;;  %5489 = vmatpush.bf16.msra.mxu3 %v5122_v26  ;;  %v5289_v26 = vpack.c.bf16 %v5564_v2, %v175_v24  ;;  %v5112_v0 = vld [vmem:[#allocation9 + $0x58] sm:$0xff]  ;;  %v1858_v24 = vunpack.c.l.b16 %v1843_v22 }
  0x22   :  { %v5116_v27 = vld [vmem:[#allocation9 + $0x28] sm:$0xff] }
  0x23   :  { %1369 = vmatmul.bf16.vlgmr.msra.gmra.mxu0 %v5080_v29  ;;  %1474 = vmatmul.bf16.vlgmr.msra.gmra.mxu1 %v5101_v32  ;;  %5290 = vst [vmem:[#allocation9 + $0xf8] sm:$0xff] %v5289_v26   ;;  %v4118_v29 = vld [vmem:[%s6574_s6 + $0x1f] sm:$0x1]  ;;  %v4124_v32 = vld [vmem:[%s6574_s6 + $0x25] sm:$0x1]  ;;  %v1861_v28 = vpack.c.b16 %v1858_v24, %v1858_v24  ;;  %v5138_v24 = vld [vmem:[%s6570_s2 + $0x30] sm:$0xff] }
  0x24   :  { %1509 = vmatmul.bf16.vlgmr.msra.gmra.mxu2 %v5108_v48  ;;  %1544 = vmatmul.bf16.vlgmr.msra.gmra.mxu3 %v5115_v6  ;;  %v719_v31 = vunpack.c.l.bf16 %v4118_v29  ;;  %v851_v33 = vunpack.c.l.bf16 %v4124_v32  ;;  %v4113_v48 = vld [vmem:[%s6574_s6 + $0x1a] sm:$0x1]  ;;  %v4120_v6 = vld [vmem:[%s6574_s6 + $0x21] sm:$0x1]  ;;  %v5107_v21 = vld [vmem:[#allocation9] sm:$0xff]  ;;  %v5510_v29 = vmov 65535  }
  0x25   :  { %v609_v50 = vunpack.c.l.bf16 %v4113_v48  ;;  %v5118_v3 = vld [vmem:[#allocation9 + $0x88] sm:$0xff]  ;;  %v763_v10 = vunpack.c.l.bf16 %v4120_v6  ;;  %v5119_v26 = vld [vmem:[#allocation9 + $0x60] sm:$0xff]  ;;  %v1870_v30 = vsel %vm1868_vm1, 4294967295, %v5510_v29  ;;  %v4127_v32 = vld [vmem:[%s6574_s6 + $0x28] sm:$0x1] }
  0x26   :  { %v725_v35 = vsel %vm43_vm0, %v719_v31, %v5564_v2  ;;  %v857_v38 = vsel %vm43_vm0, %v851_v33, %v5564_v2  ;;  %v4121_v31 = vld [vmem:[%s6574_s6 + $0x22] sm:$0x1]  ;;  %v5798_v33 = vsel %vm1869_vm2, %v1870_v30, 0  ;;  %v5137_v30 = vld [vmem:[%s6570_s2 + $0x28] sm:$0xff] }
  0x27   :  { %v5414_v37 = vpack.c.bf16 %v5564_v2, %v725_v35  ;;  %v5444_v39 = vpack.c.bf16 %v5564_v2, %v857_v38  ;;  %v615_v54 = vsel %vm43_vm0, %v609_v50, %v5564_v2  ;;  %v769_v13 = vsel %vm43_vm0, %v763_v10, %v5564_v2 }
  0x28   :  { %v5389_v56 = vpack.c.bf16 %v5564_v2, %v615_v54  ;;  %v5424_v16 = vpack.c.bf16 %v5564_v2, %v769_v13  ;;  %v785_v34 = vunpack.c.l.bf16 %v4121_v31  ;;  %v917_v35 = vunpack.c.l.bf16 %v4127_v32  ;;  %v4099_v31 = vld [vmem:[%s6574_s6 + $0xc] sm:$0x1] }
  0x29   :  { %5415 = vst [vmem:[#allocation9 + $0x140] sm:$0xff] %v5414_v37   ;;  %v1873_v36 = vand.u32 %v5798_v33, %v1861_v28  ;;  %v939_v54 = vunpack.c.l.bf16 %v4128_v53  ;;  %v1965_v10 = vunpack.c.l.b16 %v4364_v8 }
  0x2a   :  { %5445 = vst [vmem:[#allocation9 + $0xc0] sm:$0xff] %v5444_v39   ;;  %v5086_v18 = vld [vmem:[#allocation9 + $0xf8] sm:$0xff]  ;;  %v791_v37 = vsel %vm43_vm0, %v785_v34, %v5564_v2  ;;  %v923_v38 = vsel %vm43_vm0, %v917_v35, %v5564_v2  ;;  %v301_v35 = vunpack.c.l.bf16 %v4099_v31 }
  0x2b   :  { %5390 = vst [vmem:[#allocation9 + $0x78] sm:$0xff] %v5389_v56   ;;  %1880 = vmatpush.bf16.msrb.mxu1 %v1873_v36  ;;  %v5429_v39 = vpack.c.bf16 %v5564_v2, %v791_v37  ;;  %v945_v56 = vsel %vm43_vm0, %v939_v54, %v5564_v2  ;;  %v4382_v37 = vld [vmem:[%s6570_s2 + $0x4c] sm:$0x3] }
  0x2c   :  { %5425 = vst [vmem:[#allocation9 + $0xe8] sm:$0xff] %v5424_v16   ;;  %v5464_v58 = vpack.c.bf16 %v5564_v2, %v945_v56  ;;  %v1968_v16 = vpack.c.b16 %v1965_v10, %v1965_v10 }
  0x2d   :  { %5430 = vst [vmem:[#allocation9 + $0x130] sm:$0xff] %v5429_v39   ;;  %v2016_v39 = vunpack.c.l.b16 %v4382_v37 }
  0x2e   :  { %5465 = vst [vmem:[#allocation9 + $0x30] sm:$0xff] %v5464_v58  }
  0x2f   :  { %1881 = vmatpush.bf16.msrb.mxu1 %v5132_v42 }
  0x30   :  { %v5111_v45 = vld [vmem:[#allocation9 + $0x140] sm:$0xff] }
  0x31   :  { %v5117_v47 = vld [vmem:[#allocation9 + $0xc0] sm:$0xff] }
  0x32   :  { %v5106_v63 = vld [vmem:[#allocation9 + $0x78] sm:$0xff] }
  0x33   :  { %1374 = vmatmul.bf16.gmra.mxu0 %v5081_v43  ;;  %1479 = vmatmul.bf16.gmra.mxu1 %v5102_v46  ;;  %v5105_v43 = vld [vmem:[#allocation9 + $0x68] sm:$0xff]  ;;  %v5294_v46 = vpack.c.bf16 %v5564_v2, %v197_v44  ;;  %v4097_v44 = vld [vmem:[%s6574_s6 + $0xa] sm:$0x1] }
  0x34   :  { %1514 = vmatmul.bf16.gmra.mxu2 %v5109_v4  ;;  %1549 = vmatmul.bf16.gmra.mxu3 %v5116_v27 }
  0x35   :  { %5295 = vst [vmem:[#allocation9 + $0x100] sm:$0xff] %v5294_v46   ;;  %v5114_v46 = vld [vmem:[#allocation9 + $0x130] sm:$0xff] }
  0x36   :  { %v5121_v6 = vld [vmem:[#allocation9 + $0x30] sm:$0xff] }
  0x3c   :  { %v5087_v41 = vld [vmem:[#allocation9 + $0x100] sm:$0xff] }
  0x43   :  { %1379 = vmatmul.bf16.gmra.mxu0 %v5082_v62  ;;  %1484 = vmatmul.bf16.gmra.mxu1 %v5103_v1  ;;  %v213_v62 = vunpack.c.l.bf16 %v4095_v61 }
  0x44   :  { %1519 = vmatmul.bf16.gmra.mxu2 %v5110_v25  ;;  %1554 = vmatmul.bf16.gmra.mxu3 %v5117_v47  ;;  %v4346_v47 = vld [vmem:[%s6570_s2 + $0x24] sm:$0x3] }
  0x45   :  { %v219_v1 = vsel %vm43_vm0, %v213_v62, %v5564_v2  ;;  %v1914_v49 = vunpack.c.l.b16 %v4346_v47 }
  0x46   :  { %v5299_v4 = vpack.c.bf16 %v5564_v2, %v219_v1  ;;  %v4098_v1 = vld [vmem:[%s6574_s6 + $0xb] sm:$0x1] }
  0x47   :  { %v1917_v52 = vpack.c.b16 %v1914_v49, %v1914_v49  ;;  %v279_v5 = vunpack.c.l.bf16 %v4098_v1 }
  0x48   :  { %5300 = vst [vmem:[#allocation9 + $0x80] sm:$0xff] %v5299_v4  }
  0x49   :  { %v1924_v55 = vand.u32 %v1917_v52, %v5798_v33  ;;  %v285_v11 = vsel %vm43_vm0, %v279_v5, %v5564_v2 }
  0x4a   :  { %v5314_v13 = vpack.c.bf16 %v5564_v2, %v285_v11 }
  0x4b   :  { %1931 = vmatpush.bf16.msrb.mxu2 %v1924_v55  ;;  %v5141_v55 = vld [vmem:[%s6570_s2 + $0x44] sm:$0xff] }
  0x4c   :  { %5315 = vst [vmem:[#allocation9 + $0xf0] sm:$0xff] %v5314_v13  }
  0x4f   :  { %v5088_v59 = vld [vmem:[#allocation9 + $0x80] sm:$0xff] }
  0x53   :  { %1384 = vmatmul.bf16.gmra.mxu0 %v5083_v20  ;;  %1489 = vmatmul.bf16.gmra.mxu1 %v5104_v23  ;;  %v235_v20 = vunpack.c.l.bf16 %v4096_v19  ;;  %v5113_v23 = vld [vmem:[#allocation9 + $0xe8] sm:$0xff]  ;;  %v1975_v19 = vand.u32 %v1968_v16, %v5798_v33 }
  0x54   :  { %1524 = vmatmul.bf16.gmra.mxu2 %v5111_v45  ;;  %1559 = vmatmul.bf16.gmra.mxu3 %v5118_v3  ;;  %v257_v45 = vunpack.c.l.bf16 %v4097_v44 }
  0x55   :  { %v241_v25 = vsel %vm43_vm0, %v235_v20, %v5564_v2  ;;  %1982 = vmatpush.bf16.msrb.mxu3 %v1975_v19 }
  0x56   :  { %v5304_v27 = vpack.c.bf16 %v5564_v2, %v241_v25  ;;  %v263_v50 = vsel %vm43_vm0, %v257_v45, %v5564_v2  ;;  %v2019_v45 = vpack.c.b16 %v2016_v39, %v2016_v39 }
  0x57   :  { %v5309_v51 = vpack.c.bf16 %v5564_v2, %v263_v50 }
  0x58   :  { %5305 = vst [vmem:[#allocation9 + $0x108] sm:$0xff] %v5304_v27  }
  0x59   :  { %5310 = vst [vmem:[#allocation9 + $0x138] sm:$0xff] %v5309_v51   ;;  %1983 = vmatpush.bf16.msrb.mxu3 %v5138_v24 }
  0x5d   :  { %1984 = vmatpush.bf16.msrb.mxu3 %v5137_v30 }
  0x5f   :  { %v5089_v22 = vld [vmem:[#allocation9 + $0x108] sm:$0xff] }
  0x60   :  { %v5090_v52 = vld [vmem:[#allocation9 + $0x138] sm:$0xff] }
  0x63   :  { %1389 = vmatmul.bf16.gmra.mxu0 %v5084_v40  ;;  %1494 = vmatmul.bf16.gmra.mxu1 %v5105_v43  ;;  %v5459_v40 = vpack.c.bf16 %v5564_v2, %v923_v38  ;;  %v5131_v43 = vld [vmem:[%s6570_s2] sm:$0xff] }
  0x64   :  { %1529 = vmatmul.bf16.gmra.mxu2 %v5112_v0  ;;  %1564 = vmatmul.bf16.gmra.mxu3 %v5119_v26  ;;  %v5134_v0 = vld [vmem:[%s6570_s2 + $0x14] sm:$0xff] }
  0x65   :  { %5460 = vst [vmem:[#allocation9 + $0xb8] sm:$0xff] %v5459_v40   ;;  %1882 = vmatpush.bf16.msrb.mxu1 %v5131_v43  ;;  %v307_v40 = vsel %vm43_vm0, %v301_v35, %v5564_v2 }
  0x66   :  { %v5319_v42 = vpack.c.bf16 %v5564_v2, %v307_v40 }
  0x68   :  { %5320 = vst [vmem:[#allocation9 + $0x18] sm:$0xff] %v5319_v42   ;;  %v5143_v42 = vld [vmem:[%s6570_s2 + $0x50] sm:$0xff] }
  0x6c   :  { %v5120_v48 = vld [vmem:[#allocation9 + $0xb8] sm:$0xff] }
  0x73   :  { %1394 = vmatmul.bf16.gmra.mxu0 %v5085_v60  ;;  %1499 = vmatmul.bf16.gmra.mxu1 %v5106_v63  ;;  %v5135_v60 = vld [vmem:[%s6570_s2 + $0x1c] sm:$0xff] }
  0x74   :  { %1534 = vmatmul.bf16.gmra.mxu2 %v5113_v23  ;;  %1569 = vmatmul.bf16.gmra.mxu3 %v5120_v48  ;;  %v2026_v48 = vand.u32 %v2019_v45, %v5798_v33  ;;  %v4101_v45 = vld [vmem:[%s6574_s6 + $0xe] sm:$0x1] }
  0x75   :  { %1932 = vmatpush.bf16.msrb.mxu2 %v5135_v60 }
  0x76   :  { %2033 = vmatpush.bf16.msra.mxu1 %v2026_v48 }
  0x79   :  { %1933 = vmatpush.bf16.msrb.mxu2 %v5134_v0  ;;  %v5140_v0 = vld [vmem:[%s6570_s2 + $0x3c] sm:$0xff] }
  0x7a   :  { %2034 = vmatpush.bf16.msra.mxu1 %v5141_v55 }
  0x7e   :  { %2035 = vmatpush.bf16.msra.mxu1 %v5140_v0 }
  0x83   :  { %1399 = vmatmul.bf16.gmra.mxu0 %v5086_v18  ;;  %1504 = vmatmul.bf16.gmra.mxu1 %v5107_v21 }
  0x84   :  { %1539 = vmatmul.bf16.gmra.mxu2 %v5114_v46  ;;  %1574 = vmatmul.bf16.gmra.mxu3 %v5121_v6 }
  0x93   :  { %1404 = vmatmul.bf16.gmra.mxu0 %v5087_v41 }
  0xa0   :  { %v1370_v61 = vpop.f32.mrf.mxu0  ;;  %v1475_v4 = vpop.f32.mrf.mxu1 }
  0xa1   :  { %v1371_v62 = vadd.f32 %v5835_v57, %v1370_v61  ;;  %v1476_v9 = vadd.f32 %v5835_v57, %v1475_v4 }
  0xa3   :  { %v1580_v63 = vmax.f32 %v1371_v62, 0.0  ;;  %1409 = vmatmul.bf16.gmra.mxu0 %v5088_v59  ;;  %v1622_v15 = vmax.f32 %v1476_v9, 0.0  ;;  %v4400_v9 = vld [vmem:[%s6570_s2 + $0x60] sm:$0x3] }
  0xa5   :  { %v1664_v3 = vpack.c.bf16 %v1580_v63, %v1580_v63  ;;  %v1706_v18 = vpack.c.bf16 %v1622_v15, %v1622_v15 }
  0xa7   :  { %1749 = vst.msk [vmem:[#allocation2] sm:$0xf] %vm1748_vm3, %v1664_v3  ;;  %v1510_v49 = vpop.f32.mrf.mxu2  ;;  %v4100_v3 = vld [vmem:[%s6574_s6 + $0xd] sm:$0x1] }
  0xa8   :  { %v1372_v12 = vpop.f32.mrf.mxu0  ;;  %1791 = vst.msk [vmem:[#allocation2 + $0xa8] sm:$0xf] %vm1748_vm3, %v1706_v18  ;;  %v1477_v21 = vpop.f32.mrf.mxu1  ;;  %v1511_v53 = vadd.f32 %v5835_v57, %v1510_v49  ;;  %v323_v6 = vunpack.c.l.bf16 %v4100_v3  ;;  %v345_v49 = vunpack.c.l.bf16 %v4101_v45 }
  0xa9   :  { %v1373_v14 = vadd.f32 %v5835_v57, %v1372_v12  ;;  %v1478_v23 = vadd.f32 %v5835_v57, %v1477_v21  ;;  %v2067_v12 = vunpack.c.l.b16 %v4400_v9 }
  0xaa   :  { %v1636_v59 = vmax.f32 %v1511_v53, 0.0  ;;  %v329_v13 = vsel %vm43_vm0, %v323_v6, %v5564_v2 }
  0xab   :  { %v1581_v17 = vmax.f32 %v1373_v14, 0.0  ;;  %v1623_v27 = vmax.f32 %v1478_v23, 0.0  ;;  %v5324_v15 = vpack.c.bf16 %v5564_v2, %v329_v13  ;;  %v2070_v19 = vpack.c.b16 %v2067_v12, %v2067_v12  ;;  %v5092_v12 = vld [vmem:[#allocation9 + $0x18] sm:$0xff] }
  0xac   :  { %v1720_v62 = vpack.c.bf16 %v1636_v59, %v1636_v59 }
  0xad   :  { %v1665_v20 = vpack.c.bf16 %v1581_v17, %v1581_v17  ;;  %v1707_v29 = vpack.c.bf16 %v1623_v27, %v1623_v27  ;;  %5325 = vst [vmem:[#allocation9 + $0xc8] sm:$0xff] %v5324_v15   ;;  %v2077_v23 = vand.u32 %v2070_v19, %v5798_v33 }
  0xae   :  { %1805 = vst.msk [vmem:[#allocation2 + $0xe0] sm:$0xf] %vm1748_vm3, %v1720_v62 }
  0xaf   :  { %1750 = vst.msk [vmem:[#allocation2 + $0x4] sm:$0xf] %vm1748_vm3, %v1665_v20  ;;  %v1512_v1 = vpop.f32.mrf.mxu2  ;;  %2084 = vmatpush.bf16.msra.mxu2 %v2077_v23 }
  0xb0   :  { %v1375_v25 = vpop.f32.mrf.mxu0  ;;  %1792 = vst.msk [vmem:[#allocation2 + $0xac] sm:$0xf] %vm1748_vm3, %v1707_v29  ;;  %v1480_v34 = vpop.f32.mrf.mxu1  ;;  %v1513_v10 = vadd.f32 %v5835_v57, %v1512_v1 }
  0xb1   :  { %v1376_v26 = vadd.f32 %v5835_v57, %v1375_v25  ;;  %v1481_v38 = vadd.f32 %v5835_v57, %v1480_v34 }
  0xb2   :  { %v1637_v17 = vmax.f32 %v1513_v10, 0.0 }
  0xb3   :  { %v1582_v28 = vmax.f32 %v1376_v26, 0.0  ;;  %1414 = vmatmul.bf16.gmra.mxu0 %v5089_v22  ;;  %v1624_v44 = vmax.f32 %v1481_v38, 0.0  ;;  %v1545_v26 = vpop.f32.mrf.mxu3 }
  0xb4   :  { %v1721_v21 = vpack.c.bf16 %v1637_v17, %v1637_v17  ;;  %v1546_v30 = vadd.f32 %v5835_v57, %v1545_v26 }
  0xb5   :  { %v1666_v32 = vpack.c.bf16 %v1582_v28, %v1582_v28  ;;  %v1708_v47 = vpack.c.bf16 %v1624_v44, %v1624_v44  ;;  %v5091_v28 = vld [vmem:[#allocation9 + $0xf0] sm:$0xff] }
  0xb6   :  { %v5130_v36 = vld [vmem:[#allocation2] sm:$0xff]  ;;  %1806 = vst.msk [vmem:[#allocation2 + $0xe4] sm:$0xf] %vm1748_vm3, %v1721_v21  ;;  %v1650_v37 = vmax.f32 %v1546_v30, 0.0 }
  0xb7   :  { %1751 = vst.msk [vmem:[#allocation2 + $0x8] sm:$0xf] %vm1748_vm3, %v1666_v32  ;;  %4341 = vmatmul.msk.bf16.vlgmr.msrb.gmra.mxu1 %vm1864_vm4, %v5130_v36  ;;  %v1515_v24 = vpop.f32.mrf.mxu2  ;;  %v5144_v32 = vld [vmem:[%s6570_s2 + $0x58] sm:$0xff] }
  0xb8   :  { %v1377_v41 = vpop.f32.mrf.mxu0  ;;  %1793 = vst.msk [vmem:[#allocation2 + $0xb0] sm:$0xf] %vm1748_vm3, %v1708_v47  ;;  %v1482_v51 = vpop.f32.mrf.mxu1  ;;  %v1516_v29 = vadd.f32 %v5835_v57, %v1515_v24  ;;  %2085 = vmatpush.bf16.msra.mxu2 %v5144_v32 }
  0xb9   :  { %v1378_v43 = vadd.f32 %v5835_v57, %v1377_v41  ;;  %v1483_v54 = vadd.f32 %v5835_v57, %v1482_v51  ;;  %v1734_v41 = vpack.c.bf16 %v1650_v37, %v1650_v37  ;;  %v4418_v51 = vld [vmem:[%s6570_s2 + $0x74] sm:$0x3] }
  0xba   :  { %v1638_v36 = vmax.f32 %v1516_v29, 0.0  ;;  %v2118_v55 = vunpack.c.l.b16 %v4418_v51 }
  0xbb   :  { %v1583_v46 = vmax.f32 %v1378_v43, 0.0  ;;  %v1625_v60 = vmax.f32 %v1483_v54, 0.0  ;;  %v1547_v47 = vpop.f32.mrf.mxu3  ;;  %1819 = vst.msk [vmem:[#allocation2 + $0x118] sm:$0xf] %vm1748_vm3, %v1734_v41 }
  0xbc   :  { %v1722_v40 = vpack.c.bf16 %v1638_v36, %v1638_v36  ;;  %2086 = vmatpush.bf16.msra.mxu2 %v5143_v42  ;;  %v1548_v53 = vadd.f32 %v5835_v57, %v1547_v47 }
  0xbd   :  { %v1667_v50 = vpack.c.bf16 %v1583_v46, %v1583_v46  ;;  %v1709_v63 = vpack.c.bf16 %v1625_v60, %v1625_v60 }
  0xbe   :  { %1807 = vst.msk [vmem:[#allocation2 + $0xe8] sm:$0xf] %vm1748_vm3, %v1722_v40 }
  0xbf   :  { %1752 = vst.msk [vmem:[#allocation2 + $0xc] sm:$0xf] %vm1748_vm3, %v1667_v50  ;;  %v1517_v44 = vpop.f32.mrf.mxu2 }
  0xc0   :  { %v1380_v56 = vpop.f32.mrf.mxu0  ;;  %v1485_v5 = vpop.f32.mrf.mxu1  ;;  %1794 = vst.msk [vmem:[#allocation2 + $0xb4] sm:$0xf] %vm1748_vm3, %v1709_v63  ;;  %v2121_v63 = vpack.c.b16 %v2118_v55, %v2118_v55 }
  0xc1   :  { %v1381_v58 = vadd.f32 %v5835_v57, %v1380_v56  ;;  %v1486_v11 = vadd.f32 %v5835_v57, %v1485_v5 }
  0xc3   :  { %v1584_v61 = vmax.f32 %v1381_v58, 0.0  ;;  %1419 = vmatmul.bf16.gmra.mxu0 %v5090_v52  ;;  %v1626_v18 = vmax.f32 %v1486_v11, 0.0  ;;  %v1518_v52 = vadd.f32 %v5835_v57, %v1517_v44  ;;  %v351_v58 = vsel %vm43_vm0, %v345_v49, %v5564_v2  ;;  %v1550_v10 = vpop.f32.mrf.mxu3 }
  0xc4   :  { %v5329_v0 = vpack.c.bf16 %v5564_v2, %v351_v58  ;;  %v5093_v58 = vld [vmem:[#allocation9 + $0xc8] sm:$0xff] }
  0xc5   :  { %v1668_v4 = vpack.c.bf16 %v1584_v61, %v1584_v61  ;;  %v1710_v22 = vpack.c.bf16 %v1626_v18, %v1626_v18  ;;  %v1639_v60 = vmax.f32 %v1518_v52, 0.0  ;;  %v1651_v61 = vmax.f32 %v1548_v53, 0.0 }
  0xc6   :  { %v5133_v8 = vld [vmem:[#allocation2 + $0x8] sm:$0xff]  ;;  %5330 = vst [vmem:[#allocation9 + $0x70] sm:$0xff] %v5329_v0  }
  0xc7   :  { %1753 = vst.msk [vmem:[#allocation2 + $0x10] sm:$0xf] %vm1748_vm3, %v1668_v4  ;;  %4359 = vmatmul.msk.bf16.vlgmr.msrb.gmra.mxu2 %vm1864_vm4, %v5133_v8  ;;  %v1723_v3 = vpack.c.bf16 %v1639_v60, %v1639_v60  ;;  %v1735_v4 = vpack.c.bf16 %v1651_v61, %v1651_v61  ;;  %v1520_v6 = vpop.f32.mrf.mxu2  ;;  %v2128_v8 = vand.u32 %v2121_v63, %v5798_v33 }
  0xc8   :  { %v1382_v14 = vpop.f32.mrf.mxu0  ;;  %v1487_v27 = vpop.f32.mrf.mxu1  ;;  %1795 = vst.msk [vmem:[#allocation2 + $0xb8] sm:$0xf] %vm1748_vm3, %v1710_v22  ;;  %v1521_v13 = vadd.f32 %v5835_v57, %v1520_v6 }
  0xc9   :  { %v1383_v16 = vadd.f32 %v5835_v57, %v1382_v14  ;;  %v1488_v31 = vadd.f32 %v5835_v57, %v1487_v27  ;;  %1808 = vst.msk [vmem:[#allocation2 + $0xec] sm:$0xf] %vm1748_vm3, %v1723_v3  ;;  %2135 = vmatpush.bf16.msra.mxu3 %v2128_v8  ;;  %v1551_v14 = vadd.f32 %v5835_v57, %v1550_v10 }
  0xca   :  { %1820 = vst.msk [vmem:[#allocation2 + $0x11c] sm:$0xf] %vm1748_vm3, %v1735_v4  ;;  %v1640_v19 = vmax.f32 %v1521_v13, 0.0 }
  0xcb   :  { %v1585_v20 = vmax.f32 %v1383_v16, 0.0  ;;  %v1627_v38 = vmax.f32 %v1488_v31, 0.0  ;;  %v5147_v16 = vld [vmem:[%s6570_s2 + $0x6c] sm:$0xff]  ;;  %v1552_v30 = vpop.f32.mrf.mxu3 }
  0xcc   :  { %v1724_v23 = vpack.c.bf16 %v1640_v19, %v1640_v19  ;;  %v1553_v37 = vadd.f32 %v5835_v57, %v1552_v30 }
  0xcd   :  { %v1669_v25 = vpack.c.bf16 %v1585_v20, %v1585_v20  ;;  %v1711_v43 = vpack.c.bf16 %v1627_v38, %v1627_v38  ;;  %v1652_v20 = vmax.f32 %v1551_v14, 0.0  ;;  %2136 = vmatpush.bf16.msra.mxu3 %v5147_v16 }
  0xce   :  { %1809 = vst.msk [vmem:[#allocation2 + $0xf0] sm:$0xf] %vm1748_vm3, %v1724_v23  ;;  %v1653_v44 = vmax.f32 %v1553_v37, 0.0 }
  0xcf   :  { %1754 = vst.msk [vmem:[#allocation2 + $0x14] sm:$0xf] %vm1748_vm3, %v1669_v25  ;;  %v1736_v24 = vpack.c.bf16 %v1652_v20, %v1652_v20  ;;  %v5146_v25 = vld [vmem:[%s6570_s2 + $0x64] sm:$0xff]  ;;  %v1522_v27 = vpop.f32.mrf.mxu2 }
  0xd0   :  { %v1385_v34 = vpop.f32.mrf.mxu0  ;;  %v1490_v48 = vpop.f32.mrf.mxu1  ;;  %1796 = vst.msk [vmem:[#allocation2 + $0xbc] sm:$0xf] %vm1748_vm3, %v1711_v43  ;;  %v1523_v36 = vadd.f32 %v5835_v57, %v1522_v27 }
  0xd1   :  { %v1386_v35 = vadd.f32 %v5835_v57, %v1385_v34  ;;  %v1491_v54 = vadd.f32 %v5835_v57, %v1490_v48  ;;  %1821 = vst.msk [vmem:[#allocation2 + $0x120] sm:$0xf] %vm1748_vm3, %v1736_v24  ;;  %2137 = vmatpush.bf16.msra.mxu3 %v5146_v25 }
  0xd2   :  { %v1641_v43 = vmax.f32 %v1523_v36, 0.0 }
  0xd3   :  { %v1586_v39 = vmax.f32 %v1386_v35, 0.0  ;;  %1424 = vmatmul.bf16.gmra.mxu0 %v5091_v28  ;;  %v1628_v62 = vmax.f32 %v1491_v54, 0.0  ;;  %v4102_v28 = vld [vmem:[%s6574_s6 + $0xf] sm:$0x1]  ;;  %v4436_v35 = vld [vmem:[%s6570_s2 + $0x88] sm:$0x3]  ;;  %v1555_v55 = vpop.f32.mrf.mxu3 }
  0xd4   :  { %v367_v32 = vunpack.c.l.bf16 %v4102_v28  ;;  %v1725_v49 = vpack.c.bf16 %v1641_v43, %v1641_v43  ;;  %v1556_v60 = vadd.f32 %v5835_v57, %v1555_v55 }
  0xd5   :  { %v1670_v46 = vpack.c.bf16 %v1586_v39, %v1586_v39  ;;  %v1712_v5 = vpack.c.bf16 %v1628_v62, %v1628_v62  ;;  %v2169_v39 = vunpack.c.l.b16 %v4436_v35  ;;  %v5150_v62 = vld [vmem:[%s6570_s2 + $0x80] sm:$0xff] }
  0xd6   :  { %v5136_v50 = vld [vmem:[#allocation2 + $0x10] sm:$0xff]  ;;  %v373_v41 = vsel %vm43_vm0, %v367_v32, %v5564_v2  ;;  %1810 = vst.msk [vmem:[#allocation2 + $0xf4] sm:$0xf] %vm1748_vm3, %v1725_v49  ;;  %v1654_v3 = vmax.f32 %v1556_v60, 0.0 }
  0xd7   :  { %1755 = vst.msk [vmem:[#allocation2 + $0x18] sm:$0xf] %vm1748_vm3, %v1670_v46  ;;  %4377 = vmatmul.msk.bf16.vlgmr.msrb.gmra.mxu3 %vm1864_vm4, %v5136_v50  ;;  %v2172_v46 = vpack.c.b16 %v2169_v39, %v2169_v39  ;;  %v5334_v47 = vpack.c.bf16 %v5564_v2, %v373_v41  ;;  %v1737_v50 = vpack.c.bf16 %v1653_v44, %v1653_v44  ;;  %v1525_v52 = vpop.f32.mrf.mxu2  ;;  %v5094_v41 = vld [vmem:[#allocation9 + $0x70] sm:$0xff] }
  0xd8   :  { %v1387_v56 = vpop.f32.mrf.mxu0  ;;  %v1492_v11 = vpop.f32.mrf.mxu1  ;;  %1797 = vst.msk [vmem:[#allocation2 + $0xc0] sm:$0xf] %vm1748_vm3, %v1712_v5  ;;  %v1738_v8 = vpack.c.bf16 %v1654_v3, %v1654_v3 }
  0xd9   :  { %v1388_v59 = vadd.f32 %v5835_v57, %v1387_v56  ;;  %v1493_v15 = vadd.f32 %v5835_v57, %v1492_v11  ;;  %v2179_v53 = vand.u32 %v2172_v46, %v5798_v33  ;;  %5335 = vst [vmem:[#allocation9 + $0x20] sm:$0xff] %v5334_v47  }
  0xda   :  { %1822 = vst.msk [vmem:[#allocation2 + $0x124] sm:$0xf] %vm1748_vm3, %v1737_v50 }
  0xdb   :  { %v1587_v1 = vmax.f32 %v1388_v59, 0.0  ;;  %v1629_v21 = vmax.f32 %v1493_v15, 0.0  ;;  %2186 = vmatpush.bf16.msrb.mxu1 %v2179_v53  ;;  %v1526_v59 = vadd.f32 %v5835_v57, %v1525_v52  ;;  %v1557_v14 = vpop.f32.mrf.mxu3  ;;  %1823 = vst.msk [vmem:[#allocation2 + $0x128] sm:$0xf] %vm1748_vm3, %v1738_v8 }
  0xdc   :  { %v1558_v20 = vadd.f32 %v5835_v57, %v1557_v14 }
  0xdd   :  { %v1671_v9 = vpack.c.bf16 %v1587_v1, %v1587_v1  ;;  %v1713_v26 = vpack.c.bf16 %v1629_v21, %v1629_v21  ;;  %v1642_v1 = vmax.f32 %v1526_v59, 0.0 }
  0xde   :  { %v1655_v27 = vmax.f32 %v1558_v20, 0.0 }
  0xdf   :  { %1756 = vst.msk [vmem:[#allocation2 + $0x1c] sm:$0xf] %vm1748_vm3, %v1671_v9  ;;  %2187 = vmatpush.bf16.msrb.mxu1 %v5150_v62  ;;  %v1726_v6 = vpack.c.bf16 %v1642_v1, %v1642_v1  ;;  %v5149_v9 = vld [vmem:[%s6570_s2 + $0x78] sm:$0xff]  ;;  %v1527_v11 = vpop.f32.mrf.mxu2 }
  0xe0   :  { %v1390_v17 = vpop.f32.mrf.mxu0  ;;  %v1495_v31 = vpop.f32.mrf.mxu1  ;;  %1798 = vst.msk [vmem:[#allocation2 + $0xc4] sm:$0xf] %vm1748_vm3, %v1713_v26  ;;  %v1528_v19 = vadd.f32 %v5835_v57, %v1527_v11 }
  0xe1   :  { %v1391_v18 = vadd.f32 %v5835_v57, %v1390_v17  ;;  %v1496_v38 = vadd.f32 %v5835_v57, %v1495_v31  ;;  %1811 = vst.msk [vmem:[#allocation2 + $0xf8] sm:$0xf] %vm1748_vm3, %v1726_v6 }
  0xe2   :  { %v1643_v26 = vmax.f32 %v1528_v19, 0.0 }
  0xe3   :  { %v1588_v22 = vmax.f32 %v1391_v18, 0.0  ;;  %1429 = vmatmul.bf16.gmra.mxu0 %v5092_v12  ;;  %v1630_v45 = vmax.f32 %v1496_v38, 0.0  ;;  %v4103_v12 = vld [vmem:[%s6574_s6 + $0x10] sm:$0x1]  ;;  %2188 = vmatpush.bf16.msrb.mxu1 %v5149_v9  ;;  %v4454_v18 = vld [vmem:[%s6570_s2 + $0x9c] sm:$0x3]  ;;  %v1560_v39 = vpop.f32.mrf.mxu3 }
  0xe4   :  { %v389_v16 = vunpack.c.l.bf16 %v4103_v12  ;;  %v1727_v32 = vpack.c.bf16 %v1643_v26, %v1643_v26  ;;  %v1561_v43 = vadd.f32 %v5835_v57, %v1560_v39 }
  0xe5   :  { %v1672_v29 = vpack.c.bf16 %v1588_v22, %v1588_v22  ;;  %v1714_v51 = vpack.c.bf16 %v1630_v45, %v1630_v45  ;;  %v2220_v22 = vunpack.c.l.b16 %v4454_v18  ;;  %v5153_v45 = vld [vmem:[%s6570_s2 + $0x94] sm:$0xff] }
  0xe6   :  { %v5139_v34 = vld [vmem:[#allocation2 + $0x18] sm:$0xff]  ;;  %v395_v24 = vsel %vm43_vm0, %v389_v16, %v5564_v2  ;;  %1812 = vst.msk [vmem:[#allocation2 + $0xfc] sm:$0xf] %vm1748_vm3, %v1727_v32  ;;  %v1656_v49 = vmax.f32 %v1561_v43, 0.0 }
  0xe7   :  { %1757 = vst.msk [vmem:[#allocation2 + $0x20] sm:$0xf] %vm1748_vm3, %v1672_v29  ;;  %4395 = vmatmul.msk.bf16.vlgmr.msra.gmra.mxu1 %vm1864_vm4, %v5139_v34  ;;  %v2223_v29 = vpack.c.b16 %v2220_v22, %v2220_v22  ;;  %v5339_v30 = vpack.c.bf16 %v5564_v2, %v395_v24  ;;  %v1739_v34 = vpack.c.bf16 %v1655_v27, %v1655_v27  ;;  %v1530_v36 = vpop.f32.mrf.mxu2  ;;  %v5095_v24 = vld [vmem:[#allocation9 + $0x20] sm:$0xff] }
  0xe8   :  { %v1392_v40 = vpop.f32.mrf.mxu0  ;;  %v1497_v56 = vpop.f32.mrf.mxu1  ;;  %1799 = vst.msk [vmem:[#allocation2 + $0xc8] sm:$0xf] %vm1748_vm3, %v1714_v51  ;;  %v1740_v53 = vpack.c.bf16 %v1656_v49, %v1656_v49 }
  0xe9   :  { %v1393_v42 = vadd.f32 %v5835_v57, %v1392_v40  ;;  %v1498_v61 = vadd.f32 %v5835_v57, %v1497_v56  ;;  %v2230_v37 = vand.u32 %v2223_v29, %v5798_v33  ;;  %5340 = vst [vmem:[#allocation9 + $0x128] sm:$0xff] %v5339_v30  }
  0xea   :  { %1824 = vst.msk [vmem:[#allocation2 + $0x12c] sm:$0xf] %vm1748_vm3, %v1739_v34 }
  0xeb   :  { %v1589_v48 = vmax.f32 %v1393_v42, 0.0  ;;  %v1631_v4 = vmax.f32 %v1498_v61, 0.0  ;;  %2237 = vmatpush.bf16.msrb.mxu2 %v2230_v37  ;;  %v1531_v42 = vadd.f32 %v5835_v57, %v1530_v36  ;;  %v1562_v60 = vpop.f32.mrf.mxu3  ;;  %1825 = vst.msk [vmem:[#allocation2 + $0x130] sm:$0xf] %vm1748_vm3, %v1740_v53 }
  0xec   :  { %v1563_v3 = vadd.f32 %v5835_v57, %v1562_v60 }
  0xed   :  { %v1673_v54 = vpack.c.bf16 %v1589_v48, %v1589_v48  ;;  %v1715_v10 = vpack.c.bf16 %v1631_v4, %v1631_v4  ;;  %v1644_v48 = vmax.f32 %v1531_v42, 0.0 }
  0xee   :  { %v1657_v11 = vmax.f32 %v1563_v3, 0.0 }
  0xef   :  { %1758 = vst.msk [vmem:[#allocation2 + $0x24] sm:$0xf] %vm1748_vm3, %v1673_v54  ;;  %2238 = vmatpush.bf16.msrb.mxu2 %v5153_v45  ;;  %v1728_v52 = vpack.c.bf16 %v1644_v48, %v1644_v48  ;;  %v5152_v54 = vld [vmem:[%s6570_s2 + $0x8c] sm:$0xff]  ;;  %v1532_v56 = vpop.f32.mrf.mxu2 }
  0xf0   :  { %v1395_v63 = vpop.f32.mrf.mxu0  ;;  %v1500_v15 = vpop.f32.mrf.mxu1  ;;  %1800 = vst.msk [vmem:[#allocation2 + $0xcc] sm:$0xf] %vm1748_vm3, %v1715_v10  ;;  %v1533_v1 = vadd.f32 %v5835_v57, %v1532_v56 }
  0xf1   :  { %v1396_v0 = vadd.f32 %v5835_v57, %v1395_v63  ;;  %v1501_v21 = vadd.f32 %v5835_v57, %v1500_v15  ;;  %1813 = vst.msk [vmem:[#allocation2 + $0x100] sm:$0xf] %vm1748_vm3, %v1728_v52 }
  0xf2   :  { %v1645_v10 = vmax.f32 %v1533_v1, 0.0  ;;  %v5096_v1 = vld [vmem:[#allocation9 + $0x128] sm:$0xff] }
  0xf3   :  { %v1590_v5 = vmax.f32 %v1396_v0, 0.0  ;;  %1434 = vmatmul.bf16.gmra.mxu0 %v5093_v58  ;;  %v1632_v28 = vmax.f32 %v1501_v21, 0.0  ;;  %v4104_v58 = vld [vmem:[%s6574_s6 + $0x11] sm:$0x1]  ;;  %2239 = vmatpush.bf16.msrb.mxu2 %v5152_v54  ;;  %v1565_v22 = vpop.f32.mrf.mxu3 }
  0xf4   :  { %v411_v62 = vunpack.c.l.bf16 %v4104_v58  ;;  %v4472_v0 = vld [vmem:[%s6570_s2 + $0xb0] sm:$0x3]  ;;  %v1729_v16 = vpack.c.bf16 %v1645_v10, %v1645_v10  ;;  %v1566_v26 = vadd.f32 %v5835_v57, %v1565_v22 }
  0xf5   :  { %v1674_v13 = vpack.c.bf16 %v1590_v5, %v1590_v5  ;;  %v1716_v35 = vpack.c.bf16 %v1632_v28, %v1632_v28  ;;  %v2271_v5 = vunpack.c.l.b16 %v4472_v0  ;;  %v5156_v28 = vld [vmem:[%s6570_s2 + $0xa8] sm:$0xff] }
  0xf6   :  { %v5142_v17 = vld [vmem:[#allocation2 + $0x20] sm:$0xff]  ;;  %v417_v8 = vsel %vm43_vm0, %v411_v62, %v5564_v2  ;;  %1814 = vst.msk [vmem:[#allocation2 + $0x104] sm:$0xf] %vm1748_vm3, %v1729_v16  ;;  %v1658_v32 = vmax.f32 %v1566_v26, 0.0 }
  0xf7   :  { %1759 = vst.msk [vmem:[#allocation2 + $0x28] sm:$0xf] %vm1748_vm3, %v1674_v13  ;;  %4413 = vmatmul.msk.bf16.vlgmr.msra.gmra.mxu2 %vm1864_vm4, %v5142_v17  ;;  %v2274_v13 = vpack.c.b16 %v2271_v5, %v2271_v5  ;;  %v5344_v14 = vpack.c.bf16 %v5564_v2, %v417_v8  ;;  %v1741_v17 = vpack.c.bf16 %v1657_v11, %v1657_v11  ;;  %v1535_v19 = vpop.f32.mrf.mxu2  ;;  %v5159_v5 = vld [vmem:[%s6570_s2 + $0xbc] sm:$0xff] }
  0xf8   :  { %v1397_v23 = vpop.f32.mrf.mxu0  ;;  %v1502_v40 = vpop.f32.mrf.mxu1  ;;  %1801 = vst.msk [vmem:[#allocation2 + $0xd0] sm:$0xf] %vm1748_vm3, %v1716_v35  ;;  %v1742_v37 = vpack.c.bf16 %v1658_v32, %v1658_v32 }
  0xf9   :  { %v1398_v25 = vadd.f32 %v5835_v57, %v1397_v23  ;;  %v1503_v44 = vadd.f32 %v5835_v57, %v1502_v40  ;;  %v2281_v20 = vand.u32 %v2274_v13, %v5798_v33  ;;  %5345 = vst [vmem:[#allocation9 + $0x110] sm:$0xff] %v5344_v14   ;;  %v5158_v14 = vld [vmem:[%s6570_s2 + $0xb4] sm:$0xff] }
  0xfa   :  { %1826 = vst.msk [vmem:[#allocation2 + $0x134] sm:$0xf] %vm1748_vm3, %v1741_v17 }
  0xfb   :  { %v1591_v31 = vmax.f32 %v1398_v25, 0.0  ;;  %v1633_v50 = vmax.f32 %v1503_v44, 0.0  ;;  %2288 = vmatpush.bf16.msrb.mxu3 %v2281_v20  ;;  %v1536_v25 = vadd.f32 %v5835_v57, %v1535_v19  ;;  %v1567_v43 = vpop.f32.mrf.mxu3  ;;  %1827 = vst.msk [vmem:[#allocation2 + $0x138] sm:$0xf] %vm1748_vm3, %v1742_v37 }
  0xfc   :  { %v1568_v48 = vadd.f32 %v5835_v57, %v1567_v43 }
  0xfd   :  { %v1675_v38 = vpack.c.bf16 %v1591_v31, %v1591_v31  ;;  %v1717_v55 = vpack.c.bf16 %v1633_v50, %v1633_v50  ;;  %v1646_v31 = vmax.f32 %v1536_v25, 0.0 }
  0xff   :  { %1760 = vst.msk [vmem:[#allocation2 + $0x2c] sm:$0xf] %vm1748_vm3, %v1675_v38  ;;  %2289 = vmatpush.bf16.msrb.mxu3 %v5156_v28  ;;  %v1730_v36 = vpack.c.bf16 %v1646_v31, %v1646_v31  ;;  %v5155_v38 = vld [vmem:[%s6570_s2 + $0xa0] sm:$0xff]  ;;  %v1537_v40 = vpop.f32.mrf.mxu2 }
 0x100   :  { %v1400_v46 = vpop.f32.mrf.mxu0  ;;  %v1505_v61 = vpop.f32.mrf.mxu1  ;;  %1802 = vst.msk [vmem:[#allocation2 + $0xd4] sm:$0xf] %vm1748_vm3, %v1717_v55  ;;  %v1659_v55 = vmax.f32 %v1568_v48, 0.0  ;;  %v4107_v48 = vld [vmem:[%s6574_s6 + $0x14] sm:$0x1] }
 0x101   :  { %v1401_v47 = vadd.f32 %v5835_v57, %v1400_v46  ;;  %v1506_v4 = vadd.f32 %v5835_v57, %v1505_v61  ;;  %1815 = vst.msk [vmem:[#allocation2 + $0x108] sm:$0xf] %vm1748_vm3, %v1730_v36  ;;  %v4490_v46 = vld [vmem:[%s6570_s2 + $0xc4] sm:$0x3] }
 0x102   :  { %v2322_v49 = vunpack.c.l.b16 %v4490_v46  ;;  %v1743_v60 = vpack.c.bf16 %v1659_v55, %v1659_v55 }
 0x103   :  { %v1592_v51 = vmax.f32 %v1401_v47, 0.0  ;;  %1439 = vmatmul.bf16.gmra.mxu0 %v5094_v41  ;;  %v1634_v12 = vmax.f32 %v1506_v4, 0.0  ;;  %v4105_v41 = vld [vmem:[%s6574_s6 + $0x12] sm:$0x1]  ;;  %2290 = vmatpush.bf16.msrb.mxu3 %v5155_v38  ;;  %v1538_v47 = vadd.f32 %v5835_v57, %v1537_v40  ;;  %v1570_v0 = vpop.f32.mrf.mxu3 }
 0x104   :  { %v433_v44 = vunpack.c.l.bf16 %v4105_v41  ;;  %v2325_v56 = vpack.c.b16 %v2322_v49, %v2322_v49  ;;  %1828 = vst.msk [vmem:[#allocation2 + $0x13c] sm:$0xf] %vm1748_vm3, %v1743_v60  ;;  %v1571_v4 = vadd.f32 %v5835_v57, %v1570_v0  ;;  %v5162_v41 = vld [vmem:[%s6570_s2 + $0xd0] sm:$0xff] }
 0x105   :  { %v1676_v59 = vpack.c.bf16 %v1592_v51, %v1592_v51  ;;  %v1718_v18 = vpack.c.bf16 %v1634_v12, %v1634_v12  ;;  %v1647_v54 = vmax.f32 %v1538_v47, 0.0  ;;  %v5161_v47 = vld [vmem:[%s6570_s2 + $0xc8] sm:$0xff] }
 0x106   :  { %v5145_v63 = vld [vmem:[#allocation2 + $0x28] sm:$0xff]  ;;  %v439_v50 = vsel %vm43_vm0, %v433_v44, %v5564_v2  ;;  %v2332_v61 = vand.u32 %v2325_v56, %v5798_v33  ;;  %v1660_v10 = vmax.f32 %v1571_v4, 0.0 }
 0x107   :  { %1761 = vst.msk [vmem:[#allocation2 + $0x30] sm:$0xf] %vm1748_vm3, %v1676_v59  ;;  %4431 = vmatmul.msk.bf16.vlgmr.msra.gmra.mxu3 %vm1864_vm4, %v5145_v63  ;;  %v5349_v52 = vpack.c.bf16 %v5564_v2, %v439_v50  ;;  %v1731_v59 = vpack.c.bf16 %v1647_v54, %v1647_v54  ;;  %v1540_v62 = vpop.f32.mrf.mxu2  ;;  %v477_v50 = vunpack.c.l.bf16 %v4107_v48 }
 0x108   :  { %v1402_v6 = vpop.f32.mrf.mxu0  ;;  %v1507_v23 = vpop.f32.mrf.mxu1  ;;  %1803 = vst.msk [vmem:[#allocation2 + $0xd8] sm:$0xf] %vm1748_vm3, %v1718_v18  ;;  %2339 = vmatpush.bf16.msra.mxu1 %v2332_v61  ;;  %v1541_v3 = vadd.f32 %v5835_v57, %v1540_v62  ;;  %v1744_v13 = vpack.c.bf16 %v1660_v10, %v1660_v10  ;;  %v6151_v10 = vld [vmem:[%s6571_s3] ss:$0 sm:$0xff] }
 0x109   :  { %v1403_v9 = vadd.f32 %v5835_v57, %v1402_v6  ;;  %v1508_v27 = vadd.f32 %v5835_v57, %v1507_v23  ;;  %5350 = vst [vmem:[#allocation9 + $0x8] sm:$0xff] %v5349_v52   ;;  %v483_v56 = vsel %vm43_vm0, %v477_v50, %v5564_v2 }
 0x10a   :  { %1816 = vst.msk [vmem:[#allocation2 + $0x10c] sm:$0xf] %vm1748_vm3, %v1731_v59  ;;  %v5359_v59 = vpack.c.bf16 %v5564_v2, %v483_v56 }
 0x10b   :  { %v1593_v15 = vmax.f32 %v1403_v9, 0.0  ;;  %v1635_v34 = vmax.f32 %v1508_v27, 0.0  ;;  %v1648_v9 = vmax.f32 %v1541_v3, 0.0  ;;  %v1572_v17 = vpop.f32.mrf.mxu3  ;;  %1829 = vst.msk [vmem:[#allocation2 + $0x140] sm:$0xf] %vm1748_vm3, %v1744_v13 }
 0x10c   :  { %2340 = vmatpush.bf16.msra.mxu1 %v5159_v5  ;;  %v1573_v23 = vadd.f32 %v5835_v57, %v1572_v17  ;;  %5360 = vst [vmem:[#allocation9 + $0xa8] sm:$0xff] %v5359_v59  }
 0x10d   :  { %v1677_v21 = vpack.c.bf16 %v1593_v15, %v1593_v15  ;;  %v1719_v39 = vpack.c.bf16 %v1635_v34, %v1635_v34  ;;  %v1732_v12 = vpack.c.bf16 %v1648_v9, %v1648_v9  ;;  %v4106_v15 = vld [vmem:[%s6574_s6 + $0x13] sm:$0x1] }
 0x10e   :  { %v455_v18 = vunpack.c.l.bf16 %v4106_v15  ;;  %v6161_v15 = vld [vmem:[%s6569_s1] ss:$0 sm:$0xff] }
 0x10f   :  { %1762 = vst.msk [vmem:[#allocation2 + $0x34] sm:$0xf] %vm1748_vm3, %v1677_v21  ;;  %v1542_v20 = vpop.f32.mrf.mxu2  ;;  %v4508_v21 = vld [vmem:[%s6570_s2 + $0xd8] sm:$0x3] }
 0x110   :  { %v1405_v29 = vpop.f32.mrf.mxu0  ;;  %1804 = vst.msk [vmem:[#allocation2 + $0xdc] sm:$0xf] %vm1748_vm3, %v1719_v39  ;;  %2341 = vmatpush.bf16.msra.mxu1 %v5158_v14  ;;  %v1543_v22 = vadd.f32 %v5835_v57, %v1542_v20  ;;  %v461_v25 = vsel %vm43_vm0, %v455_v18, %v5564_v2  ;;  %v5097_v39 = vld [vmem:[#allocation9 + $0x110] sm:$0xff]  ;;  %v5098_v7 = vld [vmem:[#allocation9 + $0x8] sm:$0xff]  ;;  %vm4081_vm0 = vcmask 64568  }
 0x111   :  { %v1406_v30 = vadd.f32 %v5835_v57, %v1405_v29  ;;  %1817 = vst.msk [vmem:[#allocation2 + $0x110] sm:$0xf] %vm1748_vm3, %v1732_v12  ;;  %v5354_v27 = vpack.c.bf16 %v5564_v2, %v461_v25  ;;  %v5165_v2 = vld [vmem:[%s6570_s2 + $0xe4] sm:$0xff]  ;;  %v4544_v12 = vld [vmem:[%s6570_s2 + $0x100] sm:$0x3]  ;;  %v5168_v25 = vld [vmem:[%s6570_s2 + $0xf8] sm:$0xff] }
 0x112   :  { %v1649_v29 = vmax.f32 %v1543_v22, 0.0  ;;  %v2475_v13 = vunpack.c.l.b16 %v4544_v12 }
 0x113   :  { %v1594_v35 = vmax.f32 %v1406_v30, 0.0  ;;  %1444 = vmatmul.bf16.gmra.mxu0 %v5095_v24  ;;  %v2373_v24 = vunpack.c.l.b16 %v4508_v21  ;;  %v1661_v30 = vmax.f32 %v1573_v23, 0.0  ;;  %5355 = vst [vmem:[#allocation9 + $0x98] sm:$0xff] %v5354_v27   ;;  %v1575_v38 = vpop.f32.mrf.mxu3 }
 0x114   :  { %v1733_v34 = vpack.c.bf16 %v1649_v29, %v1649_v29  ;;  %v1576_v40 = vadd.f32 %v5835_v57, %v1575_v38  ;;  %v2478_v17 = vpack.c.b16 %v2475_v13, %v2475_v13  ;;  %v5167_v29 = vld [vmem:[%s6570_s2 + $0xf0] sm:$0xff] }
 0x115   :  { %v1678_v42 = vpack.c.bf16 %v1594_v35, %v1594_v35  ;;  %v2376_v31 = vpack.c.b16 %v2373_v24, %v2373_v24  ;;  %v1745_v35 = vpack.c.bf16 %v1661_v30, %v1661_v30 }
 0x116   :  { %v5148_v45 = vld [vmem:[#allocation2 + $0x30] sm:$0xff]  ;;  %1818 = vst.msk [vmem:[#allocation2 + $0x114] sm:$0xf] %vm1748_vm3, %v1733_v34  ;;  %v1662_v44 = vmax.f32 %v1576_v40, 0.0  ;;  %v2485_v21 = vand.u32 %v2478_v17, %v5798_v33 }
 0x117   :  { %1763 = vst.msk [vmem:[#allocation2 + $0x38] sm:$0xf] %vm1748_vm3, %v1678_v42  ;;  %4449 = vmatmul.msk.bf16.vlgmr.msrb.gmra.mxu1 %vm1864_vm4, %v5148_v45  ;;  %v2383_v36 = vand.u32 %v2376_v31, %v5798_v33 }
 0x118   :  { %v1407_v51 = vpop.f32.mrf.mxu0  ;;  %1830 = vst.msk [vmem:[#allocation2 + $0x144] sm:$0xf] %vm1748_vm3, %v1745_v35  ;;  %v1746_v46 = vpack.c.bf16 %v1662_v44, %v1662_v44  ;;  %2492 = vmatpush.bf16.msrb.mxu1 %v2485_v21  ;;  %v5100_v44 = vld [vmem:[#allocation9 + $0xa8] sm:$0xff] }
 0x119   :  { %v1408_v53 = vadd.f32 %v5835_v57, %v1407_v51  ;;  %2390 = vmatpush.bf16.msra.mxu2 %v2383_v36 }
 0x11a   :  { %1831 = vst.msk [vmem:[#allocation2 + $0x148] sm:$0xf] %vm1748_vm3, %v1746_v46  ;;  %v5099_v24 = vld [vmem:[#allocation9 + $0x98] sm:$0xff] }
 0x11b   :  { %v1595_v58 = vmax.f32 %v1408_v53, 0.0  ;;  %v1577_v52 = vpop.f32.mrf.mxu3  ;;  %v4526_v53 = vld [vmem:[%s6570_s2 + $0xec] sm:$0x3] }
 0x11c   :  { %v1578_v54 = vadd.f32 %v5835_v57, %v1577_v52  ;;  %v2424_v55 = vunpack.c.l.b16 %v4526_v53  ;;  %2493 = vmatpush.bf16.msrb.mxu1 %v5168_v25 }
 0x11d   :  { %v1679_v63 = vpack.c.bf16 %v1595_v58, %v1595_v58  ;;  %2391 = vmatpush.bf16.msra.mxu2 %v5162_v41 }
 0x11e   :  { %v1663_v61 = vmax.f32 %v1578_v54, 0.0  ;;  %v2427_v62 = vpack.c.b16 %v2424_v55, %v2424_v55  ;;  %v4580_v54 = vld [vmem:[%s6570_s2 + $0x128] sm:$0x3] }
 0x11f   :  { %1764 = vst.msk [vmem:[#allocation2 + $0x3c] sm:$0xf] %vm1748_vm3, %v1679_v63  ;;  %v2577_v55 = vunpack.c.l.b16 %v4580_v54 }
 0x120   :  { %v1410_v6 = vpop.f32.mrf.mxu0  ;;  %v1747_v0 = vpack.c.bf16 %v1663_v61, %v1663_v61  ;;  %2494 = vmatpush.bf16.msrb.mxu1 %v5167_v29 }
 0x121   :  { %v1411_v8 = vadd.f32 %v5835_v57, %v1410_v6  ;;  %2392 = vmatpush.bf16.msra.mxu2 %v5161_v47  ;;  %v2580_v59 = vpack.c.b16 %v2577_v55, %v2577_v55 }
 0x122   :  { %1832 = vst.msk [vmem:[#allocation2 + $0x14c] sm:$0xf] %vm1748_vm3, %v1747_v0 }
 0x123   :  { %v1596_v11 = vmax.f32 %v1411_v8, 0.0  ;;  %1449 = vmatmul.bf16.gmra.mxu0 %v5096_v1  ;;  %v2434_v1 = vand.u32 %v2427_v62, %v5798_v33  ;;  %v5164_v8 = vld [vmem:[%s6570_s2 + $0xdc] sm:$0xff]  ;;  %v2587_v61 = vand.u32 %v2580_v59, %v5798_v33 }
 0x125   :  { %v1680_v16 = vpack.c.bf16 %v1596_v11, %v1596_v11  ;;  %2441 = vmatpush.bf16.msra.mxu3 %v2434_v1 }
 0x126   :  { %v5151_v19 = vld [vmem:[#allocation2 + $0x38] sm:$0xff] }
 0x127   :  { %1765 = vst.msk [vmem:[#allocation2 + $0x40] sm:$0xf] %vm1748_vm3, %v1680_v16  ;;  %4467 = vmatmul.msk.bf16.vlgmr.msrb.gmra.mxu2 %vm1864_vm4, %v5151_v19 }
 0x128   :  { %v1412_v26 = vpop.f32.mrf.mxu0 }
 0x129   :  { %v1413_v28 = vadd.f32 %v5835_v57, %v1412_v26  ;;  %2442 = vmatpush.bf16.msra.mxu3 %v5165_v2  ;;  %v5173_v2 = vld [vmem:[%s6570_s2 + $0x118] sm:$0xff] }
 0x12b   :  { %v1597_v32 = vmax.f32 %v1413_v28, 0.0 }
 0x12d   :  { %v1681_v37 = vpack.c.bf16 %v1597_v32, %v1597_v32  ;;  %2443 = vmatpush.bf16.msra.mxu3 %v5164_v8  ;;  %v4562_v32 = vld [vmem:[%s6570_s2 + $0x114] sm:$0x3] }
 0x12e   :  { %v2526_v34 = vunpack.c.l.b16 %v4562_v32 }
 0x12f   :  { %1766 = vst.msk [vmem:[#allocation2 + $0x44] sm:$0xf] %vm1748_vm3, %v1681_v37 }
 0x130   :  { %v1415_v42 = vpop.f32.mrf.mxu0  ;;  %v2529_v37 = vpack.c.b16 %v2526_v34, %v2526_v34 }
 0x131   :  { %v1416_v43 = vadd.f32 %v5835_v57, %v1415_v42 }
 0x132   :  { %v2536_v40 = vand.u32 %v2529_v37, %v5798_v33 }
 0x133   :  { %v1598_v45 = vmax.f32 %v1416_v43, 0.0  ;;  %1454 = vmatmul.bf16.gmra.mxu0 %v5097_v39 }
 0x134   :  { %2543 = vmatpush.bf16.msrb.mxu2 %v2536_v40 }
 0x135   :  { %v1682_v49 = vpack.c.bf16 %v1598_v45, %v1598_v45  ;;  %v5171_v45 = vld [vmem:[%s6570_s2 + $0x10c] sm:$0xff] }
 0x136   :  { %v5154_v51 = vld [vmem:[#allocation2 + $0x40] sm:$0xff] }
 0x137   :  { %1767 = vst.msk [vmem:[#allocation2 + $0x48] sm:$0xf] %vm1748_vm3, %v1682_v49  ;;  %4485 = vmatmul.msk.bf16.vlgmr.msrb.gmra.mxu3 %vm1864_vm4, %v5154_v51  ;;  %v5170_v49 = vld [vmem:[%s6570_s2 + $0x104] sm:$0xff] }
 0x138   :  { %v1417_v58 = vpop.f32.mrf.mxu0  ;;  %2544 = vmatpush.bf16.msrb.mxu2 %v5171_v45  ;;  %2594 = vmatpush.bf16.msrb.mxu3 %v2587_v61 }
 0x139   :  { %v1418_v60 = vadd.f32 %v5835_v57, %v1417_v58 }
 0x13b   :  { %v1599_v63 = vmax.f32 %v1418_v60, 0.0 }
 0x13c   :  { %2545 = vmatpush.bf16.msrb.mxu2 %v5170_v49 }
 0x13d   :  { %v1683_v3 = vpack.c.bf16 %v1599_v63, %v1599_v63  ;;  %v5174_v63 = vld [vmem:[%s6570_s2 + $0x120] sm:$0xff] }
 0x13e   :  { %2595 = vmatpush.bf16.msrb.mxu3 %v5174_v63 }
 0x13f   :  { %1768 = vst.msk [vmem:[#allocation2 + $0x4c] sm:$0xf] %vm1748_vm3, %v1683_v3 }
 0x140   :  { %v1420_v4 = vpop.f32.mrf.mxu0 }
 0x141   :  { %v1421_v5 = vadd.f32 %v5835_v57, %v1420_v4  ;;  %v1884_v57 = vpop.f32.mrf.mxu1 }
 0x142   :  { %v1889_v18 = vadd.f32 %v6151_v10, %v1884_v57  ;;  %2596 = vmatpush.bf16.msrb.mxu3 %v5173_v2 }
 0x143   :  { %v1600_v6 = vmax.f32 %v1421_v5, 0.0  ;;  %1459 = vmatmul.bf16.gmra.mxu0 %v5098_v7 }
 0x145   :  { %v1684_v9 = vpack.c.bf16 %v1600_v6, %v1600_v6  ;;  %v4598_v6 = vld [vmem:[%s6570_s2 + $0x13c] sm:$0x3] }
 0x146   :  { %v5157_v11 = vld [vmem:[#allocation2 + $0x48] sm:$0xff]  ;;  %v2628_v8 = vunpack.c.l.b16 %v4598_v6 }
 0x147   :  { %1769 = vst.msk [vmem:[#allocation2 + $0x50] sm:$0xf] %vm1748_vm3, %v1684_v9  ;;  %4503 = vmatmul.msk.bf16.vlgmr.msra.gmra.mxu1 %vm1864_vm4, %v5157_v11 }
 0x148   :  { %v1422_v14 = vpop.f32.mrf.mxu0  ;;  %v2631_v12 = vpack.c.b16 %v2628_v8, %v2628_v8 }
 0x149   :  { %v1423_v16 = vadd.f32 %v6161_v15, %v1422_v14  ;;  %v6181_v42 = vpop.f32.mrf.mxu1 }
 0x14a   :  { %v1935_v20 = vpop.f32.mrf.mxu2  ;;  %v2638_v14 = vand.u32 %v2631_v12, %v5798_v33 }
 0x14b   :  { %v1601_v19 = vmax.f32 %v1423_v16, 0.0  ;;  %v1940_v22 = vadd.f32 %v1935_v20, %v1889_v18  ;;  %v5177_v18 = vld [vmem:[%s6570_s2 + $0x134] sm:$0xff] }
 0x14c   :  { %2645 = vmatpush.bf16.msra.mxu1 %v2638_v14 }
 0x14d   :  { %v1685_v23 = vpack.c.bf16 %v1601_v19, %v1601_v19 }
 0x14f   :  { %1770 = vst.msk [vmem:[#allocation2 + $0x54] sm:$0xf] %vm1748_vm3, %v1685_v23  ;;  %v5176_v23 = vld [vmem:[%s6570_s2 + $0x12c] sm:$0xff] }
 0x150   :  { %v1425_v26 = vpop.f32.mrf.mxu0  ;;  %2646 = vmatpush.bf16.msra.mxu1 %v5177_v18 }
 0x151   :  { %v1426_v27 = vadd.f32 %v6161_v15, %v1425_v26  ;;  %v4616_v26 = vld [vmem:[%s6570_s2 + $0x150] sm:$0x3] }
 0x152   :  { %v6203_v3 = vpop.f32.mrf.mxu2 }
 0x153   :  { %v1602_v28 = vmax.f32 %v1426_v27, 0.0  ;;  %1464 = vmatmul.bf16.gmra.mxu0 %v5099_v24  ;;  %v2679_v27 = vunpack.c.l.b16 %v4616_v26 }
 0x154   :  { %2647 = vmatpush.bf16.msra.mxu1 %v5176_v23 }
 0x155   :  { %v1686_v30 = vpack.c.bf16 %v1602_v28, %v1602_v28 }
 0x156   :  { %v5160_v31 = vld [vmem:[#allocation2 + $0x50] sm:$0xff] }
 0x157   :  { %1771 = vst.msk [vmem:[#allocation2 + $0x58] sm:$0xf] %vm1748_vm3, %v1686_v30  ;;  %4521 = vmatmul.msk.bf16.vlgmr.msra.gmra.mxu2 %vm1864_vm4, %v5160_v31  ;;  %v2682_v30 = vpack.c.b16 %v2679_v27, %v2679_v27 }
 0x158   :  { %v1427_v35 = vpop.f32.mrf.mxu0 }
 0x159   :  { %v1428_v36 = vadd.f32 %v6161_v15, %v1427_v35  ;;  %v2689_v34 = vand.u32 %v2682_v30, %v5798_v33 }
 0x15a   :  { %v1986_v39 = vpop.f32.mrf.mxu3 }
 0x15b   :  { %v1603_v38 = vmax.f32 %v1428_v36, 0.0  ;;  %v1991_v41 = vadd.f32 %v1986_v39, %v1940_v22  ;;  %2696 = vmatpush.bf16.msra.mxu2 %v2689_v34 }
 0x15d   :  { %v1687_v43 = vpack.c.bf16 %v1603_v38, %v1603_v38  ;;  %v5180_v38 = vld [vmem:[%s6570_s2 + $0x148] sm:$0xff] }
 0x15f   :  { %1772 = vst.msk [vmem:[#allocation2 + $0x5c] sm:$0xf] %vm1748_vm3, %v1687_v43  ;;  %2697 = vmatpush.bf16.msra.mxu2 %v5180_v38  ;;  %v5179_v43 = vld [vmem:[%s6570_s2 + $0x140] sm:$0xff] }
 0x160   :  { %v1430_v46 = vpop.f32.mrf.mxu0 }
 0x161   :  { %v1431_v47 = vadd.f32 %v6161_v15, %v1430_v46 }
 0x162   :  { %v6220_v21 = vpop.f32.mrf.mxu3 }
 0x163   :  { %v1604_v48 = vmax.f32 %v1431_v47, 0.0  ;;  %1469 = vmatmul.bf16.gmra.mxu0 %v5100_v44  ;;  %2698 = vmatpush.bf16.msra.mxu2 %v5179_v43 }
 0x164   :  { %v2037_v51 = vpop.f32.mrf.mxu1 }
 0x165   :  { %v1688_v50 = vpack.c.bf16 %v1604_v48, %v1604_v48  ;;  %v2042_v52 = vadd.f32 %v2037_v51, %v1991_v41  ;;  %v4634_v48 = vld [vmem:[%s6570_s2 + $0x164] sm:$0x3] }
 0x166   :  { %v5163_v53 = vld [vmem:[#allocation2 + $0x58] sm:$0xff]  ;;  %v2730_v49 = vunpack.c.l.b16 %v4634_v48 }
 0x167   :  { %1773 = vst.msk [vmem:[#allocation2 + $0x60] sm:$0xf] %vm1748_vm3, %v1688_v50  ;;  %4539 = vmatmul.msk.bf16.vlgmr.msra.gmra.mxu3 %vm1864_vm4, %v5163_v53 }
 0x168   :  { %v1432_v56 = vpop.f32.mrf.mxu0 }
 0x169   :  { %v1433_v58 = vadd.f32 %v6161_v15, %v1432_v56  ;;  %v5183_v56 = vld [vmem:[%s6570_s2 + $0x15c] sm:$0xff] }
 0x16b   :  { %v1605_v60 = vmax.f32 %v1433_v58, 0.0 }
 0x16c   :  { %v2039_v36 = vpop.f32.mrf.mxu1 }
 0x16d   :  { %v1689_v62 = vpack.c.bf16 %v1605_v60, %v1605_v60 }
 0x16f   :  { %1774 = vst.msk [vmem:[#allocation2 + $0x64] sm:$0xf] %vm1748_vm3, %v1689_v62  ;;  %v5182_v62 = vld [vmem:[%s6570_s2 + $0x154] sm:$0xff] }
 0x170   :  { %v1435_v0 = vpop.f32.mrf.mxu0 }
 0x171   :  { %v1436_v1 = vadd.f32 %v6161_v15, %v1435_v0  ;;  %v1890_v0 = vadd.f32 %v6151_v10, %v6181_v42 }
 0x173   :  { %v1606_v7 = vmax.f32 %v1436_v1, 0.0 }
 0x175   :  { %v1690_v4 = vpack.c.bf16 %v1606_v7, %v1606_v7  ;;  %v4652_v7 = vld [vmem:[%s6570_s2 + $0x178] sm:$0x3] }
 0x176   :  { %v5166_v5 = vld [vmem:[#allocation2 + $0x60] sm:$0xff]  ;;  %v2781_v2 = vunpack.c.l.b16 %v4652_v7  ;;  %v4760_v7 = vld [vmem:[%s6570_s2 + $0x1f0] sm:$0x3] }
 0x177   :  { %1775 = vst.msk [vmem:[#allocation2 + $0x68] sm:$0xf] %vm1748_vm3, %v1690_v4  ;;  %4557 = vmatmul.msk.bf16.vlgmr.msrb.gmra.mxu1 %vm1864_vm4, %v5166_v5  ;;  %v1941_v4 = vadd.f32 %v6203_v3, %v1890_v0  ;;  %v5186_v3 = vld [vmem:[%s6570_s2 + $0x170] sm:$0xff] }
 0x178   :  { %v1437_v9 = vpop.f32.mrf.mxu0  ;;  %v2784_v8 = vpack.c.b16 %v2781_v2, %v2781_v2 }
 0x179   :  { %v1438_v11 = vadd.f32 %v6161_v15, %v1437_v9  ;;  %v1992_v9 = vadd.f32 %v6220_v21, %v1941_v4 }
 0x17a   :  { %v2088_v13 = vpop.f32.mrf.mxu2  ;;  %v2791_v42 = vand.u32 %v2784_v8, %v5798_v33 }
 0x17b   :  { %v1607_v57 = vmax.f32 %v1438_v11, 0.0  ;;  %v2093_v16 = vadd.f32 %v2088_v13, %v2042_v52  ;;  %v2733_v52 = vpack.c.b16 %v2730_v49, %v2730_v49  ;;  %v2043_v12 = vadd.f32 %v2039_v36, %v1992_v9 }
 0x17c   :  { %2798 = vmatpush.bf16.msrb.mxu1 %v2791_v42  ;;  %v3087_v9 = vunpack.c.l.b16 %v4760_v7  ;;  %v5198_v42 = vld [vmem:[%s6570_s2 + $0x1c0] sm:$0xff] }
 0x17d   :  { %v1691_v17 = vpack.c.bf16 %v1607_v57, %v1607_v57  ;;  %v2740_v54 = vand.u32 %v2733_v52, %v5798_v33 }
 0x17f   :  { %1776 = vst.msk [vmem:[#allocation2 + $0x6c] sm:$0xf] %vm1748_vm3, %v1691_v17  ;;  %2747 = vmatpush.bf16.msra.mxu3 %v2740_v54 }
 0x180   :  { %v1440_v19 = vpop.f32.mrf.mxu0  ;;  %2799 = vmatpush.bf16.msrb.mxu1 %v5186_v3 }
 0x181   :  { %v1441_v20 = vadd.f32 %v6161_v15, %v1440_v19 }
 0x182   :  { %v2090_v60 = vpop.f32.mrf.mxu2 }
 0x183   :  { %v1608_v22 = vmax.f32 %v1441_v20, 0.0  ;;  %2748 = vmatpush.bf16.msra.mxu3 %v5183_v56 }
 0x185   :  { %v1692_v24 = vpack.c.bf16 %v1608_v22, %v1608_v22 }
 0x186   :  { %v5169_v25 = vld [vmem:[#allocation2 + $0x68] sm:$0xff] }
 0x187   :  { %1777 = vst.msk [vmem:[#allocation2 + $0x70] sm:$0xf] %vm1748_vm3, %v1692_v24  ;;  %4575 = vmatmul.msk.bf16.vlgmr.msrb.gmra.mxu2 %vm1864_vm4, %v5169_v25  ;;  %2749 = vmatpush.bf16.msra.mxu3 %v5182_v62  ;;  %v5185_v24 = vld [vmem:[%s6570_s2 + $0x168] sm:$0xff] }
 0x188   :  { %v1442_v28 = vpop.f32.mrf.mxu0  ;;  %2800 = vmatpush.bf16.msrb.mxu1 %v5185_v24  ;;  %v5204_v24 = vld [vmem:[%s6570_s2 + $0x1e8] sm:$0xff] }
 0x189   :  { %v1443_v29 = vadd.f32 %v6161_v15, %v1442_v28  ;;  %v4670_v28 = vld [vmem:[%s6570_s2 + $0x18c] sm:$0x3] }
 0x18a   :  { %v2139_v32 = vpop.f32.mrf.mxu3  ;;  %v2832_v30 = vunpack.c.l.b16 %v4670_v28 }
 0x18b   :  { %v1609_v31 = vmax.f32 %v1443_v29, 0.0  ;;  %v2144_v35 = vadd.f32 %v2139_v32, %v2093_v16  ;;  %v2094_v16 = vadd.f32 %v2090_v60, %v2043_v12  ;;  %v4706_v29 = vld [vmem:[%s6570_s2 + $0x1b4] sm:$0x3] }
 0x18d   :  { %v1693_v37 = vpack.c.bf16 %v1609_v31, %v1609_v31  ;;  %v2934_v31 = vunpack.c.l.b16 %v4706_v29 }
 0x18f   :  { %1778 = vst.msk [vmem:[#allocation2 + $0x74] sm:$0xf] %vm1748_vm3, %v1693_v37  ;;  %v2937_v36 = vpack.c.b16 %v2934_v31, %v2934_v31 }
 0x190   :  { %v1445_v39 = vpop.f32.mrf.mxu0 }
 0x191   :  { %v1446_v40 = vadd.f32 %v6161_v15, %v1445_v39 }
 0x192   :  { %v2141_v13 = vpop.f32.mrf.mxu3 }
 0x193   :  { %v1610_v41 = vmax.f32 %v1446_v40, 0.0  ;;  %v2145_v18 = vadd.f32 %v2141_v13, %v2094_v16  ;;  %v2944_v40 = vand.u32 %v2937_v36, %v5798_v33  ;;  %v3090_v13 = vpack.c.b16 %v3087_v9, %v3087_v9  ;;  %v5191_v16 = vld [vmem:[%s6570_s2 + $0x190] sm:$0xff] }
 0x194   :  { %v2190_v45 = vpop.f32.mrf.mxu1 }
 0x195   :  { %v1694_v44 = vpack.c.bf16 %v1610_v41, %v1610_v41  ;;  %v2195_v46 = vadd.f32 %v2190_v45, %v2144_v35  ;;  %v2835_v35 = vpack.c.b16 %v2832_v30, %v2832_v30  ;;  %v5195_v45 = vld [vmem:[%s6570_s2 + $0x1ac] sm:$0xff] }
 0x196   :  { %v5172_v47 = vld [vmem:[#allocation2 + $0x70] sm:$0xff] }
 0x197   :  { %1779 = vst.msk [vmem:[#allocation2 + $0x78] sm:$0xf] %vm1748_vm3, %v1694_v44  ;;  %4593 = vmatmul.msk.bf16.vlgmr.msrb.gmra.mxu3 %vm1864_vm4, %v5172_v47  ;;  %v2842_v39 = vand.u32 %v2835_v35, %v5798_v33  ;;  %v5189_v44 = vld [vmem:[%s6570_s2 + $0x184] sm:$0xff] }
 0x198   :  { %v1447_v50 = vpop.f32.mrf.mxu0 }
 0x199   :  { %v1448_v51 = vadd.f32 %v6161_v15, %v1447_v50  ;;  %2849 = vmatpush.bf16.msrb.mxu2 %v2842_v39  ;;  %v5188_v50 = vld [vmem:[%s6570_s2 + $0x17c] sm:$0xff] }
 0x19b   :  { %v1611_v53 = vmax.f32 %v1448_v51, 0.0  ;;  %v5194_v51 = vld [vmem:[%s6570_s2 + $0x1a4] sm:$0xff] }
 0x19c   :  { %v2192_v17 = vpop.f32.mrf.mxu1 }
 0x19d   :  { %v1695_v55 = vpack.c.bf16 %v1611_v53, %v1611_v53  ;;  %v2196_v21 = vadd.f32 %v2192_v17, %v2145_v18  ;;  %2850 = vmatpush.bf16.msrb.mxu2 %v5189_v44  ;;  %v5197_v17 = vld [vmem:[%s6570_s2 + $0x1b8] sm:$0xff]  ;;  %v3097_v18 = vand.u32 %v3090_v13, %v5798_v33 }
 0x19f   :  { %1780 = vst.msk [vmem:[#allocation2 + $0x7c] sm:$0xf] %vm1748_vm3, %v1695_v55 }
 0x1a0   :  { %v1450_v58 = vpop.f32.mrf.mxu0 }
 0x1a1   :  { %v1451_v59 = vadd.f32 %v6161_v15, %v1450_v58  ;;  %2851 = vmatpush.bf16.msrb.mxu2 %v5188_v50  ;;  %v4688_v58 = vld [vmem:[%s6570_s2 + $0x1a0] sm:$0x3] }
 0x1a2   :  { %v2883_v60 = vunpack.c.l.b16 %v4688_v58 }
 0x1a3   :  { %v1612_v61 = vmax.f32 %v1451_v59, 0.0  ;;  %v4724_v59 = vld [vmem:[%s6570_s2 + $0x1c8] sm:$0x3] }
 0x1a4   :  { %v2886_v0 = vpack.c.b16 %v2883_v60, %v2883_v60  ;;  %v4868_v60 = vld [vmem:[%s6570_s2 + $0x268] sm:$0x3] }
 0x1a5   :  { %v1696_v63 = vpack.c.bf16 %v1612_v61, %v1612_v61  ;;  %v2985_v61 = vunpack.c.l.b16 %v4724_v59 }
 0x1a6   :  { %v5175_v1 = vld [vmem:[#allocation2 + $0x78] sm:$0xff]  ;;  %v2893_v4 = vand.u32 %v2886_v0, %v5798_v33 }
 0x1a7   :  { %1781 = vst.msk [vmem:[#allocation2 + $0x80] sm:$0xf] %vm1748_vm3, %v1696_v63  ;;  %4611 = vmatmul.msk.bf16.vlgmr.msra.gmra.mxu1 %vm1864_vm4, %v5175_v1  ;;  %v2988_v1 = vpack.c.b16 %v2985_v61, %v2985_v61  ;;  %v5212_v0 = vld [vmem:[%s6570_s2 + $0x21c] sm:$0xff] }
 0x1a8   :  { %v1452_v5 = vpop.f32.mrf.mxu0  ;;  %2951 = vmatpush.bf16.msra.mxu1 %v2944_v40  ;;  %2900 = vmatpush.bf16.msrb.mxu3 %v2893_v4 }
 0x1a9   :  { %v1453_v6 = vadd.f32 %v6161_v15, %v1452_v5  ;;  %v2995_v5 = vand.u32 %v2988_v1, %v5798_v33 }
 0x1aa   :  { %v2241_v10 = vpop.f32.mrf.mxu2 }
 0x1ab   :  { %v1613_v11 = vmax.f32 %v1453_v6, 0.0  ;;  %v2246_v57 = vadd.f32 %v2241_v10, %v2195_v46  ;;  %v5192_v10 = vld [vmem:[%s6570_s2 + $0x198] sm:$0xff] }
 0x1ac   :  { %2952 = vmatpush.bf16.msra.mxu1 %v5195_v45  ;;  %2901 = vmatpush.bf16.msrb.mxu3 %v5192_v10 }
 0x1ad   :  { %v1697_v14 = vpack.c.bf16 %v1613_v11, %v1613_v11 }
 0x1af   :  { %1782 = vst.msk [vmem:[#allocation2 + $0x84] sm:$0xf] %vm1748_vm3, %v1697_v14 }
 0x1b0   :  { %v1455_v19 = vpop.f32.mrf.mxu0  ;;  %2953 = vmatpush.bf16.msra.mxu1 %v5194_v51  ;;  %2902 = vmatpush.bf16.msrb.mxu3 %v5191_v16  ;;  %v5193_v51 = vld [vmem:[#allocation2 + $0xa8] sm:$0xff]  ;;  %v5202_v16 = vld [vmem:[#allocation2 + $0xc0] sm:$0xff] }
 0x1b1   :  { %v1456_v20 = vadd.f32 %v6161_v15, %v1455_v19 }
 0x1b2   :  { %v2243_v23 = vpop.f32.mrf.mxu2 }
 0x1b3   :  { %v1614_v22 = vmax.f32 %v1456_v20, 0.0  ;;  %v2247_v25 = vadd.f32 %v2243_v23, %v2196_v21  ;;  %v4742_v20 = vld [vmem:[%s6570_s2 + $0x1dc] sm:$0x3] }
 0x1b4   :  { %v3036_v21 = vunpack.c.l.b16 %v4742_v20  ;;  %v4886_v20 = vld [vmem:[%s6570_s2 + $0x27c] sm:$0x3] }
 0x1b5   :  { %v1698_v26 = vpack.c.bf16 %v1614_v22, %v1614_v22 }
 0x1b6   :  { %v5178_v27 = vld [vmem:[#allocation2 + $0x80] sm:$0xff] }
 0x1b7   :  { %1783 = vst.msk [vmem:[#allocation2 + $0x88] sm:$0xf] %vm1748_vm3, %v1698_v26  ;;  %4629 = vmatmul.msk.bf16.vlgmr.msra.gmra.mxu2 %vm1864_vm4, %v5178_v27  ;;  %v4778_v26 = vld [vmem:[%s6570_s2 + $0x204] sm:$0x3]  ;;  %v4814_v27 = vld [vmem:[%s6570_s2 + $0x22c] sm:$0x3] }
 0x1b8   :  { %v1457_v32 = vpop.f32.mrf.mxu0  ;;  %3002 = vmatpush.bf16.msra.mxu2 %v2995_v5  ;;  %v3138_v35 = vunpack.c.l.b16 %v4778_v26  ;;  %v3240_v36 = vunpack.c.l.b16 %v4814_v27  ;;  %v5215_v26 = vld [vmem:[%s6570_s2 + $0x230] sm:$0xff]  ;;  %v5221_v27 = vld [vmem:[%s6570_s2 + $0x258] sm:$0xff] }
 0x1b9   :  { %v1458_v34 = vadd.f32 %v6161_v15, %v1457_v32 }
 0x1ba   :  { %v2292_v38 = vpop.f32.mrf.mxu3  ;;  %v3141_v40 = vpack.c.b16 %v3138_v35, %v3138_v35 }
 0x1bb   :  { %v1615_v37 = vmax.f32 %v1458_v34, 0.0  ;;  %v2297_v41 = vadd.f32 %v2292_v38, %v2246_v57  ;;  %v5203_v34 = vld [vmem:[%s6570_s2 + $0x1e0] sm:$0xff] }
 0x1bc   :  { %3003 = vmatpush.bf16.msra.mxu2 %v5198_v42 }
 0x1bd   :  { %v1699_v43 = vpack.c.bf16 %v1615_v37, %v1615_v37  ;;  %v5201_v37 = vld [vmem:[%s6570_s2 + $0x1d4] sm:$0xff] }
 0x1bf   :  { %1784 = vst.msk [vmem:[#allocation2 + $0x8c] sm:$0xf] %vm1748_vm3, %v1699_v43  ;;  %v5200_v43 = vld [vmem:[%s6570_s2 + $0x1cc] sm:$0xff] }
 0x1c0   :  { %v1460_v46 = vpop.f32.mrf.mxu0  ;;  %3004 = vmatpush.bf16.msra.mxu2 %v5197_v17  ;;  %v5210_v17 = vld [vmem:[%s6570_s2 + $0x210] sm:$0xff] }
 0x1c1   :  { %v1461_v47 = vadd.f32 %v6161_v15, %v1460_v46 }
 0x1c2   :  { %v2294_v49 = vpop.f32.mrf.mxu3 }
 0x1c3   :  { %v1616_v48 = vmax.f32 %v1461_v47, 0.0  ;;  %v2298_v52 = vadd.f32 %v2294_v49, %v2247_v25  ;;  %v3039_v25 = vpack.c.b16 %v3036_v21, %v3036_v21  ;;  %v4922_v21 = vld [vmem:[%s6570_s2 + $0x2a4] sm:$0x3] }
 0x1c4   :  { %v2343_v54 = vpop.f32.mrf.mxu1 }
 0x1c5   :  { %v1700_v53 = vpack.c.bf16 %v1616_v48, %v1616_v48  ;;  %v2348_v55 = vadd.f32 %v2343_v54, %v2297_v41  ;;  %v3046_v30 = vand.u32 %v3039_v25, %v5798_v33  ;;  %v3243_v41 = vpack.c.b16 %v3240_v36, %v3240_v36  ;;  %v5207_v54 = vld [vmem:[%s6570_s2 + $0x1fc] sm:$0xff] }
 0x1c6   :  { %v5181_v56 = vld [vmem:[#allocation2 + $0x88] sm:$0xff]  ;;  %v3148_v48 = vand.u32 %v3141_v40, %v5798_v33  ;;  %v5199_v36 = vld [vmem:[#allocation2 + $0xb8] sm:$0xff] }
 0x1c7   :  { %1785 = vst.msk [vmem:[#allocation2 + $0x90] sm:$0xf] %vm1748_vm3, %v1700_v53  ;;  %4647 = vmatmul.msk.bf16.vlgmr.msra.gmra.mxu3 %vm1864_vm4, %v5181_v56  ;;  %v3250_v49 = vand.u32 %v3243_v41, %v5798_v33  ;;  %v4796_v56 = vld [vmem:[%s6570_s2 + $0x218] sm:$0x3]  ;;  %v5219_v40 = vld [vmem:[%s6570_s2 + $0x24c] sm:$0xff] }
 0x1c8   :  { %v1462_v62 = vpop.f32.mrf.mxu0  ;;  %3053 = vmatpush.bf16.msra.mxu3 %v3046_v30  ;;  %v3189_v1 = vunpack.c.l.b16 %v4796_v56  ;;  %v5225_v41 = vld [vmem:[%s6570_s2 + $0x274] sm:$0xff] }
 0x1c9   :  { %v1463_v63 = vadd.f32 %v6161_v15, %v1462_v62 }
 0x1ca   :  { %v3192_v4 = vpack.c.b16 %v3189_v1, %v3189_v1  ;;  %v5220_v1 = vld [vmem:[#allocation2 + $0xf0] sm:$0xff] }
 0x1cb   :  { %v1617_v2 = vmax.f32 %v1463_v63, 0.0  ;;  %v5206_v63 = vld [vmem:[%s6570_s2 + $0x1f4] sm:$0xff] }
 0x1cc   :  { %v2345_v8 = vpop.f32.mrf.mxu1  ;;  %3054 = vmatpush.bf16.msra.mxu3 %v5201_v37  ;;  %v3199_v10 = vand.u32 %v3192_v4, %v5798_v33  ;;  %v5205_v37 = vld [vmem:[#allocation2 + $0xc8] sm:$0xff]  ;;  %v5240_v4 = vld [vmem:[%s6570_s2 + $0x2d8] sm:$0xff] }
 0x1cd   :  { %v1701_v6 = vpack.c.bf16 %v1617_v2, %v1617_v2  ;;  %v2349_v11 = vadd.f32 %v2345_v8, %v2298_v52  ;;  %v3393_v2 = vunpack.c.l.b16 %v4868_v60 }
 0x1cf   :  { %1786 = vst.msk [vmem:[#allocation2 + $0x94] sm:$0xf] %vm1748_vm3, %v1701_v6  ;;  %v3396_v6 = vpack.c.b16 %v3393_v2, %v3393_v2  ;;  %v5234_v2 = vld [vmem:[%s6570_s2 + $0x2b0] sm:$0xff] }
 0x1d0   :  { %v1465_v12 = vpop.f32.mrf.mxu0  ;;  %3055 = vmatpush.bf16.msra.mxu3 %v5200_v43  ;;  %v5231_v43 = vld [vmem:[%s6570_s2 + $0x29c] sm:$0xff] }
 0x1d1   :  { %v1466_v57 = vadd.f32 %v6161_v15, %v1465_v12 }
 0x1d3   :  { %v1618_v14 = vmax.f32 %v1466_v57, 0.0  ;;  %v5196_v57 = vld [vmem:[#allocation2 + $0xb0] sm:$0xff] }
 0x1d5   :  { %v1702_v3 = vpack.c.bf16 %v1618_v14, %v1618_v14  ;;  %v3403_v14 = vand.u32 %v3396_v6, %v5798_v33 }
 0x1d6   :  { %v5184_v19 = vld [vmem:[#allocation2 + $0x90] sm:$0xff] }
 0x1d7   :  { %1787 = vst.msk [vmem:[#allocation2 + $0x98] sm:$0xf] %vm1748_vm3, %v1702_v3  ;;  %4665 = vmatmul.msk.bf16.vlgmr.msrb.gmra.mxu1 %vm1864_vm4, %v5184_v19  ;;  %v5216_v3 = vld [vmem:[%s6570_s2 + $0x238] sm:$0xff]  ;;  %v4850_v19 = vld [vmem:[%s6570_s2 + $0x254] sm:$0x3] }
 0x1d8   :  { %v1467_v22 = vpop.f32.mrf.mxu0  ;;  %3104 = vmatpush.bf16.msrb.mxu1 %v3097_v18  ;;  %v5222_v18 = vld [vmem:[%s6570_s2 + $0x260] sm:$0xff] }
 0x1d9   :  { %v1468_v23 = vadd.f32 %v6161_v15, %v1467_v22 }
 0x1da   :  { %v2394_v29 = vpop.f32.mrf.mxu2 }
 0x1db   :  { %v1619_v28 = vmax.f32 %v1468_v23, 0.0  ;;  %v2399_v31 = vadd.f32 %v2394_v29, %v2348_v55  ;;  %v5213_v55 = vld [vmem:[%s6570_s2 + $0x224] sm:$0xff]  ;;  %v3546_v29 = vunpack.c.l.b16 %v4922_v21 }
 0x1dc   :  { %3105 = vmatpush.bf16.msrb.mxu1 %v5204_v24  ;;  %v5209_v23 = vld [vmem:[%s6570_s2 + $0x208] sm:$0xff]  ;;  %v3342_v24 = vunpack.c.l.b16 %v4850_v19 }
 0x1dd   :  { %v1703_v32 = vpack.c.bf16 %v1619_v28, %v1619_v28  ;;  %v3444_v28 = vunpack.c.l.b16 %v4886_v20 }
 0x1de   :  { %v3345_v30 = vpack.c.b16 %v3342_v24, %v3342_v24  ;;  %v5223_v24 = vld [vmem:[#allocation2 + $0xf8] sm:$0xff] }
 0x1df   :  { %1788 = vst.msk [vmem:[#allocation2 + $0x9c] sm:$0xf] %vm1748_vm3, %v1703_v32  ;;  %v3549_v32 = vpack.c.b16 %v3546_v29, %v3546_v29  ;;  %v5243_v29 = vld [vmem:[%s6570_s2 + $0x2ec] sm:$0xff] }
 0x1e0   :  { %v1470_v38 = vpop.f32.mrf.mxu0  ;;  %3106 = vmatpush.bf16.msrb.mxu1 %v5203_v34  ;;  %v5211_v34 = vld [vmem:[#allocation2 + $0xd8] sm:$0xff]  ;;  %v3352_v35 = vand.u32 %v3345_v30, %v5798_v33 }
 0x1e1   :  { %v1471_v39 = vadd.f32 %v6161_v15, %v1470_v38  ;;  %v5249_v30 = vld [vmem:[%s6570_s2 + $0x314] sm:$0xff] }
 0x1e2   :  { %v2396_v45 = vpop.f32.mrf.mxu2 }
 0x1e3   :  { %v1620_v44 = vmax.f32 %v1471_v39, 0.0  ;;  %v2400_v46 = vadd.f32 %v2396_v45, %v2349_v11  ;;  %v3556_v39 = vand.u32 %v3549_v32, %v5798_v33  ;;  %v5048_v32 = vld [vmem:[%s6570_s2 + $0x330] sm:$0x3] }
 0x1e5   :  { %v1704_v47 = vpack.c.bf16 %v1620_v44, %v1620_v44  ;;  %v4904_v44 = vld [vmem:[%s6570_s2 + $0x290] sm:$0x3] }
 0x1e6   :  { %v5187_v50 = vld [vmem:[#allocation2 + $0x98] sm:$0xff] }
 0x1e7   :  { %1789 = vst.msk [vmem:[#allocation2 + $0xa0] sm:$0xf] %vm1748_vm3, %v1704_v47  ;;  %4683 = vmatmul.msk.bf16.vlgmr.msrb.gmra.mxu2 %vm1864_vm4, %v5187_v50  ;;  %4719 = vmatmul.msk.bf16.vlgmr.msra.gmra.mxu1 %vm1864_vm4, %v5193_v51  ;;  %v4976_v47 = vld [vmem:[%s6570_s2 + $0x2e0] sm:$0x3]  ;;  %v3495_v50 = vunpack.c.l.b16 %v4904_v44  ;;  %v5224_v51 = vld [vmem:[%s6570_s2 + $0x26c] sm:$0xff] }
 0x1e8   :  { %v1472_v52 = vpop.f32.mrf.mxu0  ;;  %3155 = vmatpush.bf16.msrb.mxu2 %v3148_v48  ;;  %3257 = vmatpush.bf16.msra.mxu1 %v3250_v49  ;;  %v5218_v49 = vld [vmem:[%s6570_s2 + $0x244] sm:$0xff] }
 0x1e9   :  { %v1473_v53 = vadd.f32 %v6161_v15, %v1472_v52  ;;  %v4832_v15 = vld [vmem:[%s6570_s2 + $0x240] sm:$0x3]  ;;  %v5230_v52 = vld [vmem:[%s6570_s2 + $0x294] sm:$0xff] }
 0x1ea   :  { %v2445_v59 = vpop.f32.mrf.mxu3  ;;  %v3291_v7 = vunpack.c.l.b16 %v4832_v15 }
 0x1eb   :  { %v1621_v58 = vmax.f32 %v1473_v53, 0.0  ;;  %v2450_v61 = vadd.f32 %v2445_v59, %v2399_v31  ;;  %v3447_v31 = vpack.c.b16 %v3444_v28, %v3444_v28  ;;  %v5237_v28 = vld [vmem:[%s6570_s2 + $0x2c4] sm:$0xff] }
 0x1ec   :  { %3156 = vmatpush.bf16.msrb.mxu2 %v5207_v54  ;;  %3258 = vmatpush.bf16.msra.mxu1 %v5213_v55  ;;  %v3294_v5 = vpack.c.b16 %v3291_v7, %v3291_v7  ;;  %v3699_v54 = vunpack.c.l.b16 %v4976_v47  ;;  %v3498_v55 = vpack.c.b16 %v3495_v50, %v3495_v50  ;;  %v5228_v7 = vld [vmem:[%s6570_s2 + $0x288] sm:$0xff] }
 0x1ed   :  { %v1705_v62 = vpack.c.bf16 %v1621_v58, %v1621_v58  ;;  %v3454_v38 = vand.u32 %v3447_v31, %v5798_v33  ;;  %v5012_v31 = vld [vmem:[%s6570_s2 + $0x308] sm:$0x3] }
 0x1ee   :  { %v3301_v13 = vand.u32 %v3294_v5, %v5798_v33  ;;  %v3702_v58 = vpack.c.b16 %v3699_v54, %v3699_v54  ;;  %v3505_v60 = vand.u32 %v3498_v55, %v5798_v33  ;;  %v4958_v5 = vld [vmem:[%s6570_s2 + $0x2cc] sm:$0x3]  ;;  %v5245_v54 = vld [vmem:[%s6570_s2 + $0x2f8] sm:$0xff] }
 0x1ef   :  { %1790 = vst.msk [vmem:[#allocation2 + $0xa4] sm:$0xf] %vm1748_vm3, %v1705_v62  ;;  %v5214_v62 = vld [vmem:[#allocation2 + $0xe0] sm:$0xff]  ;;  %v5252_v50 = vld [vmem:[%s6570_s2 + $0x328] sm:$0xff] }
 0x1f0   :  { %3157 = vmatpush.bf16.msrb.mxu2 %v5206_v63  ;;  %3259 = vmatpush.bf16.msra.mxu1 %v5212_v0  ;;  %v3709_v0 = vand.u32 %v3702_v58, %v5798_v33 }
 0x1f2   :  { %v2447_v8 = vpop.f32.mrf.mxu3 }
 0x1f3   :  { %v2451_v9 = vadd.f32 %v2447_v8, %v2400_v46  ;;  %v4940_v46 = vld [vmem:[%s6570_s2 + $0x2b8] sm:$0x3]  ;;  %v4994_v8 = vld [vmem:[%s6570_s2 + $0x2f4] sm:$0x3] }
 0x1f4   :  { %v2496_v11 = vpop.f32.mrf.mxu1  ;;  %v3597_v53 = vunpack.c.l.b16 %v4940_v46  ;;  %v5232_v46 = vld [vmem:[#allocation2 + $0x110] sm:$0xff] }
 0x1f5   :  { %v2501_v42 = vadd.f32 %v2496_v11, %v2450_v61  ;;  %v5208_v61 = vld [vmem:[#allocation2 + $0xd0] sm:$0xff] }
 0x1f6   :  { %v5190_v12 = vld [vmem:[#allocation2 + $0xa0] sm:$0xff]  ;;  %v3600_v56 = vpack.c.b16 %v3597_v53, %v3597_v53 }
 0x1f7   :  { %4701 = vmatmul.msk.bf16.vlgmr.msrb.gmra.mxu3 %vm1864_vm4, %v5190_v12  ;;  %4737 = vmatmul.msk.bf16.vlgmr.msra.gmra.mxu2 %vm1864_vm4, %v5196_v57  ;;  %v5233_v12 = vld [vmem:[%s6570_s2 + $0x2a8] sm:$0xff]  ;;  %v5239_v57 = vld [vmem:[%s6570_s2 + $0x2d0] sm:$0xff] }
 0x1f8   :  { %4773 = vmatmul.msk.bf16.vlgmr.msrb.gmra.mxu1 %vm1864_vm4, %v5202_v16  ;;  %3206 = vmatpush.bf16.msrb.mxu3 %v3199_v10  ;;  %v3607_v63 = vand.u32 %v3600_v56, %v5798_v33  ;;  %v5227_v10 = vld [vmem:[%s6570_s2 + $0x280] sm:$0xff] }
 0x1f9   :  { %3308 = vmatpush.bf16.msra.mxu2 %v3301_v13  ;;  %3410 = vmatpush.bf16.msrb.mxu1 %v3403_v14  ;;  %v3750_v13 = vunpack.c.l.b16 %v4994_v8  ;;  %v5251_v56 = vld [vmem:[%s6570_s2 + $0x320] sm:$0xff]  ;;  %v5244_v8 = vld [vmem:[#allocation2 + $0x130] sm:$0xff] }
 0x1fc   :  { %v2498_v22 = vpop.f32.mrf.mxu1  ;;  %3207 = vmatpush.bf16.msrb.mxu3 %v5210_v17  ;;  %v3753_v17 = vpack.c.b16 %v3750_v13, %v3750_v13 }
 0x1fd   :  { %v2502_v25 = vadd.f32 %v2498_v22, %v2451_v9  ;;  %3309 = vmatpush.bf16.msra.mxu2 %v5216_v3  ;;  %3411 = vmatpush.bf16.msrb.mxu1 %v5222_v18  ;;  %v5030_v9 = vld [vmem:[%s6570_s2 + $0x31c] sm:$0x3] }
 0x1fe   :  { %v3852_v14 = vunpack.c.l.b16 %v5030_v9  ;;  %v5250_v9 = vld [vmem:[#allocation2 + $0x140] sm:$0xff] }
 0x200   :  { %3208 = vmatpush.bf16.msrb.mxu3 %v5209_v23  ;;  %v3855_v3 = vpack.c.b16 %v3852_v14, %v3852_v14  ;;  %v5217_v23 = vld [vmem:[#allocation2 + $0xe8] sm:$0xff] }
 0x201   :  { %3310 = vmatpush.bf16.msra.mxu2 %v5215_v26  ;;  %3412 = vmatpush.bf16.msrb.mxu1 %v5221_v27  ;;  %v5229_v27 = vld [vmem:[#allocation2 + $0x108] sm:$0xff] }
 0x202   :  { %v3862_v26 = vand.u32 %v3855_v3, %v5798_v33 }
 0x207   :  { %4755 = vmatmul.msk.bf16.vlgmr.msra.gmra.mxu3 %vm1864_vm4, %v5199_v36  ;;  %4791 = vmatmul.msk.bf16.vlgmr.msrb.gmra.mxu2 %vm1864_vm4, %v5205_v37  ;;  %v3801_v36 = vunpack.c.l.b16 %v5012_v31 }
 0x208   :  { %4827 = vmatmul.msk.bf16.vlgmr.msra.gmra.mxu1 %vm1864_vm4, %v5211_v34  ;;  %3359 = vmatpush.bf16.msra.mxu3 %v3352_v35  ;;  %v5236_v35 = vld [vmem:[%s6570_s2 + $0x2bc] sm:$0xff] }
 0x209   :  { %3461 = vmatpush.bf16.msrb.mxu2 %v3454_v38  ;;  %3563 = vmatpush.bf16.msra.mxu1 %v3556_v39  ;;  %v5242_v38 = vld [vmem:[%s6570_s2 + $0x2e4] sm:$0xff]  ;;  %v5248_v39 = vld [vmem:[%s6570_s2 + $0x30c] sm:$0xff] }
 0x20a   :  { %v2547_v45 = vpop.f32.mrf.mxu2 }
 0x20b   :  { %v2552_v48 = vadd.f32 %v2547_v45, %v2501_v42  ;;  %v3648_v42 = vunpack.c.l.b16 %v4958_v5  ;;  %v5226_v45 = vld [vmem:[#allocation2 + $0x100] sm:$0xff] }
 0x20c   :  { %3360 = vmatpush.bf16.msra.mxu3 %v5219_v40  ;;  %v3903_v40 = vunpack.c.l.b16 %v5048_v32 }
 0x20d   :  { %3462 = vmatpush.bf16.msrb.mxu2 %v5225_v41  ;;  %3564 = vmatpush.bf16.msra.mxu1 %v5231_v43  ;;  %v3651_v16 = vpack.c.b16 %v3648_v42, %v3648_v42  ;;  %v3804_v41 = vpack.c.b16 %v3801_v36, %v3801_v36  ;;  %v5253_v42 = vld [vmem:[#allocation2 + $0x148] sm:$0xff] }
 0x20e   :  { %v3906_v43 = vpack.c.b16 %v3903_v40, %v3903_v40 }
 0x20f   :  { %v3658_v21 = vand.u32 %v3651_v16, %v5798_v33  ;;  %v3811_v44 = vand.u32 %v3804_v41, %v5798_v33 }
 0x210   :  { %3361 = vmatpush.bf16.msra.mxu3 %v5218_v49  ;;  %v3913_v47 = vand.u32 %v3906_v43, %v5798_v33  ;;  %v5246_v49 = vld [vmem:[%s6570_s2 + $0x300] sm:$0xff] }
 0x211   :  { %3463 = vmatpush.bf16.msrb.mxu2 %v5224_v51  ;;  %3565 = vmatpush.bf16.msra.mxu1 %v5230_v52  ;;  %v5066_v51 = vld [vmem:[%s6570_s2 + $0x344] sm:$0x3] }
 0x212   :  { %v2549_v59 = vpop.f32.mrf.mxu2  ;;  %v3954_v55 = vunpack.c.l.b16 %v5066_v51 }
 0x213   :  { %v2553_v15 = vadd.f32 %v2549_v59, %v2502_v25  ;;  %v3760_v25 = vand.u32 %v3753_v17, %v5798_v33 }
 0x214   :  { %v3957_v58 = vpack.c.b16 %v3954_v55, %v3954_v55 }
 0x217   :  { %4809 = vmatmul.msk.bf16.vlgmr.msrb.gmra.mxu3 %vm1864_vm4, %v5208_v61  ;;  %4845 = vmatmul.msk.bf16.vlgmr.msra.gmra.mxu2 %vm1864_vm4, %v5214_v62  ;;  %v5235_v61 = vld [vmem:[#allocation2 + $0x118] sm:$0xff]  ;;  %v5241_v62 = vld [vmem:[#allocation2 + $0x128] sm:$0xff] }
 0x218   :  { %4881 = vmatmul.msk.bf16.vlgmr.msrb.gmra.mxu1 %vm1864_vm4, %v5220_v1  ;;  %3512 = vmatpush.bf16.msrb.mxu3 %v3505_v60  ;;  %v3964_v60 = vand.u32 %v3957_v58, %v5798_v33  ;;  %v5254_v33 = vld [vmem:[%s6570_s2 + $0x334] sm:$0xff] }
 0x219   :  { %3614 = vmatpush.bf16.msra.mxu2 %v3607_v63  ;;  %3716 = vmatpush.bf16.msrb.mxu1 %v3709_v0  ;;  %v5247_v63 = vld [vmem:[#allocation2 + $0x138] sm:$0xff] }
 0x21a   :  { %v2598_v6 = vpop.f32.mrf.mxu3  ;;  %v5255_v0 = vld [vmem:[%s6570_s2 + $0x33c] sm:$0xff] }
 0x21b   :  { %v2603_v11 = vadd.f32 %v2598_v6, %v2552_v48  ;;  %v5238_v48 = vld [vmem:[#allocation2 + $0x120] sm:$0xff] }
 0x21c   :  { %3513 = vmatpush.bf16.msrb.mxu3 %v5228_v7 }
 0x21d   :  { %3615 = vmatpush.bf16.msra.mxu2 %v5234_v2  ;;  %3717 = vmatpush.bf16.msrb.mxu1 %v5240_v4 }
 0x220   :  { %3514 = vmatpush.bf16.msrb.mxu3 %v5227_v10 }
 0x221   :  { %3616 = vmatpush.bf16.msra.mxu2 %v5233_v12  ;;  %3718 = vmatpush.bf16.msrb.mxu1 %v5239_v57 }
 0x222   :  { %v2600_v18 = vpop.f32.mrf.mxu3 }
 0x223   :  { %v2604_v19 = vadd.f32 %v2600_v18, %v2553_v15 }
 0x224   :  { %v2649_v20 = vpop.f32.mrf.mxu1 }
 0x225   :  { %v2654_v22 = vadd.f32 %v2649_v20, %v2603_v11 }
 0x227   :  { %4863 = vmatmul.msk.bf16.vlgmr.msra.gmra.mxu3 %vm1864_vm4, %v5217_v23  ;;  %4899 = vmatmul.msk.bf16.vlgmr.msrb.gmra.mxu2 %vm1864_vm4, %v5223_v24 }
 0x228   :  { %4935 = vmatmul.msk.bf16.vlgmr.msra.gmra.mxu1 %vm1864_vm4, %v5229_v27  ;;  %3665 = vmatpush.bf16.msra.mxu3 %v3658_v21 }
 0x229   :  { %3767 = vmatpush.bf16.msrb.mxu2 %v3760_v25  ;;  %3869 = vmatpush.bf16.msra.mxu1 %v3862_v26 }
 0x22c   :  { %v2651_v34 = vpop.f32.mrf.mxu1  ;;  %3666 = vmatpush.bf16.msra.mxu3 %v5237_v28 }
 0x22d   :  { %v2655_v37 = vadd.f32 %v2651_v34, %v2604_v19  ;;  %3768 = vmatpush.bf16.msrb.mxu2 %v5243_v29  ;;  %3870 = vmatpush.bf16.msra.mxu1 %v5249_v30 }
 0x230   :  { %3667 = vmatpush.bf16.msra.mxu3 %v5236_v35 }
 0x231   :  { %3769 = vmatpush.bf16.msrb.mxu2 %v5242_v38  ;;  %3871 = vmatpush.bf16.msra.mxu1 %v5248_v39 }
 0x237   :  { %4917 = vmatmul.msk.bf16.vlgmr.msrb.gmra.mxu3 %vm1864_vm4, %v5226_v45  ;;  %4953 = vmatmul.msk.bf16.vlgmr.msra.gmra.mxu2 %vm1864_vm4, %v5232_v46 }
 0x238   :  { %4989 = vmatmul.msk.bf16.vlgmr.msrb.gmra.mxu1 %vm1864_vm4, %v5238_v48  ;;  %3818 = vmatpush.bf16.msrb.mxu3 %v3811_v44 }
 0x239   :  { %3920 = vmatpush.bf16.msra.mxu2 %v3913_v47 }
 0x23a   :  { %v2700_v52 = vpop.f32.mrf.mxu2 }
 0x23b   :  { %v2705_v53 = vadd.f32 %v2700_v52, %v2654_v22 }
 0x23c   :  { %3819 = vmatpush.bf16.msrb.mxu3 %v5246_v49 }
 0x23d   :  { %3921 = vmatpush.bf16.msra.mxu2 %v5252_v50 }
 0x240   :  { %3820 = vmatpush.bf16.msrb.mxu3 %v5245_v54 }
 0x241   :  { %3922 = vmatpush.bf16.msra.mxu2 %v5251_v56 }
 0x242   :  { %v2702_v59 = vpop.f32.mrf.mxu2 }
 0x243   :  { %v2706_v15 = vadd.f32 %v2702_v59, %v2655_v37 }
 0x247   :  { %4971 = vmatmul.msk.bf16.vlgmr.msra.gmra.mxu3 %vm1864_vm4, %v5235_v61  ;;  %5007 = vmatmul.msk.bf16.vlgmr.msrb.gmra.mxu2 %vm1864_vm4, %v5241_v62 }
 0x248   :  { %5043 = vmatmul.msk.bf16.vlgmr.msra.gmra.mxu1 %vm1864_vm4, %v5247_v63  ;;  %3971 = vmatpush.bf16.msra.mxu3 %v3964_v60 }
 0x24a   :  { %v2751_v1 = vpop.f32.mrf.mxu3 }
 0x24b   :  { %v2756_v7 = vadd.f32 %v2751_v1, %v2705_v53 }
 0x24c   :  { %3972 = vmatpush.bf16.msra.mxu3 %v5255_v0 }
 0x250   :  { %3973 = vmatpush.bf16.msra.mxu3 %v5254_v33 }
 0x252   :  { %v2753_v2 = vpop.f32.mrf.mxu3 }
 0x253   :  { %v2757_v4 = vadd.f32 %v2753_v2, %v2706_v15 }
 0x254   :  { %v2802_v5 = vpop.f32.mrf.mxu1 }
 0x255   :  { %v2807_v6 = vadd.f32 %v2802_v5, %v2756_v7 }
 0x257   :  { %5025 = vmatmul.msk.bf16.vlgmr.msrb.gmra.mxu3 %vm1864_vm4, %v5244_v8  ;;  %5061 = vmatmul.msk.bf16.vlgmr.msra.gmra.mxu2 %vm1864_vm4, %v5250_v9 }
 0x25c   :  { %v2804_v11 = vpop.f32.mrf.mxu1 }
 0x25d   :  { %v2808_v10 = vadd.f32 %v2804_v11, %v2757_v4 }
 0x264   :  { %v2955_v12 = vpop.f32.mrf.mxu1 }
 0x267   :  { %5079 = vmatmul.msk.bf16.vlgmr.msra.gmra.mxu3 %vm1864_vm4, %v5253_v42 }
 0x26a   :  { %v2853_v57 = vpop.f32.mrf.mxu2 }
 0x26b   :  { %v2858_v13 = vadd.f32 %v2853_v57, %v2807_v6 }
 0x26c   :  { %v2957_v16 = vpop.f32.mrf.mxu1 }
 0x272   :  { %v2855_v14 = vpop.f32.mrf.mxu2 }
 0x273   :  { %v2859_v17 = vadd.f32 %v2855_v14, %v2808_v10 }
 0x275   :  { %v3108_v20 = vpop.f32.mrf.mxu1 }
 0x27a   :  { %v2904_v3 = vpop.f32.mrf.mxu3  ;;  %v3006_v18 = vpop.f32.mrf.mxu2 }
 0x27b   :  { %v2909_v19 = vadd.f32 %v2904_v3, %v2858_v13 }
 0x27d   :  { %v3110_v24 = vpop.f32.mrf.mxu1  ;;  %v2960_v37 = vadd.f32 %v2955_v12, %v2909_v19 }
 0x27f   :  { %v3011_v40 = vadd.f32 %v3006_v18, %v2960_v37 }
 0x282   :  { %v2906_v21 = vpop.f32.mrf.mxu3  ;;  %v3008_v22 = vpop.f32.mrf.mxu2 }
 0x283   :  { %v2910_v23 = vadd.f32 %v2906_v21, %v2859_v17 }
 0x285   :  { %v3261_v27 = vpop.f32.mrf.mxu1  ;;  %v2961_v44 = vadd.f32 %v2957_v16, %v2910_v23 }
 0x287   :  { %v3012_v48 = vadd.f32 %v3008_v22, %v2961_v44  ;;  %v5495_v44 = vld [vmem:[%s6572_s4] ss:$0 sm:$0xff]  ;;  %s5512_s4 = smov 7  }
 0x28a   :  { %v3057_v25 = vpop.f32.mrf.mxu3  ;;  %v3159_v26 = vpop.f32.mrf.mxu2 }
 0x28b   :  { %v3062_v41 = vadd.f32 %v3057_v25, %v3011_v40 }
 0x28d   :  { %v3263_v32 = vpop.f32.mrf.mxu1  ;;  %v3113_v46 = vadd.f32 %v3108_v20, %v3062_v41 }
 0x28f   :  { %v3164_v49 = vadd.f32 %v3159_v26, %v3113_v46 }
 0x292   :  { %v3059_v28 = vpop.f32.mrf.mxu3  ;;  %v3161_v29 = vpop.f32.mrf.mxu2 }
 0x293   :  { %v3063_v50 = vadd.f32 %v3059_v28, %v3012_v48 }
 0x295   :  { %v3414_v36 = vpop.f32.mrf.mxu1  ;;  %v3114_v54 = vadd.f32 %v3110_v24, %v3063_v50 }
 0x297   :  { %v3165_v58 = vadd.f32 %v3161_v29, %v3114_v54 }
 0x29a   :  { %v3210_v30 = vpop.f32.mrf.mxu3  ;;  %v3312_v31 = vpop.f32.mrf.mxu2 }
 0x29b   :  { %v3215_v51 = vadd.f32 %v3210_v30, %v3164_v49 }
 0x29d   :  { %v3416_v43 = vpop.f32.mrf.mxu1  ;;  %v3266_v55 = vadd.f32 %v3261_v27, %v3215_v51 }
 0x29f   :  { %v3317_v59 = vadd.f32 %v3312_v31, %v3266_v55 }
 0x2a2   :  { %v3212_v34 = vpop.f32.mrf.mxu3  ;;  %v3314_v35 = vpop.f32.mrf.mxu2 }
 0x2a3   :  { %v3216_v15 = vadd.f32 %v3212_v34, %v3165_v58 }
 0x2a5   :  { %v3567_v52 = vpop.f32.mrf.mxu1  ;;  %v3267_v63 = vadd.f32 %v3263_v32, %v3216_v15 }
 0x2a7   :  { %v3318_v7 = vadd.f32 %v3314_v35, %v3267_v63 }
 0x2aa   :  { %v3363_v38 = vpop.f32.mrf.mxu3  ;;  %v3465_v39 = vpop.f32.mrf.mxu2 }
 0x2ab   :  { %v3368_v61 = vadd.f32 %v3363_v38, %v3317_v59 }
 0x2ad   :  { %v3569_v62 = vpop.f32.mrf.mxu1  ;;  %v3419_v0 = vadd.f32 %v3414_v36, %v3368_v61 }
 0x2af   :  { %v3470_v2 = vadd.f32 %v3465_v39, %v3419_v0 }
 0x2b2   :  { %v3365_v45 = vpop.f32.mrf.mxu3  ;;  %v3467_v47 = vpop.f32.mrf.mxu2 }
 0x2b3   :  { %v3369_v4 = vadd.f32 %v3365_v45, %v3318_v7 }
 0x2b5   :  { %v3720_v6 = vpop.f32.mrf.mxu1  ;;  %v3420_v8 = vadd.f32 %v3416_v43, %v3369_v4 }
 0x2b7   :  { %v3471_v42 = vadd.f32 %v3467_v47, %v3420_v8 }
 0x2ba   :  { %v3516_v53 = vpop.f32.mrf.mxu3  ;;  %v3618_v56 = vpop.f32.mrf.mxu2 }
 0x2bb   :  { %v3521_v5 = vadd.f32 %v3516_v53, %v3470_v2 }
 0x2bd   :  { %v3572_v9 = vadd.f32 %v3567_v52, %v3521_v5  ;;  %v3722_v14 = vpop.f32.mrf.mxu1  ;;  %v5496_v5 = vld [vmem:[#allocation8] ss:$0 sm:$0xff] }
 0x2bf   :  { %v3623_v12 = vadd.f32 %v3618_v56, %v3572_v9 }
 0x2c2   :  { %v3518_v60 = vpop.f32.mrf.mxu3  ;;  %v3620_v1 = vpop.f32.mrf.mxu2 }
 0x2c3   :  { %v3522_v57 = vadd.f32 %v3518_v60, %v3471_v42 }
 0x2c5   :  { %v3573_v16 = vadd.f32 %v3569_v62, %v3522_v57  ;;  %v3873_v23 = vpop.f32.mrf.mxu1 }
 0x2c7   :  { %v3624_v19 = vadd.f32 %v3620_v1, %v3573_v16 }
 0x2ca   :  { %v3669_v33 = vpop.f32.mrf.mxu3  ;;  %v3771_v11 = vpop.f32.mrf.mxu2 }
 0x2cb   :  { %v3674_v13 = vadd.f32 %v3669_v33, %v3623_v12 }
 0x2cd   :  { %v3725_v3 = vadd.f32 %v3720_v6, %v3674_v13  ;;  %v3875_v34 = vpop.f32.mrf.mxu1 }
 0x2cf   :  { %v3776_v20 = vadd.f32 %v3771_v11, %v3725_v3 }
 0x2d2   :  { %v3671_v10 = vpop.f32.mrf.mxu3  ;;  %v3773_v18 = vpop.f32.mrf.mxu2 }
 0x2d3   :  { %v3675_v21 = vadd.f32 %v3671_v10, %v3624_v19 }
 0x2d5   :  { %v3726_v25 = vadd.f32 %v3722_v14, %v3675_v21 }
 0x2d7   :  { %v3777_v28 = vadd.f32 %v3773_v18, %v3726_v25 }
 0x2da   :  { %v3822_v17 = vpop.f32.mrf.mxu3  ;;  %v3924_v27 = vpop.f32.mrf.mxu2 }
 0x2db   :  { %v3827_v22 = vadd.f32 %v3822_v17, %v3776_v20 }
 0x2dd   :  { %v3878_v26 = vadd.f32 %v3873_v23, %v3827_v22 }
 0x2df   :  { %v3929_v29 = vadd.f32 %v3924_v27, %v3878_v26 }
 0x2e2   :  { %v3824_v24 = vpop.f32.mrf.mxu3  ;;  %v3926_v37 = vpop.f32.mrf.mxu2 }
 0x2e3   :  { %v3828_v30 = vadd.f32 %v3824_v24, %v3777_v28 }
 0x2e5   :  { %v3879_v35 = vadd.f32 %v3875_v34, %v3828_v30 }
 0x2e7   :  { %v3930_v38 = vadd.f32 %v3926_v37, %v3879_v35 }
 0x2ea   :  { %v3975_v31 = vpop.f32.mrf.mxu3 }
 0x2eb   :  { %v3980_v32 = vadd.f32 %v3975_v31, %v3929_v29 }
 0x2ed   :  { %v4006_v36 = vsel %vm4005_vm5, %v3980_v32, -inf  ;;  %v3982_v43 = vmax.f32 %v3980_v32, 0.0 }
 0x2ee   :  { %4007 = vmax.xlane.f32.xlu0 %v4006_v36 }
 0x2ef   :  { %v3988_v47 = vmul.f32 %v5495_v44, %v3982_v43 }
 0x2f1   :  { %v3991_v49 = vsel %vm3990_vm6, %v3988_v47, 0.0 }
 0x2f2   :  { %v3977_v39 = vpop.f32.mrf.mxu3 }
 0x2f3   :  { %v3981_v40 = vadd.f32 %v3977_v39, %v3930_v38 }
 0x2f5   :  { %v4009_v41 = vsel %vm4005_vm5, %v3981_v40, -inf  ;;  %v3983_v45 = vmax.f32 %v3981_v40, 0.0 }
 0x2f6   :  { %4010 = vmax.xlane.f32.xlu0 %v4009_v41 }
 0x2f7   :  { %v3989_v46 = vmul.f32 %v5495_v44, %v3983_v45 }
 0x2f9   :  { %v3994_v48 = vsel %vm3990_vm6, %v3989_v46, 0.0 }
 0x2fe   :  { %3992 = vadd.xlane.f32.xlu0 %v3991_v49 }
 0x361   :  { %v4008_v50 = vpop.xlane.xlu0 %4007 }
 0x362   :  { %v4012_v51 = vsub.f32 %v3980_v32, %v4008_v50 }
 0x364   :  { %v4014_v52 = vmul.f32 1.442695, %v4012_v51 }
 0x366   :  { %5497 = vpow2.f32 %v4014_v52 }
 0x369   :  { %v4011_v53 = vpop.xlane.xlu0 %4010 }
 0x36a   :  { %v4013_v54 = vsub.f32 %v3981_v40, %v4011_v53 }
 0x36c   :  { %v5498_v55 = vpop.eup %5497  ;;  %v4016_v56 = vmul.f32 1.442695, %v4013_v54 }
 0x36d   :  { %4020 = vrot.lane.b32.xlu1 %v5498_v55, %s5511_s20 }
 0x36e   :  { %5499 = vpow2.f32 %v4016_v56 }
 0x371   :  { %v3993_v6 = vpop.xlane.xlu0 %3992 }
 0x372   :  { %v4001_v12 = vadd.f32 %v5496_v5, %v3993_v6 }
 0x374   :  { %v5500_v58 = vpop.eup %5499 }
 0x375   :  { %4022 = vrot.lane.b32.xlu1 %v5500_v58, %s5511_s20 }
 0x39f   :  { %3995 = vadd.xlane.f32.xlu1 %v3994_v48 }
 0x3df   :  { %v4021_v59 = vpop.permute.xlu1 %4020 }
 0x3e0   :  { %v4027_v15 = vsel %vm4026_vm7, %v4021_v59, 0.0 }
 0x3e1   :  { %4028 = vadd.xlane.f32.xlu2 %v4027_v15 }
 0x3e7   :  { %v4023_v60 = vpop.permute.xlu1 %4022 }
 0x3e8   :  { %v4030_v61 = vsel %vm4026_vm7, %v4023_v60, 0.0 }
 0x3e9   :  { %4031 = vadd.xlane.f32.xlu2 %v4030_v61 }
 0x412   :  { %v3996_v18 = vpop.xlane.xlu1 %3995 }
 0x413   :  { %v4002_v22 = vadd.f32 %v5496_v5, %v3996_v18 }
 0x454   :  { %v4029_v62 = vpop.xlane.xlu2 %4028 }
 0x455   :  { %5501 = vrcp.f32 %v4029_v62  ;;  %v4044_v33 = vand.u32 2147483648, %v4029_v62  ;;  %v4042_v4 = vand.u32 2147483647, %v4029_v62  ;;  %vm4038_vm9 = vweird.f32 %v4029_v62 }
 0x457   :  { %v4045_v11 = vor.u32 1.1754944e-38, %v4044_v33  ;;  %vm4043_vm11 = vcmp.eq.f32.partialorder %v4042_v4, 8.507059e+37 }
 0x45b   :  { %v5502_v63 = vpop.eup %5501 }
 0x45c   :  { %v4034_v0 = vmul.f32 %v5502_v63, %v4029_v62  ;;  %v4032_v1 = vpop.xlane.xlu2 %4031  ;;  %vm4039_vm8 = vweird.f32 %v5502_v63 }
 0x45d   :  { %5503 = vrcp.f32 %v4032_v1  ;;  %vm4040_vm10 = vmor %vm4038_vm9, %vm4039_vm8  ;;  %v4059_v16 = vand.u32 2147483648, %v4032_v1  ;;  %v4057_v3 = vand.u32 2147483647, %v4032_v1  ;;  %vm4053_vm13 = vweird.f32 %v4032_v1 }
 0x45e   :  { %v4035_v7 = vsub.f32 1.0, %v4034_v0  ;;  %5505 = vtanh.f32 %v4001_v12 }
 0x45f   :  { %v4060_v20 = vor.u32 1.1754944e-38, %v4059_v16  ;;  %vm4058_vm15 = vcmp.eq.f32.partialorder %v4057_v3, 8.507059e+37  ;;  %5507 = vtanh.f32 %v4002_v22 }
 0x460   :  { %v4036_v2 = vmul.f32 %v5502_v63, %v4035_v7 }
 0x462   :  { %v4037_v8 = vadd.f32 %v5502_v63, %v4036_v2 }
 0x463   :  { %v5504_v9 = vpop.eup %5503 }
 0x464   :  { %v4049_v10 = vmul.f32 %v5504_v9, %v4032_v1  ;;  %v4041_v42 = vsel %vm4040_vm10, %v5502_v63, %v4037_v8  ;;  %vm4054_vm12 = vweird.f32 %v5504_v9  ;;  %v5506_v25 = vpop.eup %5505 }
 0x465   :  { %v4046_v57 = vsel %vm4043_vm11, %v4045_v11, %v4041_v42  ;;  %vm4055_vm14 = vmor %vm4053_vm13, %vm4054_vm12  ;;  %v5508_v26 = vpop.eup %5507 }
 0x466   :  { %v4050_v13 = vsub.f32 1.0, %v4049_v10  ;;  %v4047_v14 = vmul.f32 %v5498_v55, %v4046_v57 }
 0x468   :  { %v4051_v17 = vmul.f32 %v5504_v9, %v4050_v13  ;;  %4065 = vrot.lane.b32.xlu2 %v4047_v14, %s5511_s20 }
 0x46a   :  { %v4052_v19 = vadd.f32 %v5504_v9, %v4051_v17 }
 0x46c   :  { %v4056_v21 = vsel %vm4055_vm14, %v5504_v9, %v4052_v19 }
 0x46d   :  { %v4061_v23 = vsel %vm4058_vm15, %v4060_v20, %v4056_v21 }
 0x46e   :  { %v4062_v24 = vmul.f32 %v5500_v58, %v4061_v23 }
 0x470   :  { %4067 = vrot.lane.b32.xlu0 %v4062_v24, %s5511_s20  ;;  %4075 = vrot.lane.b32.xlu2 %v5506_v25, %s5512_s4 }
 0x478   :  { %4077 = vrot.lane.b32.xlu0 %v5508_v26, %s5512_s4 }
 0x4c2   :  { %v4066_v27 = vpop.permute.xlu2 %4065 }
 0x4c3   :  { %4071 = vst.msk [vmem:[%s6576_s8] sm:$0xff] %vm4026_vm7, %v4066_v27 }
 0x4ca   :  { %v4076_v28 = vpop.permute.xlu2 %4075 }
 0x4cb   :  { %4082 = vst.msk [vmem:[%s6576_s8] sm:$0xff] %vm4081_vm0, %v4076_v28 }
 0x4e2   :  { %v4068_v29 = vpop.permute.xlu0 %4067 }
 0x4e3   :  { %4072 = vst.msk [vmem:[%s6576_s8 + $0x8] sm:$0xff] %vm4026_vm7, %v4068_v29 }
 0x4ea   :  { %v4078_v30 = vpop.permute.xlu0 %4077 }
 0x4eb   :  { %4083 = vst.msk [vmem:[%s6576_s8 + $0x8] sm:$0xff] %vm4081_vm0, %v4078_v30 }

</bundles_post_ra>
